<compile_context>
chip_gen: v5e
topology: v5e:2x2
jax: 0.10.0
libtpu: 0.0.40
codegen_flags: <defaults>
</compile_context>

<pallas_src>
import functools

import jax
import jax.numpy as jnp
from jax import lax
from jax.experimental import pallas as pl
from jax.experimental.pallas import tpu as pltpu

BN_EPS = 1e-5


def _round_up(x, m):
    return ((x + m - 1) // m) * m


# ----------------------------------------------------------------------------
# Kernel 1: fused backbone surrogate + projector, one grid step per view.
# ----------------------------------------------------------------------------
def _view_kernel(p_ref, mask_ref, ws_ref, w1_ref, g_ref, b_ref, w2_ref,
                 z_ref, *, batch, ohw):
    # --- backbone surrogate: stem conv as im2col matmul (bf16 in / f32 acc) ---
    feat = jnp.dot(p_ref[...], ws_ref[...],
                   preferred_element_type=jnp.float32)          # (B*OHW, F)
    feat = feat / (1.0 + jnp.exp(-feat))                        # swish: 1 EUP exp
    feat = feat.reshape(batch, ohw, feat.shape[-1])
    x = jnp.sum(feat, axis=1) * (1.0 / ohw)                     # GAP -> (B, F)

    # --- projector: Dropout -> Linear -> BN1d(batch stats) -> ReLU -> Linear ---
    x = x * mask_ref[0]                                         # keep mask (0/1)
    # dropout 1/keep_prob = 2 folded onto the narrow (B, Up) matmul result.
    h = jnp.dot(x.astype(jnp.bfloat16), w1_ref[...],
                preferred_element_type=jnp.float32) * 2.0       # (B, Up)
    mu = jnp.mean(h, axis=0, keepdims=True)
    var = jnp.mean((h - mu) ** 2, axis=0, keepdims=True)
    hn = (h - mu) * lax.rsqrt(var + BN_EPS)
    hn = hn * g_ref[...] + b_ref[...]                           # affine BN
    hn = jnp.maximum(hn, 0.0)                                   # ReLU
    z_ref[0] = jnp.dot(hn.astype(jnp.bfloat16), w2_ref[...],
                       preferred_element_type=jnp.float32)


def backbone_projector(patches_flat, keep_mask, w_stem, w1p, gp, bp, w2p, *,
                       batch, ohw):
    rows = batch * ohw                                          # rows per view
    k2 = patches_flat.shape[1]
    F = w_stem.shape[1]
    Up = w1p.shape[1]
    kern = functools.partial(_view_kernel, batch=batch, ohw=ohw)
    cost = pl.CostEstimate(
        flops=2 * (2 * rows * k2 * F + 2 * batch * F * Up + 2 * batch * Up * Up)
        + 8 * 2 * rows * F,
        transcendentals=2 * rows * F,
        bytes_accessed=2 * (2 * rows * k2 + k2 * F + F * Up + Up * Up)
        + 4 * (2 * batch * F + 2 * Up + 2 * batch * Up))
    return pl.pallas_call(
        kern,
        out_shape=jax.ShapeDtypeStruct((2, batch, Up), jnp.float32),
        grid=(2,),
        in_specs=[pl.BlockSpec((rows, k2), lambda v: (v, 0)),
                  pl.BlockSpec((1, batch, F), lambda v: (v, 0, 0)),
                  pl.BlockSpec((k2, F), lambda v: (0, 0)),       # resident
                  pl.BlockSpec((F, Up), lambda v: (0, 0)),       # resident
                  pl.BlockSpec((1, Up), lambda v: (0, 0)),
                  pl.BlockSpec((1, Up), lambda v: (0, 0)),
                  pl.BlockSpec((Up, Up), lambda v: (0, 0))],
        out_specs=pl.BlockSpec((1, batch, Up), lambda v: (v, 0, 0)),
        compiler_params=pltpu.CompilerParams(
            dimension_semantics=("parallel",)),
        cost_estimate=cost,
    )(patches_flat, keep_mask, w_stem, w1p, gp, bp, w2p)


# ----------------------------------------------------------------------------
# Kernel 2: Barlow Twins loss.
# ----------------------------------------------------------------------------
def _barlow_kernel(z_ref, loss_ref, *, batch_size, lambd, pad):
    def bn(zz):                               # BatchNorm1d(affine=False), batch stats
        mu = jnp.mean(zz, axis=0, keepdims=True)
        var = jnp.mean((zz - mu) ** 2, axis=0, keepdims=True)
        return (zz - mu) * lax.rsqrt(var + BN_EPS)

    a = bn(z_ref[0])                                            # (B, Up)
    b = bn(z_ref[1])                                            # (B, Up)
    inv_bs = 1.0 / batch_size
    # c = bn(z1).T @ bn(z2) / batch_size   (contract over the batch axis)
    c = lax.dot_general(a, b, (((0,), (0,)), ((), ())),
                        preferred_element_type=jnp.float32) * inv_bs
    # diagonal of c computed directly -- no (U,U) iota mask / masked reduce.
    diag = jnp.sum(a * b, axis=0, keepdims=True) * inv_bs       # (1, Up)
    # each zero-padded column is exactly 0 after no-affine BN and contributes
    # (0-1)^2 = 1 to on_diag; subtract the constant `pad` to correct.
    on_diag = jnp.sum((diag - 1.0) ** 2, keepdims=True) - float(pad)
    # TODO(synk): subtractive off-diag has f32 cancellation risk at real
    # U~8192; zero the diagonal per c-tile before squaring once c is tiled.
    off_diag = (jnp.sum(c * c, keepdims=True)
                - jnp.sum(diag * diag, keepdims=True))
    # TODO(synk): torch.distributed.all_reduce(c) is an identity on 1 device.
    loss_ref[...] = on_diag + lambd * off_diag


def barlow_loss(z, *, batch_size, lambd, pad):
    _, B, Up = z.shape
    kern = functools.partial(_barlow_kernel, batch_size=float(batch_size),
                             lambd=float(lambd), pad=int(pad))
    out = pl.pallas_call(
        kern,
        out_shape=jax.ShapeDtypeStruct((1, 1), jnp.float32),
        grid=(1,),
        in_specs=[pl.BlockSpec((2, B, Up), lambda i: (0, 0, 0))],
        out_specs=pl.BlockSpec((1, 1), lambda i: (0, 0)),
        compiler_params=pltpu.CompilerParams(
            dimension_semantics=("arbitrary",)),
    )(z)
    return out[0, 0]


# ----------------------------------------------------------------------------
# JAX glue: im2col patch extraction (EfficientNet stem: 3x3, stride 2, "same")
# (TF-style SAME padding, matching efficientnet-pytorch's StaticSamePadding.)
# ----------------------------------------------------------------------------
def extract_patches(x, k=3, stride=2):
    # x: (N, 1, H, W) NCHW
    N, _, H, W = x.shape
    OH = -(-H // stride)
    OW = -(-W // stride)
    ph = max((OH - 1) * stride + k - H, 0)
    pw = max((OW - 1) * stride + k - W, 0)
    xp = jnp.pad(x, ((0, 0), (0, 0), (ph // 2, ph - ph // 2),
                     (pw // 2, pw - pw // 2)))
    cols = []
    for i in range(k):
        for j in range(k):
            cols.append(xp[:, 0, i::stride, j::stride][:, :OH, :OW])
    p = jnp.stack(cols, axis=-1)                                # (N, OH, OW, k*k)
    return p.reshape(N, OH * OW, k * k)


def aaai_barlow_forward(batch1, batch2, params, *, batch_size, lambd,
                        dropout_key):
    B = batch1.shape[0]
    # stack the two views on the batch axis -> single patch-extraction pass
    x = jnp.concatenate([batch1, batch2], axis=0)               # (2B, 1, H, W)
    patches = extract_patches(x)                                # (2B, OHW, K2)
    _, OHW, K2 = patches.shape
    flat = patches.reshape(2 * B * OHW, K2).astype(jnp.bfloat16)

    F = params["w_stem"].shape[1]
    U = params["w1"].shape[1]
    Up = _round_up(U, 128)                                      # lane-dense width
    pad = Up - U
    w_stem = params["w_stem"].astype(jnp.bfloat16)
    w1p = jnp.pad(params["w1"], ((0, 0), (0, pad))).astype(jnp.bfloat16)
    gp = jnp.pad(params["gamma"].reshape(1, U), ((0, 0), (0, pad)))
    bp = jnp.pad(params["beta"].reshape(1, U), ((0, 0), (0, pad)))
    w2p = jnp.pad(params["w2"], ((0, pad), (0, pad))).astype(jnp.bfloat16)

    # TODO(synk): the dropout mask could be generated in-kernel with
    # pltpu.prng_seed / pltpu.stateful_bernoulli to skip this (2,B,F) DMA.
    keep = jax.random.bernoulli(dropout_key, 0.5,
                                (2, B, F)).astype(jnp.float32)

    z = backbone_projector(flat, keep, w_stem, w1p, gp, bp, w2p,
                           batch=B, ohw=OHW)                    # (2, B, Up)
    return barlow_loss(z, batch_size=batch_size, lambd=lambd, pad=pad)


if __name__ == "__main__":
    B, H, W = 2, 16, 16
    FEATS = 1280          # EfficientNet-b0 feature dim
    UNITS = 128           # args.final_units (lane-dense small shape for demo)
    LAMBD = 0.005         # args.lambd
    K2 = 9                # 3x3 stem kernel

    key = jax.random.PRNGKey(0)
    k_in1, k_in2, k_stem, k_w1, k_w2, k_drop = jax.random.split(key, 6)

    batch1 = jax.random.normal(k_in1, (B, 1, H, W), jnp.float32)
    batch2 = jax.random.normal(k_in2, (B, 1, H, W), jnp.float32)

    params = {
        "w_stem": jax.random.normal(k_stem, (K2, FEATS), jnp.float32) * (1.0 / 3.0),
        "w1": jax.random.normal(k_w1, (FEATS, UNITS), jnp.float32) * (FEATS ** -0.5),
        "gamma": jnp.ones((UNITS,), jnp.float32),
        "beta": jnp.zeros((UNITS,), jnp.float32),
        "w2": jax.random.normal(k_w2, (UNITS, UNITS), jnp.float32) * (UNITS ** -0.5),
    }

    loss = aaai_barlow_forward(batch1, batch2, params, batch_size=B,
                               lambd=LAMBD, dropout_key=k_drop)
    loss = jax.block_until_ready(loss)
    assert loss.shape == () and bool(jnp.isfinite(loss))
    print("KERNEL_OK")
</pallas_src>

<mosaic_0001>
module attributes {stable_mosaic.version = 11 : i64} {
  func.func @_view_kernel(%arg0: i32, %arg1: memref<128x9xbf16, #tpu.memory_space<vmem>>, %arg2: memref<1x2x1280xf32, #tpu.memory_space<vmem>>, %arg3: memref<9x1280xbf16, #tpu.memory_space<vmem>>, %arg4: memref<1280x128xbf16, #tpu.memory_space<vmem>>, %arg5: memref<1x128xf32, #tpu.memory_space<vmem>>, %arg6: memref<1x128xf32, #tpu.memory_space<vmem>>, %arg7: memref<128x128xbf16, #tpu.memory_space<vmem>>, %arg8: memref<1x2x128xf32, #tpu.memory_space<vmem>>) attributes {dimension_semantics = [#tpu.dimension_semantics<parallel>], iteration_bounds = array<i64: 2>, scalar_prefetch = 0 : i64, scratch_operands = 0 : i64, tpu.core_type = #tpu.core_type<tc>, window_params = [{transform_indices = @transform_0, window_bounds = array<i64: 128, 9>}, {transform_indices = @transform_1, window_bounds = array<i64: 1, 2, 1280>}, {pipeline_mode = #tpu.pipeline_mode<synchronous>, transform_indices = @transform_2, window_bounds = array<i64: 9, 1280>}, {pipeline_mode = #tpu.pipeline_mode<synchronous>, transform_indices = @transform_3, window_bounds = array<i64: 1280, 128>}, {pipeline_mode = #tpu.pipeline_mode<synchronous>, transform_indices = @transform_4, window_bounds = array<i64: 1, 128>}, {pipeline_mode = #tpu.pipeline_mode<synchronous>, transform_indices = @transform_5, window_bounds = array<i64: 1, 128>}, {pipeline_mode = #tpu.pipeline_mode<synchronous>, transform_indices = @transform_6, window_bounds = array<i64: 128, 128>}, {transform_indices = @transform_7, window_bounds = array<i64: 1, 2, 128>}]} {
    %c0 = arith.constant 0 : index
    %c0_0 = arith.constant 0 : index
    %0 = vector.load %arg1[%c0, %c0_0] : memref<128x9xbf16, #tpu.memory_space<vmem>>, vector<128x9xbf16>
    %c0_1 = arith.constant 0 : index
    %c0_2 = arith.constant 0 : index
    %1 = vector.load %arg3[%c0_1, %c0_2] : memref<9x1280xbf16, #tpu.memory_space<vmem>>, vector<9x1280xbf16>
    %cst = arith.constant dense<0.000000e+00> : vector<128x1280xf32>
    %2 = tpu.matmul %0, %1, %cst {dimension_numbers = #tpu.dot_dimension_numbers<[1], [0], [0], [1], [0, 0, 1, 1], [], []>} : vector<128x9xbf16>, vector<9x1280xbf16>, vector<128x1280xf32> -> vector<128x1280xf32>
    %cst_3 = arith.constant 0.000000e+00 : f32
    %3 = vector.broadcast %cst_3 : f32 to vector<128x1280xf32>
    %4 = arith.subf %3, %2 : vector<128x1280xf32>
    %5 = math.exp %4 : vector<128x1280xf32>
    %cst_4 = arith.constant 1.000000e+00 : f32
    %6 = vector.broadcast %cst_4 : f32 to vector<128x1280xf32>
    %7 = arith.addf %6, %5 : vector<128x1280xf32>
    %8 = arith.divf %2, %7 : vector<128x1280xf32>
    %9 = vector.shape_cast %8 : vector<128x1280xf32> to vector<2x64x1280xf32>
    %cst_5 = arith.constant dense<0.000000e+00> : vector<2x1280xf32>
    %10 = vector.multi_reduction <add>, %9, %cst_5 [1] : vector<2x64x1280xf32> to vector<2x1280xf32>
    %cst_6 = arith.constant 1.562500e-02 : f32
    %11 = vector.broadcast %cst_6 : f32 to vector<2x1280xf32>
    %12 = arith.mulf %10, %11 : vector<2x1280xf32>
    %c0_7 = arith.constant 0 : index
    %c0_8 = arith.constant 0 : index
    %c0_9 = arith.constant 0 : index
    %13 = vector.load %arg2[%c0_7, %c0_8, %c0_9] : memref<1x2x1280xf32, #tpu.memory_space<vmem>>, vector<1x2x1280xf32>
    %14 = vector.shape_cast %13 : vector<1x2x1280xf32> to vector<2x1280xf32>
    %15 = arith.mulf %12, %14 : vector<2x1280xf32>
    %16 = arith.truncf %15 : vector<2x1280xf32> to vector<2x1280xbf16>
    %c0_10 = arith.constant 0 : index
    %c0_11 = arith.constant 0 : index
    %17 = vector.load %arg4[%c0_10, %c0_11] : memref<1280x128xbf16, #tpu.memory_space<vmem>>, vector<1280x128xbf16>
    %cst_12 = arith.constant dense<0.000000e+00> : vector<2x128xf32>
    %18 = tpu.matmul %16, %17, %cst_12 {dimension_numbers = #tpu.dot_dimension_numbers<[1], [0], [0], [1], [0, 0, 1, 1], [], []>} : vector<2x1280xbf16>, vector<1280x128xbf16>, vector<2x128xf32> -> vector<2x128xf32>
    %cst_13 = arith.constant 2.000000e+00 : f32
    %19 = vector.broadcast %cst_13 : f32 to vector<2x128xf32>
    %20 = arith.mulf %18, %19 : vector<2x128xf32>
    %cst_14 = arith.constant dense<0.000000e+00> : vector<128xf32>
    %21 = vector.multi_reduction <add>, %20, %cst_14 [0] : vector<2x128xf32> to vector<128xf32>
    %22 = vector.shape_cast %21 : vector<128xf32> to vector<1x128xf32>
    %cst_15 = arith.constant 2.000000e+00 : f32
    %23 = vector.broadcast %cst_15 : f32 to vector<1x128xf32>
    %24 = arith.divf %22, %23 : vector<1x128xf32>
    %25 = vector.broadcast %24 : vector<1x128xf32> to vector<2x128xf32>
    %26 = arith.subf %20, %25 : vector<2x128xf32>
    %27 = arith.mulf %26, %26 : vector<2x128xf32>
    %cst_16 = arith.constant dense<0.000000e+00> : vector<128xf32>
    %28 = vector.multi_reduction <add>, %27, %cst_16 [0] : vector<2x128xf32> to vector<128xf32>
    %29 = vector.shape_cast %28 : vector<128xf32> to vector<1x128xf32>
    %cst_17 = arith.constant 2.000000e+00 : f32
    %30 = vector.broadcast %cst_17 : f32 to vector<1x128xf32>
    %31 = arith.divf %29, %30 : vector<1x128xf32>
    %32 = vector.broadcast %24 : vector<1x128xf32> to vector<2x128xf32>
    %33 = arith.subf %20, %32 : vector<2x128xf32>
    %cst_18 = arith.constant 9.99999974E-6 : f32
    %34 = vector.broadcast %cst_18 : f32 to vector<1x128xf32>
    %35 = arith.addf %31, %34 : vector<1x128xf32>
    %36 = math.rsqrt %35 : vector<1x128xf32>
    %37 = vector.broadcast %36 : vector<1x128xf32> to vector<2x128xf32>
    %38 = arith.mulf %33, %37 : vector<2x128xf32>
    %c0_19 = arith.constant 0 : index
    %c0_20 = arith.constant 0 : index
    %39 = vector.load %arg5[%c0_19, %c0_20] : memref<1x128xf32, #tpu.memory_space<vmem>>, vector<1x128xf32>
    %40 = vector.broadcast %39 : vector<1x128xf32> to vector<2x128xf32>
    %41 = arith.mulf %38, %40 : vector<2x128xf32>
    %c0_21 = arith.constant 0 : index
    %c0_22 = arith.constant 0 : index
    %42 = vector.load %arg6[%c0_21, %c0_22] : memref<1x128xf32, #tpu.memory_space<vmem>>, vector<1x128xf32>
    %43 = vector.broadcast %42 : vector<1x128xf32> to vector<2x128xf32>
    %44 = arith.addf %41, %43 : vector<2x128xf32>
    %cst_23 = arith.constant 0.000000e+00 : f32
    %45 = vector.broadcast %cst_23 : f32 to vector<2x128xf32>
    %46 = arith.maximumf %44, %45 : vector<2x128xf32>
    %47 = arith.truncf %46 : vector<2x128xf32> to vector<2x128xbf16>
    %c0_24 = arith.constant 0 : index
    %c0_25 = arith.constant 0 : index
    %48 = vector.load %arg7[%c0_24, %c0_25] : memref<128x128xbf16, #tpu.memory_space<vmem>>, vector<128x128xbf16>
    %cst_26 = arith.constant dense<0.000000e+00> : vector<2x128xf32>
    %49 = tpu.matmul %47, %48, %cst_26 {dimension_numbers = #tpu.dot_dimension_numbers<[1], [0], [0], [1], [0, 0, 1, 1], [], []>} : vector<2x128xbf16>, vector<128x128xbf16>, vector<2x128xf32> -> vector<2x128xf32>
    %c0_27 = arith.constant 0 : index
    %c0_28 = arith.constant 0 : index
    %c0_29 = arith.constant 0 : index
    %50 = vector.load %arg8[%c0_27, %c0_28, %c0_29] : memref<1x2x128xf32, #tpu.memory_space<vmem>>, vector<1x2x128xf32>
    %51 = vector.shape_cast %50 : vector<1x2x128xf32> to vector<2x128xf32>
    %52 = vector.shape_cast %49 : vector<2x128xf32> to vector<1x2x128xf32>
    tpu.vector_store %arg8[%c0_27, %c0_28, %c0_29], %52 {strides = array<i32>} : memref<1x2x128xf32, #tpu.memory_space<vmem>>, vector<1x2x128xf32>,
    return
  }
  func.func @transform_0(%arg0: i32) -> (i32, i32) {
    %c0_i32 = arith.constant 0 : i32
    %c0_i32_0 = arith.constant 0 : i32
    return %arg0, %c0_i32 : i32, i32
  }
  func.func @transform_1(%arg0: i32) -> (i32, i32, i32) {
    %c0_i32 = arith.constant 0 : i32
    %c0_i32_0 = arith.constant 0 : i32
    %c0_i32_1 = arith.constant 0 : i32
    return %arg0, %c0_i32, %c0_i32_0 : i32, i32, i32
  }
  func.func @transform_2(%arg0: i32) -> (i32, i32) {
    %c0_i32 = arith.constant 0 : i32
    %c0_i32_0 = arith.constant 0 : i32
    %c0_i32_1 = arith.constant 0 : i32
    return %c0_i32, %c0_i32_0 : i32, i32
  }
  func.func @transform_3(%arg0: i32) -> (i32, i32) {
    %c0_i32 = arith.constant 0 : i32
    %c0_i32_0 = arith.constant 0 : i32
    %c0_i32_1 = arith.constant 0 : i32
    return %c0_i32, %c0_i32_0 : i32, i32
  }
  func.func @transform_4(%arg0: i32) -> (i32, i32) {
    %c0_i32 = arith.constant 0 : i32
    %c0_i32_0 = arith.constant 0 : i32
    %c0_i32_1 = arith.constant 0 : i32
    return %c0_i32, %c0_i32_0 : i32, i32
  }
  func.func @transform_5(%arg0: i32) -> (i32, i32) {
    %c0_i32 = arith.constant 0 : i32
    %c0_i32_0 = arith.constant 0 : i32
    %c0_i32_1 = arith.constant 0 : i32
    return %c0_i32, %c0_i32_0 : i32, i32
  }
  func.func @transform_6(%arg0: i32) -> (i32, i32) {
    %c0_i32 = arith.constant 0 : i32
    %c0_i32_0 = arith.constant 0 : i32
    %c0_i32_1 = arith.constant 0 : i32
    return %c0_i32, %c0_i32_0 : i32, i32
  }
  func.func @transform_7(%arg0: i32) -> (i32, i32, i32) {
    %c0_i32 = arith.constant 0 : i32
    %c0_i32_0 = arith.constant 0 : i32
    %c0_i32_1 = arith.constant 0 : i32
    return %arg0, %c0_i32, %c0_i32_0 : i32, i32, i32
  }
}

</mosaic_0001>

<bundles_post_ra>
// kernel: tpu_custom_call.1
= control target key start
LH: loop header
LB: loop body
LE: loop exit
PB: predicated region body
PF: predicated region fallthrough
CT: control target
= control target key end

     0   :  { %s12088_s0 = inlined_call_operand.vmem [shape: bf16[256,9], index: 0, kind: input, shape index: {}]   ;;  %s12089_s1 = inlined_call_operand.hbm [shape: f32[2,2,1280], index: 1, kind: input, shape index: {}]   ;;  %s12090_s2 = inlined_call_operand.vmem [shape: bf16[9,1280], index: 2, kind: input, shape index: {}]   ;;  %s12091_s3 = inlined_call_operand.hbm [shape: bf16[1280,128], index: 3, kind: input, shape index: {}]   ;;  %s12092_s4 = inlined_call_operand.vmem [shape: f32[1,128], index: 4, kind: input, shape index: {}]   ;;  %s12093_s5 = inlined_call_operand.vmem [shape: f32[1,128], index: 5, kind: input, shape index: {}]   ;;  %s12094_s6 = inlined_call_operand.vmem [shape: bf16[128,128], index: 6, kind: input, shape index: {}]   ;;  %s12095_s7 = inlined_call_operand.hbm [shape: f32[2,2,128], index: 7, kind: output, shape index: {}]  }
   0x1   :  { %12099 = sst [smem:[#allocation14_spill]] %s12091_s3 }
   0x2   :  { %12 = vsyncpa [#allocation3], 0 }
   0x3   :  { %14 = vsyncpa [#allocation3 + $0x1], 0 }
   0x4   :  { %15 = vsyncpa [#allocation6], 0 }
   0x5   :  { %16 = vsyncpa [#allocation4], 0 }
   0x6   :  { %18 = vsyncpa [#allocation4 + $0x1], 0  ;;  %s7014_s24 = smov 0   ;;  %s7016_s25 = smov 0  }
   0x7   :  { %s7018_s26 = smov 0   ;;  %s7020_s27 = smov 0  }
   0x8 LB: > { %12100 = sst [smem:[#allocation11_spill]] %s6963_s26  ;;  %s7038_s8 = sadd.s32 4294967295, %s6967_s27   ;;  %s6967_s27 = sphi %s7020_s27, %s12586_s27   ;;  %s6963_s26 = sphi %s7018_s26, %s12591_s26   ;;  %s6959_s25 = sphi %s7016_s25, %s12590_s25   ;;  %s6955_s24 = sphi %s7014_s24, %s12589_s24  }
   0x9   : > { %s12101_s3 = sld [smem:[#allocation14_spill]]  ;;  %p5491_p0 = scmp.ge.s32.totalorder %s6967_s27, 1 }
   0xa   : > { %p71_p1 = scmp.eq.s32.totalorder %s7038_s8, 0  ;;  %p212_p2 = scmp.lt.s32.totalorder %s6967_s27, 3 }
   0xb   : > { %s6969_s10 = smov [#allocation5]   ;;  %s6970_s12 = smov 64  }
   0xc   : > { %p7043_p3 = pnand %p5491_p0, %p212_p2  ;;  %s228_s11 = sshll.u32 %s6969_s10, 4  ;;  %s229_s11 = int_to_ptr.vmem [resolvable:$true] %s228_s11 }
   0xd   : > { %s6971_s13 = smov 4   ;;  %s5490_s14 = sadd.s32 4294967294, %s6967_s27  }
   0xe   : > { %p6125_p4 = pneg %p7043_p3  ;;  %s7054_s15 = sadd.s32 1, %s6967_s27  }
   0xf   : > { %s226_s30 = sshll.u32 %s12101_s3, 4  ;;  %12103 = sst [smem:[#allocation12_spill]] %s7054_s15  ;;  %s227_s30 = int_to_ptr.hbm [resolvable:$true] %s226_s30 }
  0x10   : > { %p6126_p6 = pnand %p6125_p4, %p71_p1  ;;  %s57_s16 = sadd.s32 1, %s6963_s26 }
  0x11   : > { %s54_s17 = ssub.s32 %s6967_s27, %s7054_s15  ;;  %p64_p7 = scmp.ne.s32.totalorder %s6963_s26, %s6959_s25 }
  0x12   : > { %6128 = dma.hbm_to_vmem [thread:$0]  (!%p6126_p6), %s227_s30, 10240, %s229_s11, [#allocation6], %s6970_s12, %s6970_s12, %s6971_s13  }
  0x13   : > { %p55_p8 = scmp.eq.s32.totalorder %s54_s17, 0  ;;  %p65_p9 = scmp.eq.s32.totalorder %s6967_s27, 0 }
  0x14   : > { %p70_p10 = scmp.ne.s32.totalorder %s6959_s25, %s6955_s24  ;;  %p199_p11 = scmp.eq.s32.totalorder %s7038_s8, 1 }
  0x15   : > { %s7066_s18 = scalar_select %p55_p8, %s6963_s26, %s57_s16  }
  0x16   : > { %p66_p12 = por %p65_p9, %p64_p7  ;;  %p7070_p13 = por %p71_p1, %p70_p10 }
  0x17   : > { %12104 = sst [smem:[#allocation13_spill]] %s7066_s18  ;;  %p7074_p0 = por %p199_p11, %p64_p7 }
  0x18   : > { %p205_p2 = scmp.eq.s32.totalorder %s5490_s14, 1  ;;  %p6138_p4 = scmp.lt.s32.totalorder %s6967_s27, 2 }
  0x19   : > { %s260_s21 = sand.u32 1, %s6963_s26   ;;  %s6115_s29 = smul.u32 20, %s6967_s27 }
  0x1a   : > { %p7080_p6 = por %p205_p2, %p70_p10  ;;  %s6114_s23 = smul.u32 20, %s260_s21 }
  0x1b   : > { %p7084_p8 = pnand %p6138_p4, %p66_p12  ;;  %s269_s11 = scalar_lea.hbm %s12089_s1, %s6115_s29 }
  0x1c   : > { %s264_s12 = scalar_lea.vmem [#allocation2], %s6114_s23  ;;  %s271_s14 = sshll.u32 %s269_s11, 4  ;;  %s272_s14 = int_to_ptr.hbm [resolvable:$true] %s271_s14 }
  0x1d   : > { %s273_s13 = sshll.u32 %s264_s12, 4  ;;  %s261_s16 = scalar_lea.sflag [#allocation3], %s260_s21  ;;  %s274_s13 = int_to_ptr.vmem [resolvable:$true] %s273_s13 }
  0x1e   : > { %s6867_s17 = sshra.s32 %s272_s14, 4  ;;  %p6871_p9 = pneg %p7084_p8  ;;  %s6868_s17 = int_to_ptr.hbm [resolvable:$true] %s6867_s17 }
  0x1f   : > { %s6869_s3 = scalar_lea.hbm %s6868_s17, 20  ;;  %s6874_s15 = scalar_lea.hbm %s12089_s1, 40 }
  0x20   : > { %p6870_p7 = scmp.ne.s32.totalorder %s6868_s17, %s6869_s3  ;;  %p6875_p12 = scmp.lt.s32.totalorder %s6868_s17, %s12089_s1 }
  0x21   : > { %p6876_p2 = scmp.lt.s32.totalorder %s6874_s15, %s6869_s3 }
  0x22   : > { %p6872_p10 = pnand %p6871_p9, %p6870_p7 }
  0x23   : > { %p6877_p4 = por %p6876_p2, %p6875_p12 }
  0x24   : > { %p6873_p11 = pneg %p6872_p10 }
  0x26   : > { %p6878_p5 = pnand %p6877_p4, %p6873_p11 }
  0x28   : > { %6881 = shalt.err (!%p6878_p5)
}
  0x29   : > { %6132 = dma.hbm_to_vmem [thread:$0]  (!%p7084_p8), %s272_s14, 320, %s274_s13, %s261_s16  }
  0x2a   : > { %282 = sbr.rel (%p7043_p3) target bundleno = 1366 (0x556), region = 48  ;;  %s7105_s21 = sand.u32 (!%p7043_p3), 1, %s6959_s25  }
  0x2b   : > { %s6116_s26 = smul.u32 (!%p7043_p3), 20, %s7105_s21  ;;  %s285_s18 = scalar_lea.sflag (!%p7043_p3), [#allocation3], %s7105_s21 }
  0x2d   : > { %s7109_s23 = scalar_lea.vmem (!%p7043_p3), [#allocation2], %s6116_s26 }
  0x2f   : > { %6942 = dma.done.wait (%p7070_p13), %s285_s18, 320  }
  0x30   : > { %6944 = vsyncadd (%p7070_p13), %s285_s18, 4294966976 }
  0x31   : > { %6946 = dma.done.wait (%p71_p1), [#allocation6], 10240  }
  0x32   : > { %6948 = vsyncadd (%p71_p1), [#allocation6], 4294957056  ;;  %vm468_vm0 = vcmask 1043456   ;;  %s5498_s3 = sshll.u32 %s7038_s8, 4  ;;  %vm469_vm1 = vcmask 1044480   ;;  %v6972_v0 = vmov 65535  }
  0x33   : > { %p331_p3 = scmp.lt.s32.totalorder %s5498_s3, 31  ;;  %v470_v1 = vsel %vm468_vm0, 4294967295, %v6972_v0  ;;  %v5534_v3 = vld [vmem:[%s12090_s2] sm:$0xf]  ;;  %v6021_v4 = vld [vmem:[%s12090_s2 + $0x24] sm:$0x10] }
  0x34   : > { %v7120_v2 = vsel %vm469_vm1, %v470_v1, 0  ;;  %v6016_v5 = vld [vmem:[%s12090_s2 + $0x4] sm:$0xf]  ;;  %v5535_v6 = vor.u32 %v6021_v4, %v5534_v3  ;;  %v5536_v7 = vld [vmem:[%s12090_s2 + $0x28] sm:$0x10]  ;;  %vm443_vm2 = vcmask 72704  }
  0x35   : > { %s12593_s3 = smov (!%p331_p3, %s5498_s3), 31  ;;  %v5542_v8 = vld [vmem:[%s12090_s2 + $0x8] sm:$0xf]  ;;  %v6022_v9 = vld [vmem:[%s12090_s2 + $0x2c] sm:$0x10]  ;;  %v5539_v10 = vor.u32 %v6016_v5, %v5536_v7  ;;  %s6005_s18 = sshll.u32 %s7038_s8, 1 }
  0x36   : > { %s5499_s9 = sshll.u32 %s12593_s3, 2  ;;  %v5543_v11 = vor.u32 %v6022_v9, %v5542_v8  ;;  %v6017_v12 = vld [vmem:[%s12090_s2 + $0xc] sm:$0xf]  ;;  %v5544_v13 = vld [vmem:[%s12090_s2 + $0x30] sm:$0x10]  ;;  %v473_v14 = vand.u32 %v5535_v6, %v7120_v2  ;;  %s5497_s15 = sshll.u32 %s7105_s21, 1 }
  0x37   : > { %s7143_s3 = scalar_lea.vmem %s12088_s0, %s5499_s9  ;;  %v5547_v15 = vor.u32 %v6017_v12, %v5544_v13  ;;  %v5550_v16 = vld [vmem:[%s12090_s2 + $0x10] sm:$0xf]  ;;  %v6023_v17 = vld [vmem:[%s12090_s2 + $0x34] sm:$0x10]  ;;  %v6018_v18 = vld [vmem:[%s12090_s2 + $0x14] sm:$0xf]  ;;  %v476_v19 = vand.u32 %v5539_v10, %v7120_v2  ;;  %s5393_s10 = scalar_lea.hbm %s12095_s7, %s6005_s18 }
  0x38   : > { %v479_v20 = vand.u32 %v5543_v11, %v7120_v2  ;;  %v7164_v21 = vld [vmem:[%s7143_s3] sm:$0xff]  ;;  %v5551_v22 = vor.u32 %v6023_v17, %v5550_v16  ;;  %v5552_v23 = vld [vmem:[%s12090_s2 + $0x38] sm:$0x10]  ;;  %509 = vmatpush.bf16.msra.mxu0 %v473_v14  ;;  %v7181_v28 = vld [vmem:[%s7143_s3 + $0x8] sm:$0xff]  ;;  %s329_s11 = scalar_lea.vmem [#allocation7], %s5497_s15  ;;  %s5397_s9 = sshll.u32 %s5393_s10, 4  ;;  %s5398_s9 = int_to_ptr.hbm [resolvable:$true] %s5397_s9 }
  0x39   : > { %v482_v24 = vand.u32 %v5547_v15, %v7120_v2  ;;  %v5555_v25 = vor.u32 %v6018_v18, %v5552_v23  ;;  %558 = vmatpush.bf16.msra.mxu1 %v476_v19  ;;  %v7192_v29 = vld [vmem:[%s7143_s3 + $0x10] sm:$0xff]  ;;  %v7203_v30 = vld [vmem:[%s7143_s3 + $0x18] sm:$0xff]  ;;  %v7214_v31 = vld [vmem:[%s7143_s3 + $0x20] sm:$0xff]  ;;  %s5395_s12 = sshll.u32 %s329_s11, 4  ;;  %s5383_s13 = scalar_lea.sflag [#allocation4], %s7105_s21  ;;  %s5396_s12 = int_to_ptr.vmem [resolvable:$true] %s5395_s12 }
  0x3a   : > { %607 = vmatpush.bf16.msra.mxu2 %v479_v20  ;;  %v485_v26 = vand.u32 %v5551_v22, %v7120_v2  ;;  %v7225_v32 = vld [vmem:[%s7143_s3 + $0x28] sm:$0xff]  ;;  %v5558_v33 = vld [vmem:[%s12090_s2 + $0x18] sm:$0xf]  ;;  %v6024_v34 = vld [vmem:[%s12090_s2 + $0x3c] sm:$0x10]  ;;  %s6911_s14 = sshra.s32 %s5398_s9, 4  ;;  %s6912_s14 = int_to_ptr.hbm [resolvable:$true] %s6911_s14 }
  0x3b   : > { %656 = vmatpush.bf16.msra.mxu3 %v482_v24  ;;  %v488_v27 = vand.u32 %v5555_v25, %v7120_v2  ;;  %5572 = vmatmul.msk.bf16.vlgmr.msra.gmra.mxu0 %vm443_vm2, %v7164_v21  ;;  %v6019_v35 = vld [vmem:[%s12090_s2 + $0x1c] sm:$0xf]  ;;  %v5559_v36 = vor.u32 %v6024_v34, %v5558_v33  ;;  %v5560_v37 = vld [vmem:[%s12090_s2 + $0x40] sm:$0x10]  ;;  %v7250_v41 = vld [vmem:[%s7143_s3 + $0x30] sm:$0xff]  ;;  %s6913_s16 = scalar_lea.hbm %s6912_s14, 2  ;;  %p6918_p8 = scmp.lt.s32.totalorder %s6912_s14, %s12095_s7 }
  0x3c   : > { %5580 = vmatmul.msk.bf16.vlgmr.msra.gmra.mxu1 %vm443_vm2, %v7164_v21  ;;  %705 = vmatpush.bf16.msrb.mxu0 %v485_v26  ;;  %v5563_v38 = vor.u32 %v6019_v35, %v5560_v37  ;;  %v6015_v42 = vld [vmem:[%s7143_s3 + $0x38] sm:$0xff]  ;;  %v5566_v44 = vld [vmem:[%s12090_s2 + $0x20] sm:$0xf]  ;;  %v6025_v45 = vld [vmem:[%s12090_s2 + $0x44] sm:$0x10]  ;;  %p6914_p1 = scmp.ne.s32.totalorder %s6912_s14, %s6913_s16  ;;  %s6917_s30 = scalar_lea.hbm %s12095_s7, 4 }
  0x3d   : > { %5588 = vmatmul.msk.bf16.vlgmr.msra.gmra.mxu2 %vm443_vm2, %v7164_v21  ;;  %754 = vmatpush.bf16.msrb.mxu1 %v488_v27  ;;  %v491_v39 = vand.u32 %v5559_v36, %v7120_v2  ;;  %v6020_v46 = vld [vmem:[%s12090_s2 + $0x24] sm:$0xf]  ;;  %v5567_v49 = vor.u32 %v6025_v45, %v5566_v44  ;;  %v5568_v50 = vld [vmem:[%s12090_s2 + $0x48] sm:$0x10]  ;;  %p6919_p7 = scmp.lt.s32.totalorder %s6917_s30, %s6913_s16 }
  0x3e   : > { %5596 = vmatmul.msk.bf16.vlgmr.msra.gmra.mxu3 %vm443_vm2, %v7164_v21  ;;  %v494_v40 = vand.u32 %v5563_v38, %v7120_v2  ;;  %v5571_v52 = vor.u32 %v6020_v46, %v5568_v50  ;;  %p6915_p5 = pnand %p6914_p1, %p7074_p0 }
  0x3f   : > { %803 = vmatpush.bf16.msrb.mxu2 %v491_v39  ;;  %v497_v54 = vand.u32 %v5567_v49, %v7120_v2  ;;  %p6920_p9 = por %p6919_p7, %p6918_p8 }
  0x40   : > { %852 = vmatpush.bf16.msrb.mxu3 %v494_v40  ;;  %v500_v56 = vand.u32 %v5571_v52, %v7120_v2  ;;  %p6916_p13 = pneg %p6915_p5 }
  0x41   : > { %901 = vmatpush.bf16.msra.mxu0 %v497_v54 }
  0x42   : > { %950 = vmatpush.bf16.msra.mxu1 %v500_v56  ;;  %p6921_p10 = pnand %p6920_p9, %p6916_p13 }
  0x4b   : > { %5573 = vmatmul.msk.bf16.gmra.mxu0 %vm443_vm2, %v7181_v28 }
  0x4c   : > { %5581 = vmatmul.msk.bf16.gmra.mxu1 %vm443_vm2, %v7181_v28 }
  0x4d   : > { %5589 = vmatmul.msk.bf16.gmra.mxu2 %vm443_vm2, %v7181_v28 }
  0x4e   : > { %5597 = vmatmul.msk.bf16.gmra.mxu3 %vm443_vm2, %v7181_v28 }
  0x5b   : > { %5574 = vmatmul.msk.bf16.gmra.mxu0 %vm443_vm2, %v7192_v29 }
  0x5c   : > { %5582 = vmatmul.msk.bf16.gmra.mxu1 %vm443_vm2, %v7192_v29 }
  0x5d   : > { %5590 = vmatmul.msk.bf16.gmra.mxu2 %vm443_vm2, %v7192_v29 }
  0x5e   : > { %5598 = vmatmul.msk.bf16.gmra.mxu3 %vm443_vm2, %v7192_v29 }
  0x6b   : > { %5575 = vmatmul.msk.bf16.gmra.mxu0 %vm443_vm2, %v7203_v30 }
  0x6c   : > { %5583 = vmatmul.msk.bf16.gmra.mxu1 %vm443_vm2, %v7203_v30 }
  0x6d   : > { %5591 = vmatmul.msk.bf16.gmra.mxu2 %vm443_vm2, %v7203_v30 }
  0x6e   : > { %5599 = vmatmul.msk.bf16.gmra.mxu3 %vm443_vm2, %v7203_v30 }
  0x7b   : > { %5576 = vmatmul.msk.bf16.gmra.mxu0 %vm443_vm2, %v7214_v31 }
  0x7c   : > { %5584 = vmatmul.msk.bf16.gmra.mxu1 %vm443_vm2, %v7214_v31 }
  0x7d   : > { %5592 = vmatmul.msk.bf16.gmra.mxu2 %vm443_vm2, %v7214_v31 }
  0x7e   : > { %5600 = vmatmul.msk.bf16.gmra.mxu3 %vm443_vm2, %v7214_v31 }
  0x8b   : > { %5577 = vmatmul.msk.bf16.gmra.mxu0 %vm443_vm2, %v7225_v32 }
  0x8c   : > { %5585 = vmatmul.msk.bf16.gmra.mxu1 %vm443_vm2, %v7225_v32 }
  0x8d   : > { %5593 = vmatmul.msk.bf16.gmra.mxu2 %vm443_vm2, %v7225_v32 }
  0x8e   : > { %5601 = vmatmul.msk.bf16.gmra.mxu3 %vm443_vm2, %v7225_v32 }
  0x9b   : > { %5578 = vmatmul.msk.bf16.gmra.mxu0 %vm443_vm2, %v7250_v41 }
  0x9c   : > { %5586 = vmatmul.msk.bf16.gmra.mxu1 %vm443_vm2, %v7250_v41 }
  0x9d   : > { %5594 = vmatmul.msk.bf16.gmra.mxu2 %vm443_vm2, %v7250_v41 }
  0x9e   : > { %5602 = vmatmul.msk.bf16.gmra.mxu3 %vm443_vm2, %v7250_v41 }
  0xab   : > { %5579 = vmatmul.msk.bf16.gmra.mxu0 %vm443_vm2, %v6015_v42 }
  0xac   : > { %5587 = vmatmul.msk.bf16.gmra.mxu1 %vm443_vm2, %v6015_v42 }
  0xad   : > { %5595 = vmatmul.msk.bf16.gmra.mxu2 %vm443_vm2, %v6015_v42 }
  0xae   : > { %5603 = vmatmul.msk.bf16.gmra.mxu3 %vm443_vm2, %v6015_v42 }
  0xb8   : > { %v7265_v43 = vpop.f32.mrf.mxu0 }
  0xb9   : > { %v992_v47 = vsub.f32 0.0, %v7265_v43  ;;  %v7277_v48 = vpop.f32.mrf.mxu1 }
  0xba   : > { %v993_v51 = vsub.f32 0.0, %v7277_v48 }
  0xbb   : > { %v1152_v53 = vmul.f32 1.442695, %v992_v47  ;;  %5604 = vmatmul.msk.bf16.vlgmr.msrb.gmra.mxu0 %vm443_vm2, %v7164_v21 }
  0xbc   : > { %v1154_v55 = vmul.f32 1.442695, %v993_v51  ;;  %5612 = vmatmul.msk.bf16.vlgmr.msrb.gmra.mxu1 %vm443_vm2, %v7164_v21 }
  0xbd   : > { %5620 = vmatmul.msk.bf16.vlgmr.msrb.gmra.mxu2 %vm443_vm2, %v7164_v21  ;;  %6180 = vpow2.f32 %v1152_v53 }
  0xbe   : > { %5628 = vmatmul.msk.bf16.vlgmr.msrb.gmra.mxu3 %vm443_vm2, %v7164_v21  ;;  %6182 = vpow2.f32 %v1154_v55 }
  0xc0   : > { %v7293_v57 = vpop.f32.mrf.mxu2  ;;  %v7298_v60 = vpop.f32.mrf.mxu0 }
  0xc1   : > { %v994_v58 = vsub.f32 0.0, %v7293_v57  ;;  %v7296_v59 = vpop.f32.mrf.mxu3  ;;  %v1002_v62 = vsub.f32 0.0, %v7298_v60  ;;  %v7302_v63 = vpop.f32.mrf.mxu1 }
  0xc2   : > { %v995_v61 = vsub.f32 0.0, %v7296_v59  ;;  %v1003_v1 = vsub.f32 0.0, %v7302_v63 }
  0xc3   : > { %v1156_v0 = vmul.f32 1.442695, %v994_v58  ;;  %v6181_v2 = vpop.eup %6180  ;;  %v1172_v6 = vmul.f32 1.442695, %v1002_v62 }
  0xc4   : > { %v1158_v3 = vmul.f32 1.442695, %v995_v61  ;;  %v6183_v4 = vpop.eup %6182  ;;  %v1472_v5 = vadd.f32 1.0, %v6181_v2  ;;  %v1174_v8 = vmul.f32 1.442695, %v1003_v1 }
  0xc5   : > { %6184 = vpow2.f32 %v1156_v0  ;;  %v7305_v7 = vadd.f32 1.0, %v6183_v4 }
  0xc6   : > { %6186 = vpow2.f32 %v1158_v3  ;;  %v1641_v15 = vand.u32 2147483647, %v1472_v5  ;;  %v1643_v16 = vand.u32 2147483648, %v1472_v5  ;;  %vm1637_vm3 = vweird.f32 %v1472_v5 }
  0xc7   : > { %6188 = vrcp.f32 %v1472_v5  ;;  %v1658_v20 = vand.u32 2147483648, %v7305_v7  ;;  %v1656_v25 = vand.u32 2147483647, %v7305_v7  ;;  %vm1652_vm4 = vweird.f32 %v7305_v7 }
  0xc8   : > { %6190 = vrcp.f32 %v7305_v7  ;;  %v7308_v9 = vpop.f32.mrf.mxu2  ;;  %v7311_v11 = vpop.f32.mrf.mxu0  ;;  %vm7337_vm5 = vcmp.eq.f32.partialorder %v1641_v15, 8.507059e+37  ;;  %v1644_v38 = vor.u32 1.1754944e-38, %v1643_v16 }
  0xc9   : > { %6192 = vpow2.f32 %v1172_v6  ;;  %v1004_v10 = vsub.f32 0.0, %v7308_v9  ;;  %v1012_v13 = vsub.f32 0.0, %v7311_v11  ;;  %v7316_v18 = vpop.f32.mrf.mxu1  ;;  %v1659_v39 = vor.u32 1.1754944e-38, %v1658_v20 }
  0xca   : > { %6194 = vpow2.f32 %v1174_v8  ;;  %v1013_v34 = vsub.f32 0.0, %v7316_v18  ;;  %vm7342_vm7 = vcmp.eq.f32.partialorder %v1656_v25, 8.507059e+37  ;;  %v7390_v8 = vpop.f32.mrf.mxu3 }
  0xcb   : > { %v6185_v12 = vpop.eup %6184  ;;  %5605 = vmatmul.msk.bf16.gmra.mxu0 %vm443_vm2, %v7181_v28  ;;  %v1176_v22 = vmul.f32 1.442695, %v1004_v10  ;;  %v1192_v33 = vmul.f32 1.442695, %v1012_v13 }
  0xcc   : > { %v6187_v14 = vpop.eup %6186  ;;  %v7314_v17 = vadd.f32 1.0, %v6185_v12  ;;  %5613 = vmatmul.msk.bf16.gmra.mxu1 %vm443_vm2, %v7181_v28  ;;  %v7353_v50 = vmul.f32 1.442695, %v1013_v34  ;;  %v1005_v12 = vsub.f32 0.0, %v7390_v8 }
  0xcd   : > { %v6189_v19 = vpop.eup %6188  ;;  %v7321_v21 = vadd.f32 1.0, %v6187_v14  ;;  %5621 = vmatmul.msk.bf16.gmra.mxu2 %vm443_vm2, %v7181_v28 }
  0xce   : > { %v7327_v23 = vpop.eup %6190  ;;  %v1633_v24 = vmul.f32 %v6189_v19, %v1472_v5  ;;  %6196 = vrcp.f32 %v7314_v17  ;;  %5629 = vmatmul.msk.bf16.gmra.mxu3 %vm443_vm2, %v7181_v28  ;;  %vm1638_vm6 = vweird.f32 %v6189_v19  ;;  %v1673_v44 = vand.u32 2147483648, %v7314_v17 }
  0xcf   : > { %v6193_v26 = vpop.eup %6192  ;;  %v1648_v27 = vmul.f32 %v7327_v23, %v7305_v7  ;;  %6198 = vrcp.f32 %v7321_v21  ;;  %v1671_v49 = vand.u32 2147483647, %v7314_v17  ;;  %vm1653_vm8 = vweird.f32 %v7327_v23  ;;  %vm1639_vm9 = vmor %vm1637_vm3, %vm1638_vm6 }
  0xd0   : > { %v6195_v35 = vpop.eup %6194  ;;  %v1634_v36 = vsub.f32 1.0, %v1633_v24  ;;  %6200 = vpow2.f32 %v1176_v22  ;;  %v7347_v45 = vadd.f32 1.0, %v6193_v26  ;;  %v1686_v53 = vand.u32 2147483647, %v7321_v21  ;;  %vm7379_vm12 = vmor %vm1652_vm4, %vm1653_vm8 }
  0xd1   : > { %v1649_v28 = vsub.f32 1.0, %v1648_v27  ;;  %v7349_v46 = vadd.f32 1.0, %v6195_v35  ;;  %6202 = vpow2.f32 %v1192_v33  ;;  %vm1667_vm10 = vweird.f32 %v7314_v17 }
  0xd2   : > { %v1635_v40 = vmul.f32 %v6189_v19, %v1634_v36  ;;  %6204 = vrcp.f32 %v7347_v45  ;;  %v1688_v56 = vand.u32 2147483648, %v7321_v21  ;;  %v7369_v62 = vor.u32 1.1754944e-38, %v1673_v44 }
  0xd3   : > { %v1650_v47 = vmul.f32 %v7327_v23, %v1649_v28  ;;  %vm1682_vm11 = vweird.f32 %v7321_v21  ;;  %6206 = vrcp.f32 %v7349_v46  ;;  %vm7383_vm13 = vcmp.eq.f32.partialorder %v1671_v49, 8.507059e+37 }
  0xd4   : > { %v7355_v51 = vpop.eup %6196  ;;  %v1636_v52 = vadd.f32 %v6189_v19, %v1635_v40  ;;  %v1791_v6 = vand.u32 2147483647, %v7347_v45  ;;  %vm7396_vm15 = vcmp.eq.f32.partialorder %v1686_v53, 8.507059e+37  ;;  %v1689_v16 = vor.u32 1.1754944e-38, %v1688_v56 }
  0xd5   : > { %v1651_v54 = vadd.f32 %v7327_v23, %v1650_v47  ;;  %v1663_v55 = vmul.f32 %v7355_v51, %v7314_v17  ;;  %v7367_v58 = vpop.eup %6198  ;;  %vm1668_vm14 = vweird.f32 %v7355_v51  ;;  %vm1787_vm1 = vweird.f32 %v7347_v45 }
  0xd6   : > { %v1640_v61 = vsel %vm1639_vm9, %v6189_v19, %v1636_v52  ;;  %v6201_v0 = vpop.eup %6200  ;;  %v1678_v5 = vmul.f32 %v7367_v58, %v7321_v21  ;;  %vm1683_vm0 = vweird.f32 %v7367_v58  ;;  %v1793_v22 = vand.u32 2147483648, %v7347_v45  ;;  %vm7417_vm3 = vmor %vm1667_vm10, %vm1668_vm14 }
  0xd7   : > { %v1645_v1 = vsel %vm7337_vm5, %v1644_v38, %v1640_v61  ;;  %v1664_v3 = vsub.f32 1.0, %v1663_v55  ;;  %v1655_v7 = vsel %vm7379_vm12, %v7327_v23, %v1651_v54  ;;  %v6203_v13 = vpop.eup %6202  ;;  %v7408_v23 = vadd.f32 1.0, %v6201_v0  ;;  %vm7432_vm6 = vmor %vm1682_vm11, %vm1683_vm0  ;;  %v7475_v0 = vpop.f32.mrf.mxu2 }
  0xd8   : > { %v1679_v15 = vsub.f32 1.0, %v1678_v5  ;;  %v6205_v19 = vpop.eup %6204  ;;  %v7404_v20 = vmul.f32 %v1645_v1, %v7265_v43  ;;  %v1660_v24 = vsel %vm7342_vm7, %v1659_v39, %v1655_v7  ;;  %vm7423_vm4 = vcmp.eq.f32.partialorder %v1791_v6, 8.507059e+37  ;;  %v7484_v5 = vpop.f32.mrf.mxu1 }
  0xd9   : > { %v1665_v14 = vmul.f32 %v7355_v51, %v1664_v3  ;;  %v1783_v27 = vmul.f32 %v6205_v19, %v7347_v45  ;;  %vm1802_vm5 = vweird.f32 %v7349_v46  ;;  %v6207_v34 = vpop.eup %6206  ;;  %v1806_v35 = vand.u32 2147483647, %v7349_v46  ;;  %v7492_v7 = vpop.f32.mrf.mxu3 }
  0xda   : > { %v1680_v43 = vmul.f32 %v7367_v58, %v1679_v15  ;;  %v1808_v36 = vand.u32 2147483648, %v7349_v46  ;;  %6208 = vrcp.f32 %v7408_v23  ;;  %v1178_v37 = vmul.f32 1.442695, %v1005_v12 }
  0xdb   : > { %v1666_v25 = vadd.f32 %v7355_v51, %v1665_v14  ;;  %5606 = vmatmul.msk.bf16.gmra.mxu0 %vm443_vm2, %v7192_v29  ;;  %v1784_v28 = vsub.f32 1.0, %v1783_v27  ;;  %v1798_v39 = vmul.f32 %v6207_v34, %v7349_v46  ;;  %v7443_v21 = vadd.f32 1.0, %v6203_v13 }
  0xdc   : > { %v1681_v38 = vadd.f32 %v7367_v58, %v1680_v43  ;;  %5614 = vmatmul.msk.bf16.gmra.mxu1 %vm443_vm2, %v7192_v29  ;;  %v1661_v40 = vmul.f32 %v1660_v24, %v7277_v48  ;;  %vm1788_vm7 = vweird.f32 %v6205_v19  ;;  %v1794_v44 = vor.u32 1.1754944e-38, %v1793_v22 }
  0xdd   : > { %5622 = vmatmul.msk.bf16.gmra.mxu2 %vm443_vm2, %v7192_v29  ;;  %v1670_v42 = vsel %vm7417_vm3, %v7355_v51, %v1666_v25  ;;  %v1785_v49 = vmul.f32 %v6205_v19, %v1784_v28  ;;  %v1799_v52 = vsub.f32 1.0, %v1798_v39  ;;  %v1821_v53 = vand.u32 2147483647, %v7408_v23  ;;  %vm1789_vm10 = vmor %vm1787_vm1, %vm1788_vm7 }
  0xde   : > { %5630 = vmatmul.msk.bf16.gmra.mxu3 %vm443_vm2, %v7192_v29  ;;  %v1685_v47 = vsel %vm7432_vm6, %v7367_v58, %v1681_v38  ;;  %vm7459_vm8 = vcmp.eq.f32.partialorder %v1806_v35, 8.507059e+37  ;;  %v1809_v48 = vor.u32 1.1754944e-38, %v1808_v36  ;;  %v1823_v51 = vand.u32 2147483648, %v7408_v23 }
  0xdf   : > { %6210 = vpow2.f32 %v1178_v37  ;;  %v1786_v55 = vadd.f32 %v6205_v19, %v1785_v49  ;;  %v1800_v56 = vmul.f32 %v6207_v34, %v1799_v52  ;;  %vm1803_vm9 = vweird.f32 %v6207_v34 }
  0xe0   : > { %6212 = vrcp.f32 %v7443_v21  ;;  %v6209_v29 = vpop.eup %6208  ;;  %v1675_v58 = vsel %vm7383_vm13, %v7369_v62, %v1670_v42  ;;  %v1690_v61 = vsel %vm7396_vm15, %v1689_v16, %v1685_v47  ;;  %vm1817_vm11 = vweird.f32 %v7408_v23  ;;  %v7482_v62 = vpop.f32.mrf.mxu0  ;;  %vm1804_vm13 = vmor %vm1802_vm5, %vm1803_vm9 }
  0xe1   : > { %6214 = vpow2.f32 %v7353_v50  ;;  %v1790_v1 = vsel %vm1789_vm10, %v6205_v19, %v1786_v55  ;;  %v1801_v2 = vadd.f32 %v6207_v34, %v1800_v56  ;;  %v1813_v3 = vmul.f32 %v6209_v29, %v7408_v23 }
  0xe2   : > { %vm7478_vm12 = vcmp.eq.f32.partialorder %v1821_v53, 8.507059e+37  ;;  %v1795_v45 = vsel %vm7423_vm4, %v1794_v44, %v1790_v1  ;;  %vm1818_vm14 = vweird.f32 %v6209_v29  ;;  %v1824_v50 = vor.u32 1.1754944e-38, %v1823_v51 }
  0xe3   : > { %v1014_v6 = vsub.f32 0.0, %v7475_v0  ;;  %v1796_v10 = vmul.f32 %v1795_v45, %v7298_v60  ;;  %v1805_v12 = vsel %vm1804_vm13, %v6207_v34, %v1801_v2  ;;  %v1814_v13 = vsub.f32 1.0, %v1813_v3  ;;  %vm7509_vm15 = vmor %vm1817_vm11, %vm1818_vm14 }
  0xe4   : > { %v1015_v14 = vsub.f32 0.0, %v7492_v7  ;;  %v1810_v16 = vsel %vm7459_vm8, %v1809_v48, %v1805_v12  ;;  %v1022_v46 = vsub.f32 0.0, %v7482_v62  ;;  %v1023_v22 = vsub.f32 0.0, %v7484_v5 }
  0xe5   : > { %v6211_v15 = vpop.eup %6210  ;;  %v1196_v19 = vmul.f32 1.442695, %v1014_v6  ;;  %v7501_v25 = vadd.f32 %v1796_v10, %v7404_v20  ;;  %v1811_v26 = vmul.f32 %v1810_v16, %v7302_v63  ;;  %v1815_v60 = vmul.f32 %v6209_v29, %v1814_v13 }
  0xe6   : > { %v6213_v24 = vpop.eup %6212  ;;  %v7504_v43 = vadd.f32 1.0, %v6211_v15  ;;  %v1941_v17 = vand.u32 2147483647, %v7443_v21  ;;  %v1198_v20 = vmul.f32 1.442695, %v1015_v14  ;;  %v1943_v36 = vand.u32 2147483648, %v7443_v21 }
  0xe7   : > { %v6215_v27 = vpop.eup %6214  ;;  %v1933_v34 = vmul.f32 %v6213_v24, %v7443_v21  ;;  %6216 = vpow2.f32 %v1196_v19  ;;  %v7515_v35 = vadd.f32 %v1811_v26, %v1661_v40  ;;  %v1816_v63 = vadd.f32 %v6209_v29, %v1815_v60 }
  0xe8   : > { %6218 = vrcp.f32 %v7504_v43  ;;  %v1676_v37 = vmul.f32 %v1675_v58, %v7293_v57  ;;  %v7521_v23 = vmul.f32 %v1690_v61, %v7296_v59  ;;  %v7523_v28 = vadd.f32 1.0, %v6215_v27  ;;  %v7572_v14 = vpop.f32.mrf.mxu0 }
  0xe9   : > { %v1934_v38 = vsub.f32 1.0, %v1933_v34  ;;  %v1820_v39 = vsel %vm7509_vm15, %v6209_v29, %v1816_v63  ;;  %6220 = vpow2.f32 %v1198_v20  ;;  %v1212_v42 = vmul.f32 1.442695, %v1022_v46 }
  0xea   : > { %v1214_v40 = vmul.f32 1.442695, %v1023_v22  ;;  %v1825_v44 = vsel %vm7478_vm12, %v1824_v50, %v1820_v39  ;;  %vm1937_vm0 = vweird.f32 %v7443_v21  ;;  %vm1938_vm1 = vweird.f32 %v6213_v24  ;;  %v7579_v22 = vpop.f32.mrf.mxu1 }
  0xeb   : > { %v1935_v47 = vmul.f32 %v6213_v24, %v1934_v38  ;;  %5607 = vmatmul.msk.bf16.gmra.mxu0 %vm443_vm2, %v7203_v30  ;;  %v1826_v57 = vmul.f32 %v1825_v44, %v7308_v9  ;;  %vm7533_vm3 = vcmp.eq.f32.partialorder %v1941_v17, 8.507059e+37  ;;  %v1944_v49 = vor.u32 1.1754944e-38, %v1943_v36  ;;  %v7544_v9 = vpop.f32.mrf.mxu2  ;;  %vm1939_vm4 = vmor %vm1937_vm0, %vm1938_vm1 }
  0xec   : > { %6222 = vrcp.f32 %v7523_v28  ;;  %5615 = vmatmul.msk.bf16.gmra.mxu1 %vm443_vm2, %v7203_v30  ;;  %v1836_v53 = vand.u32 2147483647, %v7504_v43  ;;  %v1838_v54 = vand.u32 2147483648, %v7504_v43  ;;  %v1024_v29 = vsub.f32 0.0, %v7544_v9 }
  0xed   : > { %5623 = vmatmul.msk.bf16.gmra.mxu2 %vm443_vm2, %v7203_v30  ;;  %v6217_v52 = vpop.eup %6216  ;;  %v1936_v48 = vadd.f32 %v6213_v24, %v1935_v47  ;;  %6224 = vpow2.f32 %v1212_v42  ;;  %v7548_v55 = vadd.f32 %v1826_v57, %v1676_v37  ;;  %vm1832_vm5 = vweird.f32 %v7504_v43 }
  0xee   : > { %5631 = vmatmul.msk.bf16.gmra.mxu3 %vm443_vm2, %v7203_v30  ;;  %v6219_v51 = vpop.eup %6218  ;;  %v7553_v56 = vadd.f32 1.0, %v6217_v52  ;;  %6226 = vpow2.f32 %v1214_v40  ;;  %v1956_v1 = vand.u32 2147483647, %v7523_v28  ;;  %v1958_v21 = vand.u32 2147483648, %v7523_v28 }
  0xef   : > { %v1828_v58 = vmul.f32 %v6219_v51, %v7504_v43  ;;  %v1940_v61 = vsel %vm1939_vm4, %v6213_v24, %v1936_v48  ;;  %v6221_v30 = vpop.eup %6220  ;;  %vm1833_vm6 = vweird.f32 %v6219_v51  ;;  %vm7567_vm7 = vcmp.eq.f32.partialorder %v1836_v53, 8.507059e+37 }
  0xf0   : > { %v1945_v2 = vsel %vm7533_vm3, %v1944_v49, %v1940_v61  ;;  %6228 = vrcp.f32 %v7553_v56  ;;  %v1971_v45 = vand.u32 2147483647, %v7553_v56  ;;  %v7565_v50 = vadd.f32 1.0, %v6221_v30  ;;  %vm7584_vm9 = vmor %vm1832_vm5, %vm1833_vm6 }
  0xf1   : > { %v1829_v3 = vsub.f32 1.0, %v1828_v58  ;;  %v1946_v4 = vmul.f32 %v1945_v2, %v7311_v11  ;;  %v1839_v12 = vor.u32 1.1754944e-38, %v1838_v54  ;;  %vm1952_vm8 = vweird.f32 %v7523_v28  ;;  %v7624_v58 = vpop.f32.mrf.mxu3 }
  0xf2   : > { %v6223_v6 = vpop.eup %6222  ;;  %v1216_v13 = vmul.f32 1.442695, %v1024_v29  ;;  %v1973_v46 = vand.u32 2147483648, %v7553_v56  ;;  %vm7588_vm10 = vcmp.eq.f32.partialorder %v1956_v1, 8.507059e+37  ;;  %vm1967_vm11 = vweird.f32 %v7553_v56 }
  0xf3   : > { %v6225_v15 = vpop.eup %6224  ;;  %v1830_v16 = vmul.f32 %v6219_v51, %v1829_v3  ;;  %v7575_v19 = vadd.f32 %v7501_v25, %v1946_v4  ;;  %v1948_v11 = vmul.f32 %v6223_v6, %v7523_v28  ;;  %v1959_v25 = vor.u32 1.1754944e-38, %v1958_v21 }
  0xf4   : > { %v6227_v24 = vpop.eup %6226  ;;  %6230 = vrcp.f32 %v7565_v50  ;;  %vm7594_vm12 = vcmp.eq.f32.partialorder %v1971_v45, 8.507059e+37  ;;  %v7598_v43 = vadd.f32 1.0, %v6225_v15  ;;  %v1032_v17 = vsub.f32 0.0, %v7572_v14 }
  0xf5   : > { %v1831_v27 = vadd.f32 %v6219_v51, %v1830_v16  ;;  %v1949_v33 = vsub.f32 1.0, %v1948_v11  ;;  %vm1953_vm13 = vweird.f32 %v6223_v6  ;;  %v7601_v63 = vadd.f32 1.0, %v6227_v24 }
  0xf6   : > { %v6229_v20 = vpop.eup %6228  ;;  %6232 = vpow2.f32 %v1216_v13  ;;  %v1033_v36 = vsub.f32 0.0, %v7579_v22  ;;  %v1974_v42 = vor.u32 1.1754944e-38, %v1973_v46  ;;  %v1986_v44 = vand.u32 2147483647, %v7565_v50  ;;  %vm1954_vm15 = vmor %vm1952_vm8, %vm1953_vm13 }
  0xf7   : > { %v1835_v37 = vsel %vm7584_vm9, %v6219_v51, %v1831_v27  ;;  %v1950_v38 = vmul.f32 %v6223_v6, %v1949_v33  ;;  %v1963_v39 = vmul.f32 %v6229_v20, %v7553_v56  ;;  %v1988_v47 = vand.u32 2147483648, %v7565_v50 }
  0xf8   : > { %v1840_v40 = vsel %vm7567_vm7, %v1839_v12, %v1835_v37  ;;  %6234 = vrcp.f32 %v7598_v43  ;;  %vm1968_vm14 = vweird.f32 %v6229_v20  ;;  %vm1982_vm0 = vweird.f32 %v7565_v50 }
  0xf9   : > { %v1841_v57 = vmul.f32 %v1840_v40, %v7390_v8  ;;  %v1951_v59 = vadd.f32 %v6223_v6, %v1950_v38  ;;  %v1964_v49 = vsub.f32 1.0, %v1963_v39  ;;  %v2091_v53 = vand.u32 2147483647, %v7598_v43  ;;  %vm7633_vm1 = vmor %vm1967_vm11, %vm1968_vm14 }
  0xfa   : > { %v6231_v52 = vpop.eup %6230  ;;  %v2093_v54 = vand.u32 2147483648, %v7598_v43  ;;  %6236 = vrcp.f32 %v7601_v63  ;;  %vm7637_vm3 = vcmp.eq.f32.partialorder %v1986_v44, 8.507059e+37  ;;  %v1989_v30 = vor.u32 1.1754944e-38, %v1988_v47  ;;  %v7693_v47 = vpop.f32.mrf.mxu2 }
  0xfb   : > { %v7621_v48 = vadd.f32 %v1841_v57, %v7521_v23  ;;  %v1955_v8 = vsel %vm1954_vm15, %v6223_v6, %v1951_v59  ;;  %v1965_v51 = vmul.f32 %v6229_v20, %v1964_v49  ;;  %v1978_v29 = vmul.f32 %v6231_v52, %v7565_v50  ;;  %5608 = vmatmul.msk.bf16.gmra.mxu0 %vm443_vm2, %v7214_v31  ;;  %v7716_v23 = vpop.f32.mrf.mxu1 }
  0xfc   : > { %v6233_v28 = vpop.eup %6232  ;;  %v1960_v61 = vsel %vm7588_vm10, %v1959_v25, %v1955_v8  ;;  %v1025_v2 = vsub.f32 0.0, %v7624_v58  ;;  %5616 = vmatmul.msk.bf16.gmra.mxu1 %vm443_vm2, %v7214_v31  ;;  %vm1983_vm4 = vweird.f32 %v6231_v52  ;;  %vm2087_vm5 = vweird.f32 %v7598_v43 }
  0xfd   : > { %5624 = vmatmul.msk.bf16.gmra.mxu2 %vm443_vm2, %v7214_v31  ;;  %v1961_v21 = vmul.f32 %v1960_v61, %v7316_v18  ;;  %v1966_v56 = vadd.f32 %v6229_v20, %v1965_v51  ;;  %v1979_v3 = vsub.f32 1.0, %v1978_v29  ;;  %v2094_v45 = vor.u32 1.1754944e-38, %v2093_v54  ;;  %vm7670_vm8 = vmor %vm1982_vm0, %vm1983_vm4  ;;  %v7712_v29 = vpop.f32.mrf.mxu3 }
  0xfe   : > { %5632 = vmatmul.msk.bf16.gmra.mxu3 %vm443_vm2, %v7214_v31  ;;  %v6235_v4 = vpop.eup %6234  ;;  %v2106_v6 = vand.u32 2147483647, %v7601_v63  ;;  %v2108_v10 = vand.u32 2147483648, %v7601_v63  ;;  %v7652_v12 = vadd.f32 1.0, %v6233_v28  ;;  %vm7660_vm6 = vcmp.eq.f32.partialorder %v2091_v53, 8.507059e+37 }
  0xff   : > { %v7655_v13 = vadd.f32 %v7515_v35, %v1961_v21  ;;  %v1970_v18 = vsel %vm7633_vm1, %v6229_v20, %v1966_v56  ;;  %v1980_v15 = vmul.f32 %v6231_v52, %v1979_v3  ;;  %v2083_v16 = vmul.f32 %v6235_v4, %v7598_v43 }
 0x100   : > { %vm2102_vm7 = vweird.f32 %v7601_v63  ;;  %v6237_v31 = vpop.eup %6236  ;;  %v1975_v46 = vsel %vm7594_vm12, %v1974_v42, %v1970_v18  ;;  %6238 = vrcp.f32 %v7652_v12  ;;  %v1218_v24 = vmul.f32 1.442695, %v1025_v2 }
 0x101   : > { %v1232_v26 = vmul.f32 1.442695, %v1032_v17  ;;  %v1976_v60 = vmul.f32 %v1975_v46, %v7475_v0  ;;  %v1981_v25 = vadd.f32 %v6231_v52, %v1980_v15  ;;  %v2084_v27 = vsub.f32 1.0, %v2083_v16  ;;  %v7686_v0 = vpop.f32.mrf.mxu0 }
 0x102   : > { %v2098_v33 = vmul.f32 %v6237_v31, %v7601_v63  ;;  %vm2088_vm9 = vweird.f32 %v6235_v4  ;;  %vm2103_vm10 = vweird.f32 %v6237_v31  ;;  %vm7677_vm11 = vcmp.eq.f32.partialorder %v2106_v6, 8.507059e+37 }
 0x103   : > { %v2109_v50 = vor.u32 1.1754944e-38, %v2108_v10  ;;  %v7682_v20 = vadd.f32 %v7548_v55, %v1976_v60  ;;  %v1985_v37 = vsel %vm7670_vm8, %v6231_v52, %v1981_v25  ;;  %v2085_v17 = vmul.f32 %v6235_v4, %v2084_v27  ;;  %vm2089_vm13 = vmor %vm2087_vm5, %vm2088_vm9 }
 0x104   : > { %v2099_v38 = vsub.f32 1.0, %v2098_v33  ;;  %v1990_v39 = vsel %vm7637_vm3, %v1989_v30, %v1985_v37  ;;  %vm2117_vm12 = vweird.f32 %v7652_v12  ;;  %v2121_v42 = vand.u32 2147483647, %v7652_v12  ;;  %vm2104_vm14 = vmor %vm2102_vm7, %vm2103_vm10 }
 0x105   : > { %6240 = vpow2.f32 %v1218_v24  ;;  %v1991_v40 = vmul.f32 %v1990_v39, %v7492_v7  ;;  %v2086_v44 = vadd.f32 %v6235_v4, %v2085_v17  ;;  %v2123_v59 = vand.u32 2147483648, %v7652_v12 }
 0x106   : > { %v2100_v55 = vmul.f32 %v6237_v31, %v2099_v38  ;;  %6242 = vpow2.f32 %v1232_v26  ;;  %v6239_v57 = vpop.eup %6238  ;;  %v1234_v49 = vmul.f32 1.442695, %v1033_v36  ;;  %v1034_v52 = vsub.f32 0.0, %v7693_v47 }
 0x107   : > { %v1042_v53 = vsub.f32 0.0, %v7686_v0  ;;  %v7704_v7 = vadd.f32 %v7621_v48, %v1991_v40  ;;  %v2090_v54 = vsel %vm2089_vm13, %v6235_v4, %v2086_v44  ;;  %v2113_v51 = vmul.f32 %v6239_v57, %v7652_v12 }
 0x108   : > { %v2101_v8 = vadd.f32 %v6237_v31, %v2100_v55  ;;  %v2095_v43 = vsel %vm7660_vm6, %v2094_v45, %v2090_v54  ;;  %vm2118_vm15 = vweird.f32 %v6239_v57  ;;  %6244 = vpow2.f32 %v1234_v49 }
 0x109   : > { %v1236_v36 = vmul.f32 1.442695, %v1034_v52  ;;  %v2096_v28 = vmul.f32 %v2095_v43, %v7482_v62  ;;  %v2114_v61 = vsub.f32 1.0, %v2113_v51  ;;  %v1035_v1 = vsub.f32 0.0, %v7712_v29  ;;  %vm7731_vm0 = vmor %vm2117_vm12, %vm2118_vm15 }
 0x10a   : > { %v2105_v48 = vsel %vm2104_vm14, %v6237_v31, %v2101_v8  ;;  %v2124_v21 = vor.u32 1.1754944e-38, %v2123_v59  ;;  %v1252_v63 = vmul.f32 1.442695, %v1042_v53  ;;  %vm2122_vm1 = vcmp.eq.f32.partialorder %v2121_v42, 8.507059e+37 }
 0x10b   : > { %v6241_v30 = vpop.eup %6240  ;;  %v2110_v2 = vsel %vm7677_vm11, %v2109_v50, %v2105_v48  ;;  %6246 = vpow2.f32 %v1236_v36  ;;  %v7721_v3 = vadd.f32 %v7575_v19, %v2096_v28  ;;  %v2115_v62 = vmul.f32 %v6239_v57, %v2114_v61  ;;  %5609 = vmatmul.msk.bf16.gmra.mxu0 %vm443_vm2, %v7225_v32 }
 0x10c   : > { %v6243_v56 = vpop.eup %6242  ;;  %v2111_v4 = vmul.f32 %v2110_v2, %v7484_v5  ;;  %v7724_v45 = vadd.f32 1.0, %v6241_v30  ;;  %v1238_v18 = vmul.f32 1.442695, %v1035_v1  ;;  %6248 = vpow2.f32 %v1252_v63  ;;  %5617 = vmatmul.msk.bf16.gmra.mxu1 %vm443_vm2, %v7225_v32  ;;  %v7797_v1 = vpop.f32.mrf.mxu2 }
 0x10d   : > { %v7735_v10 = vadd.f32 1.0, %v6243_v56  ;;  %v1043_v19 = vsub.f32 0.0, %v7716_v23  ;;  %5625 = vmatmul.msk.bf16.gmra.mxu2 %vm443_vm2, %v7225_v32  ;;  %v2116_v12 = vadd.f32 %v6239_v57, %v2115_v62  ;;  %v7809_v63 = vpop.f32.mrf.mxu1 }
 0x10e   : > { %v7743_v5 = vadd.f32 %v7655_v13, %v2111_v4  ;;  %6250 = vrcp.f32 %v7724_v45  ;;  %5633 = vmatmul.msk.bf16.gmra.mxu3 %vm443_vm2, %v7225_v32  ;;  %v6245_v15 = vpop.eup %6244  ;;  %v2136_v11 = vand.u32 2147483647, %v7724_v45  ;;  %v2138_v31 = vand.u32 2147483648, %v7724_v45  ;;  %v7755_v13 = vpop.f32.mrf.mxu0 }
 0x10f   : > { %6252 = vrcp.f32 %v7735_v10  ;;  %v2120_v16 = vsel %vm7731_vm0, %v6239_v57, %v2116_v12  ;;  %v7753_v46 = vadd.f32 1.0, %v6245_v15  ;;  %v1254_v26 = vmul.f32 1.442695, %v1043_v19 }
 0x110   : > { %v2125_v24 = vsel %vm2122_vm1, %v2124_v21, %v2120_v16  ;;  %6254 = vpow2.f32 %v1238_v18  ;;  %v2241_v60 = vand.u32 2147483647, %v7735_v10  ;;  %v2243_v25 = vand.u32 2147483648, %v7735_v10  ;;  %v7807_v21 = vpop.f32.mrf.mxu3 }
 0x111   : > { %v6247_v35 = vpop.eup %6246  ;;  %v2126_v32 = vmul.f32 %v2125_v24, %v7544_v9  ;;  %6256 = vrcp.f32 %v7753_v46  ;;  %vm2132_vm3 = vweird.f32 %v7724_v45  ;;  %v1052_v34 = vsub.f32 0.0, %v7755_v13 }
 0x112   : > { %v6249_v27 = vpop.eup %6248  ;;  %v7762_v33 = vadd.f32 1.0, %v6247_v35  ;;  %vm7768_vm4 = vcmp.eq.f32.partialorder %v2136_v11, 8.507059e+37  ;;  %v2139_v9 = vor.u32 1.1754944e-38, %v2138_v31  ;;  %vm2237_vm5 = vweird.f32 %v7735_v10 }
 0x113   : > { %v7766_v37 = vadd.f32 %v7682_v20, %v2126_v32  ;;  %v7773_v38 = vadd.f32 1.0, %v6249_v27  ;;  %v2256_v40 = vand.u32 2147483647, %v7753_v46  ;;  %v2258_v44 = vand.u32 2147483648, %v7753_v46 }
 0x114   : > { %v6251_v50 = vpop.eup %6250  ;;  %6258 = vpow2.f32 %v1254_v26  ;;  %vm7779_vm6 = vcmp.eq.f32.partialorder %v2241_v60, 8.507059e+37  ;;  %v2244_v57 = vor.u32 1.1754944e-38, %v2243_v25  ;;  %vm2252_vm8 = vweird.f32 %v7753_v46 }
 0x115   : > { %v6253_v39 = vpop.eup %6252  ;;  %v2128_v42 = vmul.f32 %v6251_v50, %v7724_v45  ;;  %6260 = vrcp.f32 %v7762_v33  ;;  %vm2133_vm7 = vweird.f32 %v6251_v50  ;;  %v7786_v52 = vmul.f32 1.442695, %v1052_v34 }
 0x116   : > { %v2233_v20 = vmul.f32 %v6253_v39, %v7735_v10  ;;  %v6255_v59 = vpop.eup %6254  ;;  %6262 = vrcp.f32 %v7773_v38  ;;  %v2271_v8 = vand.u32 2147483647, %v7762_v33  ;;  %v2273_v51 = vand.u32 2147483648, %v7762_v33  ;;  %vm7801_vm10 = vmor %vm2132_vm3, %vm2133_vm7 }
 0x117   : > { %v2129_v49 = vsub.f32 1.0, %v2128_v42  ;;  %v6257_v53 = vpop.eup %6256  ;;  %v7790_v43 = vadd.f32 1.0, %v6255_v59  ;;  %vm7793_vm9 = vcmp.eq.f32.partialorder %v2256_v40, 8.507059e+37  ;;  %v2259_v61 = vor.u32 1.1754944e-38, %v2258_v44  ;;  %v7852_v44 = vpop.f32.mrf.mxu0 }
 0x118   : > { %v2234_v54 = vsub.f32 1.0, %v2233_v20  ;;  %v2248_v28 = vmul.f32 %v6257_v53, %v7753_v46  ;;  %vm2238_vm11 = vweird.f32 %v6253_v39  ;;  %vm2267_vm12 = vweird.f32 %v7762_v33 }
 0x119   : > { %v2130_v36 = vmul.f32 %v6251_v50, %v2129_v49  ;;  %6264 = vrcp.f32 %v7790_v43  ;;  %vm2253_vm13 = vweird.f32 %v6257_v53  ;;  %v2391_v45 = vand.u32 2147483647, %v7773_v38  ;;  %vm2239_vm0 = vmor %vm2237_vm5, %vm2238_vm11  ;;  %v7866_v49 = vpop.f32.mrf.mxu2 }
 0x11a   : > { %v2235_v2 = vmul.f32 %v6253_v39, %v2234_v54  ;;  %v6259_v56 = vpop.eup %6258  ;;  %v2249_v62 = vsub.f32 1.0, %v2248_v28  ;;  %vm7812_vm14 = vcmp.eq.f32.partialorder %v2271_v8, 8.507059e+37  ;;  %v2274_v12 = vor.u32 1.1754944e-38, %v2273_v51  ;;  %v7878_v54 = vpop.f32.mrf.mxu3 }
 0x11b   : > { %v2131_v4 = vadd.f32 %v6251_v50, %v2130_v36  ;;  %v6261_v6 = vpop.eup %6260  ;;  %vm2282_vm15 = vweird.f32 %v7790_v43  ;;  %5610 = vmatmul.msk.bf16.gmra.mxu0 %vm443_vm2, %v7250_v41  ;;  %v2286_v35 = vand.u32 2147483647, %v7790_v43  ;;  %vm2387_vm3 = vweird.f32 %v7773_v38 }
 0x11c   : > { %v2236_v18 = vadd.f32 %v6253_v39, %v2235_v2  ;;  %v7819_v15 = vpop.eup %6262  ;;  %v2250_v11 = vmul.f32 %v6257_v53, %v2249_v62  ;;  %v2263_v31 = vmul.f32 %v6261_v6, %v7762_v33  ;;  %5618 = vmatmul.msk.bf16.gmra.mxu1 %vm443_vm2, %v7250_v41  ;;  %vm2268_vm1 = vweird.f32 %v6261_v6 }
 0x11d   : > { %v2135_v16 = vsel %vm7801_vm10, %v6251_v50, %v2131_v4  ;;  %5626 = vmatmul.msk.bf16.gmra.mxu2 %vm443_vm2, %v7250_v41  ;;  %v7835_v10 = vadd.f32 1.0, %v6259_v56  ;;  %v2288_v17 = vand.u32 2147483648, %v7790_v43  ;;  %vm7860_vm5 = vmor %vm2267_vm12, %vm2268_vm1  ;;  %vm7868_vm7 = vcmp.eq.f32.partialorder %v2286_v35, 8.507059e+37 }
 0x11e   : > { %v2140_v24 = vsel %vm7768_vm4, %v2139_v9, %v2135_v16  ;;  %v2240_v26 = vsel %vm2239_vm0, %v6253_v39, %v2236_v18  ;;  %5634 = vmatmul.msk.bf16.gmra.mxu3 %vm443_vm2, %v7250_v41  ;;  %v2251_v25 = vadd.f32 %v6257_v53, %v2250_v11  ;;  %v2264_v27 = vsub.f32 1.0, %v2263_v31  ;;  %vm2254_vm4 = vmor %vm2252_vm8, %vm2253_vm13 }
 0x11f   : > { %v2141_v32 = vmul.f32 %v2140_v24, %v7624_v58  ;;  %v2245_v60 = vsel %vm7779_vm6, %v2244_v57, %v2240_v26  ;;  %v6265_v34 = vpop.eup %6264  ;;  %v2383_v9 = vmul.f32 %v7819_v15, %v7773_v38  ;;  %v2393_v41 = vand.u32 2147483648, %v7773_v38  ;;  %v7921_v24 = vpop.f32.mrf.mxu0 }
 0x120   : > { %v2246_v50 = vmul.f32 %v2245_v60, %v7572_v14  ;;  %v2255_v39 = vsel %vm2254_vm4, %v6257_v53, %v2251_v25  ;;  %v2265_v42 = vmul.f32 %v6261_v6, %v2264_v27  ;;  %v2278_v40 = vmul.f32 %v6265_v34, %v7790_v43  ;;  %v6824_v25 = vld [vmem:[%s7143_s3 + $0x38] sm:$0xff] }
 0x121   : > { %v4073_v58 = vadd.f32 %v7704_v7, %v2141_v32  ;;  %v2260_v46 = vsel %vm7793_vm9, %v2259_v61, %v2255_v39  ;;  %vm2283_vm6 = vweird.f32 %v6265_v34  ;;  %v2384_v7 = vsub.f32 1.0, %v2383_v9 }
 0x122   : > { %v4035_v14 = vadd.f32 %v7721_v3, %v2246_v50  ;;  %v2261_v55 = vmul.f32 %v2260_v46, %v7579_v22  ;;  %v2266_v57 = vadd.f32 %v6261_v6, %v2265_v42  ;;  %v2279_v59 = vsub.f32 1.0, %v2278_v40  ;;  %v7880_v22 = vpop.f32.mrf.mxu1  ;;  %vm7893_vm10 = vmor %vm2282_vm15, %vm2283_vm6 }
 0x123   : > { %6266 = vrcp.f32 %v7835_v10  ;;  %v2385_v33 = vmul.f32 %v7819_v15, %v2384_v7  ;;  %vm2388_vm8 = vweird.f32 %v7819_v15  ;;  %vm7874_vm9 = vcmp.eq.f32.partialorder %v2391_v45, 8.507059e+37 }
 0x124   : > { %v7883_v8 = vadd.f32 %v7743_v5, %v2261_v55  ;;  %v2270_v51 = vsel %vm7860_vm5, %v6261_v6, %v2266_v57  ;;  %v2280_v36 = vmul.f32 %v6265_v34, %v2279_v59  ;;  %v1044_v28 = vsub.f32 0.0, %v7797_v1  ;;  %vm2389_vm11 = vmor %vm2387_vm3, %vm2388_vm8 }
 0x125   : > { %v2275_v48 = vsel %vm7812_vm14, %v2274_v12, %v2270_v51  ;;  %v2289_v30 = vor.u32 1.1754944e-38, %v2288_v17  ;;  %v2386_v5 = vadd.f32 %v7819_v15, %v2385_v33  ;;  %v2394_v2 = vor.u32 1.1754944e-38, %v2393_v41  ;;  %v7935_v41 = vpop.f32.mrf.mxu3 }
 0x126   : > { %v2276_v56 = vmul.f32 %v2275_v48, %v7693_v47  ;;  %v2281_v4 = vadd.f32 %v6265_v34, %v2280_v36  ;;  %v1256_v62 = vmul.f32 1.442695, %v1044_v28  ;;  %v1045_v45 = vsub.f32 0.0, %v7807_v21 }
 0x127   : > { %v2390_v43 = vsel %vm2389_vm11, %v7819_v15, %v2386_v5  ;;  %6268 = vpow2.f32 %v7786_v52  ;;  %v1053_v6 = vsub.f32 0.0, %v7809_v63  ;;  %v1062_v18 = vsub.f32 0.0, %v7852_v44 }
 0x128   : > { %v7909_v47 = vadd.f32 %v7766_v37, %v2276_v56  ;;  %v2285_v38 = vsel %vm7893_vm10, %v6265_v34, %v2281_v4  ;;  %v2395_v12 = vsel %vm7874_vm9, %v2394_v2, %v2390_v43  ;;  %6270 = vpow2.f32 %v1256_v62  ;;  %v7962_v62 = vpop.f32.mrf.mxu0 }
 0x129   : > { %v6267_v19 = vpop.eup %6266  ;;  %v2290_v15 = vsel %vm7868_vm7, %v2289_v30, %v2285_v38  ;;  %v2396_v52 = vmul.f32 %v2395_v12, %v7686_v0  ;;  %v1258_v31 = vmul.f32 1.442695, %v1045_v45  ;;  %v1274_v35 = vmul.f32 1.442695, %v1053_v6 }
 0x12a   : > { %v2398_v16 = vmul.f32 %v6267_v19, %v7835_v10  ;;  %v2291_v11 = vmul.f32 %v2290_v15, %v7712_v29  ;;  %v1054_v37 = vsub.f32 0.0, %v7866_v49  ;;  %v1292_v60 = vmul.f32 1.442695, %v1062_v18  ;;  %v7930_v29 = vpop.f32.mrf.mxu2 }
 0x12b   : > { %v7923_v26 = vadd.f32 %v4035_v14, %v2396_v52  ;;  %5611 = vmatmul.msk.bf16.gmra.mxu0 %vm443_vm2, %v6824_v25  ;;  %v2408_v0 = vand.u32 2147483648, %v7835_v10  ;;  %6272 = vpow2.f32 %v1258_v31  ;;  %vm2403_vm12 = vweird.f32 %v6267_v19 }
 0x12c   : > { %v2399_v32 = vsub.f32 1.0, %v2398_v16  ;;  %v7927_v27 = vadd.f32 %v4073_v58, %v2291_v11  ;;  %v1276_v34 = vmul.f32 1.442695, %v1054_v37  ;;  %5619 = vmatmul.msk.bf16.gmra.mxu1 %vm443_vm2, %v6824_v25  ;;  %v2406_v9 = vand.u32 2147483647, %v7835_v10  ;;  %v7937_v58 = vpop.f32.mrf.mxu1 }
 0x12d   : > { %5627 = vmatmul.msk.bf16.gmra.mxu2 %vm443_vm2, %v6824_v25  ;;  %v6269_v50 = vpop.eup %6268  ;;  %6274 = vpow2.f32 %v1274_v35  ;;  %v1063_v40 = vsub.f32 0.0, %v7880_v22  ;;  %vm2402_vm13 = vweird.f32 %v7835_v10  ;;  %v2409_v20 = vor.u32 1.1754944e-38, %v2408_v0 }
 0x12e   : > { %v2400_v17 = vmul.f32 %v6267_v19, %v2399_v32  ;;  %5635 = vmatmul.msk.bf16.gmra.mxu3 %vm443_vm2, %v6824_v25  ;;  %v6271_v39 = vpop.eup %6270  ;;  %v7940_v42 = vadd.f32 1.0, %v6269_v50  ;;  %6276 = vpow2.f32 %v1276_v34  ;;  %vm2404_vm14 = vmor %vm2402_vm13, %vm2403_vm12  ;;  %v1072_v7 = vsub.f32 0.0, %v7921_v24 }
 0x12f   : > { %v7944_v46 = vadd.f32 1.0, %v6271_v39  ;;  %6278 = vpow2.f32 %v1292_v60  ;;  %v1073_v55 = vsub.f32 0.0, %v7937_v58  ;;  %vm2407_vm15 = vcmp.eq.f32.partialorder %v2406_v9, 8.507059e+37 }
 0x130   : > { %v2401_v14 = vadd.f32 %v6267_v19, %v2400_v17  ;;  %6280 = vrcp.f32 %v7940_v42  ;;  %v1055_v59 = vsub.f32 0.0, %v7878_v54  ;;  %v2543_v53 = vand.u32 2147483648, %v7940_v42  ;;  %v6825_v17 = vld [vmem:[%s7143_s3] sm:$0xff] }
 0x131   : > { %6282 = vrcp.f32 %v7944_v46  ;;  %v6273_v3 = vpop.eup %6272  ;;  %v2421_v10 = vand.u32 2147483647, %v7944_v46  ;;  %v1294_v51 = vmul.f32 1.442695, %v1063_v40  ;;  %v2423_v48 = vand.u32 2147483648, %v7944_v46 }
 0x132   : > { %v2405_v57 = vsel %vm2404_vm14, %v6267_v19, %v2401_v14  ;;  %v7955_v61 = vadd.f32 1.0, %v6273_v3  ;;  %v2541_v30 = vand.u32 2147483647, %v7940_v42  ;;  %v1312_v56 = vmul.f32 1.442695, %v1072_v7 }
 0x133   : > { %v2410_v33 = vsel %vm2407_vm15, %v2409_v20, %v2405_v57  ;;  %v6275_v36 = vpop.eup %6274  ;;  %v7960_v4 = vmul.f32 1.442695, %v1073_v55  ;;  %vm2537_vm0 = vweird.f32 %v7940_v42  ;;  %vm2417_vm1 = vweird.f32 %v7944_v46 }
 0x134   : > { %v2411_v28 = vmul.f32 %v2410_v33, %v7716_v23  ;;  %v6277_v5 = vpop.eup %6276  ;;  %v7958_v2 = vadd.f32 1.0, %v6275_v36  ;;  %6284 = vrcp.f32 %v7955_v61  ;;  %v1278_v23 = vmul.f32 1.442695, %v1055_v59  ;;  %v8000_v7 = vpop.f32.mrf.mxu1 }
 0x135   : > { %v6279_v45 = vpop.eup %6278  ;;  %vm7970_vm3 = vcmp.eq.f32.partialorder %v2421_v10, 8.507059e+37  ;;  %v2544_v19 = vor.u32 1.1754944e-38, %v2543_v53  ;;  %v2424_v12 = vor.u32 1.1754944e-38, %v2423_v48  ;;  %vm7976_vm4 = vcmp.eq.f32.partialorder %v2541_v30, 8.507059e+37 }
 0x136   : > { %v7965_v43 = vadd.f32 %v7883_v8, %v2411_v28  ;;  %v6281_v6 = vpop.eup %6280  ;;  %6286 = vrcp.f32 %v7958_v2  ;;  %v1082_v52 = vsub.f32 0.0, %v7962_v62  ;;  %v2436_v11 = vand.u32 2147483647, %v7955_v61 }
 0x137   : > { %v6283_v38 = vpop.eup %6282  ;;  %v2533_v8 = vmul.f32 %v6281_v6, %v7940_v42  ;;  %6288 = vpow2.f32 %v1294_v51  ;;  %v2438_v31 = vand.u32 2147483648, %v7955_v61  ;;  %v2556_v35 = vand.u32 2147483647, %v7958_v2 }
 0x138   : > { %v2413_v16 = vmul.f32 %v6283_v38, %v7944_v46  ;;  %v2558_v32 = vand.u32 2147483648, %v7958_v2  ;;  %v7986_v60 = vadd.f32 1.0, %v6277_v5  ;;  %6290 = vpow2.f32 %v1278_v23  ;;  %v4312_v5 = vld [vmem:[%s7109_s23] sm:$0xff] }
 0x139   : > { %v2534_v37 = vsub.f32 1.0, %v2533_v8  ;;  %vm2418_vm5 = vweird.f32 %v6283_v38  ;;  %vm2432_vm6 = vweird.f32 %v7955_v61  ;;  %v7989_v0 = vadd.f32 1.0, %v6279_v45  ;;  %4318 = vst [vmem:[#allocation1] ss:$4 sm:$0xff] %v4312_v5 }
 0x13a   : > { %v2414_v25 = vsub.f32 1.0, %v2413_v16  ;;  %v6285_v34 = vpop.eup %6284  ;;  %vm2538_vm7 = vweird.f32 %v6281_v6  ;;  %vm2552_vm8 = vweird.f32 %v7958_v2  ;;  %6292 = vrcp.f32 %v7986_v60  ;;  %vm8006_vm10 = vmor %vm2417_vm1, %vm2418_vm5 }
 0x13b   : > { %v2535_v50 = vmul.f32 %v6281_v6, %v2534_v37  ;;  %5636 = vmatmul.msk.bf16.vlgmr.msra.gmra.mxu0 %vm443_vm2, %v6825_v17  ;;  %v2428_v40 = vmul.f32 %v6285_v34, %v7955_v61  ;;  %vm7996_vm9 = vcmp.eq.f32.partialorder %v2436_v11, 8.507059e+37  ;;  %v2439_v20 = vor.u32 1.1754944e-38, %v2438_v31  ;;  %vm2539_vm13 = vmor %vm2537_vm0, %vm2538_vm7 }
 0x13c   : > { %v6287_v9 = vpop.eup %6286  ;;  %v2415_v39 = vmul.f32 %v6283_v38, %v2414_v25  ;;  %5644 = vmatmul.msk.bf16.vlgmr.msra.gmra.mxu1 %vm443_vm2, %v6825_v17  ;;  %vm8011_vm11 = vcmp.eq.f32.partialorder %v2556_v35, 8.507059e+37  ;;  %v2559_v10 = vor.u32 1.1754944e-38, %v2558_v32  ;;  %6294 = vpow2.f32 %v1312_v56 }
 0x13d   : > { %v6289_v55 = vpop.eup %6288  ;;  %v2536_v59 = vadd.f32 %v6281_v6, %v2535_v50  ;;  %v2548_v3 = vmul.f32 %v6287_v9, %v7958_v2  ;;  %v2429_v51 = vsub.f32 1.0, %v2428_v40  ;;  %vm2433_vm12 = vweird.f32 %v6285_v34 }
 0x13e   : > { %v2416_v53 = vadd.f32 %v6283_v38, %v2415_v39  ;;  %6296 = vrcp.f32 %v7989_v0  ;;  %v6291_v46 = vpop.eup %6290  ;;  %v2571_v48 = vand.u32 2147483647, %v7986_v60  ;;  %v2573_v30 = vand.u32 2147483648, %v7986_v60  ;;  %vm8033_vm14 = vmor %vm2432_vm6, %vm2433_vm12 }
 0x13f   : > { %v2540_v36 = vsel %vm2539_vm13, %v6281_v6, %v2536_v59  ;;  %v2549_v28 = vsub.f32 1.0, %v2548_v3  ;;  %v2430_v45 = vmul.f32 %v6285_v34, %v2429_v51  ;;  %v8026_v8 = vadd.f32 1.0, %v6291_v46 }
 0x140   : > { %v2420_v56 = vsel %vm8006_vm10, %v6283_v38, %v2416_v53  ;;  %v2545_v23 = vsel %vm7976_vm4, %v2544_v19, %v2540_v36  ;;  %v6293_v42 = vpop.eup %6292  ;;  %vm2553_vm15 = vweird.f32 %v6287_v9  ;;  %vm2567_vm0 = vweird.f32 %v7986_v60 }
 0x141   : > { %v2425_v6 = vsel %vm7970_vm3, %v2424_v12, %v2420_v56  ;;  %v2546_v38 = vmul.f32 %v2545_v23, %v7755_v13  ;;  %v2550_v11 = vmul.f32 %v6287_v9, %v2549_v28  ;;  %v2431_v15 = vadd.f32 %v6285_v34, %v2430_v45  ;;  %vm2554_vm3 = vmor %vm2552_vm8, %vm2553_vm15 }
 0x142   : > { %v2426_v19 = vmul.f32 %v2425_v6, %v7797_v1  ;;  %v2563_v31 = vmul.f32 %v6293_v42, %v7986_v60  ;;  %v6295_v18 = vpop.eup %6294  ;;  %vm8042_vm1 = vcmp.eq.f32.partialorder %v2571_v48, 8.507059e+37  ;;  %6298 = vrcp.f32 %v8026_v8 }
 0x143   : > { %v4037_v12 = vadd.f32 %v7923_v26, %v2546_v38  ;;  %v2551_v35 = vadd.f32 %v6287_v9, %v2550_v11  ;;  %v2435_v1 = vsel %vm8033_vm14, %v6285_v34, %v2431_v15  ;;  %vm2568_vm4 = vweird.f32 %v6293_v42 }
 0x144   : > { %v6297_v13 = vpop.eup %6296  ;;  %v4062_v37 = vadd.f32 %v7909_v47, %v2426_v19  ;;  %v2564_v32 = vsub.f32 1.0, %v2563_v31  ;;  %v2440_v26 = vsel %vm7996_vm9, %v2439_v20, %v2435_v1  ;;  %v2574_v50 = vor.u32 1.1754944e-38, %v2573_v30  ;;  %vm8062_vm6 = vmor %vm2567_vm0, %vm2568_vm4 }
 0x145   : > { %v2555_v25 = vsel %vm2554_vm3, %v6287_v9, %v2551_v35  ;;  %v2683_v17 = vmul.f32 %v6297_v13, %v7989_v0  ;;  %v2441_v39 = vmul.f32 %v2440_v26, %v7807_v21  ;;  %vm2687_vm5 = vweird.f32 %v7989_v0 }
 0x146   : > { %v2560_v47 = vsel %vm8011_vm11, %v2559_v10, %v2555_v25  ;;  %v2565_v40 = vmul.f32 %v6293_v42, %v2564_v32  ;;  %vm2582_vm7 = vweird.f32 %v8026_v8  ;;  %v2691_v14 = vand.u32 2147483647, %v7989_v0 }
 0x147   : > { %v2561_v2 = vmul.f32 %v2560_v47, %v7809_v63  ;;  %v2684_v9 = vsub.f32 1.0, %v2683_v17  ;;  %v4075_v21 = vadd.f32 %v7927_v27, %v2441_v39  ;;  %v2693_v57 = vand.u32 2147483648, %v7989_v0 }
 0x148   : > { %v2566_v20 = vadd.f32 %v6293_v42, %v2565_v40  ;;  %v8070_v59 = vadd.f32 1.0, %v6289_v55  ;;  %v6299_v3 = vpop.eup %6298  ;;  %vm2688_vm8 = vweird.f32 %v6297_v13  ;;  %v1064_v33 = vsub.f32 0.0, %v7930_v29 }
 0x149   : > { %v8073_v63 = vadd.f32 %v7965_v43, %v2561_v2  ;;  %v2685_v60 = vmul.f32 %v6297_v13, %v2684_v9  ;;  %v2578_v53 = vmul.f32 %v6299_v3, %v8026_v8  ;;  %v2586_v27 = vand.u32 2147483647, %v8026_v8  ;;  %vm2689_vm10 = vmor %vm2687_vm5, %vm2688_vm8 }
 0x14a   : > { %v2570_v10 = vsel %vm8062_vm6, %v6293_v42, %v2566_v20  ;;  %v2588_v51 = vand.u32 2147483648, %v8026_v8  ;;  %6300 = vrcp.f32 %v8070_v59  ;;  %v1065_v43 = vsub.f32 0.0, %v7935_v41 }
 0x14b   : > { %v2575_v55 = vsel %vm8042_vm1, %v2574_v50, %v2570_v10  ;;  %v2686_v46 = vadd.f32 %v6297_v13, %v2685_v60  ;;  %v2579_v28 = vsub.f32 1.0, %v2578_v53  ;;  %vm2583_vm9 = vweird.f32 %v6299_v3 }
 0x14c   : > { %v2576_v36 = vmul.f32 %v2575_v55, %v7866_v49  ;;  %v2694_v48 = vor.u32 1.1754944e-38, %v2693_v57  ;;  %vm2692_vm11 = vcmp.eq.f32.partialorder %v2691_v14, 8.507059e+37  ;;  %v1296_v5 = vmul.f32 1.442695, %v1064_v33  ;;  %vm2584_vm12 = vmor %vm2582_vm7, %vm2583_vm9  ;;  %v8133_v55 = vpop.f32.mrf.mxu0 }
 0x14d   : > { %v2690_v30 = vsel %vm2689_vm10, %v6297_v13, %v2686_v46  ;;  %6302 = vpow2.f32 %v7960_v4  ;;  %v2580_v45 = vmul.f32 %v6299_v3, %v2579_v28  ;;  %v2589_v23 = vor.u32 1.1754944e-38, %v2588_v51  ;;  %v8131_v51 = vld.sshfl [vmem:[#allocation1 + $0x10] sm:$0xff pattern:$0x73625140] }
 0x14e   : > { %v8089_v56 = vadd.f32 %v4062_v37, %v2576_v36  ;;  %v2695_v42 = vsel %vm2692_vm11, %v2694_v48, %v2690_v30  ;;  %6304 = vpow2.f32 %v1296_v5  ;;  %v1298_v6 = vmul.f32 1.442695, %v1065_v43  ;;  %v4314_v36 = vld [vmem:[%s7109_s23 + $0x10] sm:$0xf]  ;;  %v8143_v30 = vpop.f32.mrf.mxu2 }
 0x14f   : > { %v2696_v49 = vmul.f32 %v2695_v42, %v7852_v44  ;;  %v8094_v0 = vadd.f32 1.0, %v6295_v18  ;;  %v2581_v16 = vadd.f32 %v6299_v3, %v2580_v45  ;;  %vm2587_vm13 = vcmp.eq.f32.partialorder %v2586_v27, 8.507059e+37  ;;  %v8140_v28 = vld.sshfl [vmem:[#allocation1 + $0x18] sm:$0xff pattern:$0x73625140]  ;;  %v8146_v42 = vpop.f32.mrf.mxu3 }
 0x150   : > { %v6301_v38 = vpop.eup %6300  ;;  %6306 = vpow2.f32 %v1298_v6  ;;  %v1332_v44 = vmul.f32 1.442695, %v1082_v52  ;;  %v2706_v37 = vand.u32 2147483647, %v8070_v59  ;;  %vm2702_vm15 = vweird.f32 %v8070_v59 }
 0x151   : > { %v4038_v11 = vadd.f32 %v4037_v12, %v2696_v49  ;;  %v2585_v4 = vsel %vm2584_vm12, %v6299_v3, %v2581_v16  ;;  %v2698_v19 = vmul.f32 %v6301_v38, %v8070_v59  ;;  %6308 = vrcp.f32 %v8094_v0  ;;  %v8124_v3 = vld.sshfl [vmem:[#allocation1 + $0x8] sm:$0xff pattern:$0x73625140] }
 0x152   : > { %v2590_v31 = vsel %vm2587_vm13, %v2589_v23, %v2585_v4  ;;  %v2708_v12 = vand.u32 2147483648, %v8070_v59  ;;  %vm2703_vm14 = vweird.f32 %v6301_v38  ;;  %6310 = vpow2.f32 %v1332_v44  ;;  %v8122_v59 = vld.sshfl [vmem:[#allocation1] sm:$0xff pattern:$0x73625140] }
 0x153   : > { %v6303_v15 = vpop.eup %6302  ;;  %v4039_v35 = vrot.slane %v4038_v11, 4  ;;  %v2591_v8 = vmul.f32 %v2590_v31, %v7878_v54  ;;  %v2699_v18 = vsub.f32 1.0, %v2698_v19  ;;  %vm2704_vm0 = vmor %vm2702_vm15, %vm2703_vm14  ;;  %v1083_v40 = vsub.f32 0.0, %v8000_v7  ;;  %4329 = vst [vmem:[#allocation1] ss:$4 sm:$0xff] %v4314_v36 }
 0x154   : > { %v6305_v61 = vpop.eup %6304  ;;  %v8103_v1 = vadd.f32 1.0, %v6303_v15  ;;  %v2709_v39 = vor.u32 1.1754944e-38, %v2708_v12  ;;  %vm2707_vm1 = vcmp.eq.f32.partialorder %v2706_v37, 8.507059e+37  ;;  %v2841_v60 = vand.u32 2147483647, %v8094_v0 }
 0x155   : > { %v4040_v13 = vadd.f32 %v4039_v35, %v4038_v11  ;;  %v8105_v32 = vadd.f32 %v4075_v21, %v2591_v8  ;;  %v2700_v26 = vmul.f32 %v6301_v38, %v2699_v18  ;;  %v8107_v25 = vadd.f32 1.0, %v6305_v61  ;;  %v8151_v11 = vpop.f32.mrf.mxu1 }
 0x156   : > { %v6307_v50 = vpop.eup %6306  ;;  %v8127_v33 = vmul.f32 1.442695, %v1083_v40  ;;  %v2843_v48 = vand.u32 2147483648, %v8094_v0  ;;  %v1074_v23 = vsub.f32 0.0, %v8143_v30  ;;  %v1075_v16 = vsub.f32 0.0, %v8146_v42 }
 0x157   : > { %v4041_v17 = vrot.slane %v4040_v13, 2  ;;  %v2701_v52 = vadd.f32 %v6301_v38, %v2700_v26  ;;  %6312 = vrcp.f32 %v8107_v25  ;;  %v8111_v54 = vpop.eup %6308  ;;  %v8113_v47 = vadd.f32 1.0, %v6307_v50 }
 0x158   : > { %6314 = vrcp.f32 %v8103_v1  ;;  %v2723_v21 = vand.u32 2147483648, %v8107_v25  ;;  %v2833_v20 = vmul.f32 %v8111_v54, %v8094_v0  ;;  %v6311_v57 = vpop.eup %6310  ;;  %vm2717_vm3 = vweird.f32 %v8107_v25 }
 0x159   : > { %v4042_v2 = vadd.f32 %v4041_v17, %v4040_v13  ;;  %v2705_v34 = vsel %vm2704_vm0, %v6301_v38, %v2701_v52  ;;  %6316 = vrcp.f32 %v8113_v47  ;;  %v8149_v38 = vadd.f32 1.0, %v6311_v57 }
 0x15a   : > { %v2710_v9 = vsel %vm2707_vm1, %v2709_v39, %v2705_v34  ;;  %v2724_v5 = vor.u32 1.1754944e-38, %v2723_v21  ;;  %v2834_v45 = vsub.f32 1.0, %v2833_v20  ;;  %vm2732_vm5 = vweird.f32 %v8113_v47  ;;  %v8175_v21 = vpop.f32.mrf.mxu0  ;;  %v6826_v20 = vld [vmem:[%s7143_s3 + $0x8] sm:$0xff] }
 0x15b   : > { %v2711_v14 = vmul.f32 %v2710_v9, %v7880_v22  ;;  %v4043_v53 = vrot.slane %v4042_v2, 1  ;;  %v2721_v22 = vand.u32 2147483647, %v8107_v25  ;;  %v2736_v44 = vand.u32 2147483647, %v8113_v47  ;;  %5637 = vmatmul.msk.bf16.gmra.mxu0 %vm443_vm2, %v6826_v20 }
 0x15c   : > { %v2738_v8 = vand.u32 2147483648, %v8113_v47  ;;  %v1316_v37 = vmul.f32 1.442695, %v1074_v23  ;;  %v1318_v26 = vmul.f32 1.442695, %v1075_v16  ;;  %6318 = vrcp.f32 %v8149_v38 }
 0x15d   : > { %v6313_v10 = vpop.eup %6312  ;;  %v4051_v27 = vadd.f32 %v8073_v63, %v2711_v14  ;;  %v4044_v4 = vadd.f32 %v4043_v53, %v4042_v2  ;;  %vm2722_vm8 = vcmp.eq.f32.partialorder %v2721_v22, 8.507059e+37  ;;  %v2835_v17 = vmul.f32 %v8111_v54, %v2834_v45 }
 0x15e   : > { %v8135_v46 = vpop.eup %6314  ;;  %v2713_v43 = vmul.f32 %v6313_v10, %v8107_v25  ;;  %vm2718_vm4 = vweird.f32 %v6313_v10  ;;  %6320 = vpow2.f32 %v1316_v37  ;;  %v2739_v2 = vor.u32 1.1754944e-38, %v2738_v8 }
 0x15f   : > { %v4052_v63 = vrot.slane %v4051_v27, 4  ;;  %v6317_v49 = vpop.eup %6316  ;;  %v2848_v31 = vmul.f32 %v8135_v46, %v8103_v1  ;;  %vm8161_vm6 = vmor %vm2717_vm3, %vm2718_vm4  ;;  %6322 = vpow2.f32 %v1318_v26  ;;  %v4292_v34 = vmul.f32 0.015625, %v4044_v4 }
 0x160   : > { %v2714_v6 = vsub.f32 1.0, %v2713_v43  ;;  %v2728_v15 = vmul.f32 %v6317_v49, %v8113_v47  ;;  %vm2733_vm7 = vweird.f32 %v6317_v49  ;;  %vm2737_vm10 = vcmp.eq.f32.partialorder %v2736_v44, 8.507059e+37 }
 0x161   : > { %v4053_v19 = vadd.f32 %v4052_v63, %v4051_v27  ;;  %v2849_v52 = vsub.f32 1.0, %v2848_v31  ;;  %vm8171_vm9 = vmor %vm2732_vm5, %vm2733_vm7  ;;  %vm2837_vm11 = vweird.f32 %v8094_v0  ;;  %vm2838_vm12 = vweird.f32 %v8111_v54 }
 0x162   : > { %v2715_v35 = vmul.f32 %v6313_v10, %v2714_v6  ;;  %v2729_v13 = vsub.f32 1.0, %v2728_v15  ;;  %vm8182_vm13 = vcmp.eq.f32.partialorder %v2841_v60, 8.507059e+37  ;;  %v2836_v53 = vadd.f32 %v8111_v54, %v2835_v17  ;;  %v8191_v22 = vpop.eup %6318  ;;  %v8194_v60 = vpop.f32.mrf.mxu2  ;;  %vm8208_vm14 = vmor %vm2837_vm11, %vm2838_vm12 }
 0x163   : > { %v4054_v18 = vrot.slane %v4053_v19, 2  ;;  %v2850_v27 = vmul.f32 %v8135_v46, %v2849_v52  ;;  %6324 = vpow2.f32 %v8127_v33  ;;  %v2844_v63 = vor.u32 1.1754944e-38, %v2843_v48 }
 0x164   : > { %v2716_v12 = vadd.f32 %v6313_v10, %v2715_v35  ;;  %v2730_v50 = vmul.f32 %v6317_v49, %v2729_v13  ;;  %v6321_v45 = vpop.eup %6320  ;;  %v4362_v23 = vmul.f32 %v8122_v59, %v4292_v34  ;;  %v2983_v33 = vmul.f32 %v8191_v22, %v8149_v38 }
 0x165   : > { %v4055_v39 = vadd.f32 %v4054_v18, %v4053_v19  ;;  %v1084_v6 = vsub.f32 0.0, %v8194_v60  ;;  %v6323_v16 = vpop.eup %6322  ;;  %vm2853_vm15 = vweird.f32 %v8135_v46  ;;  %v2856_v4 = vand.u32 2147483647, %v8103_v1 }
 0x166   : > { %v2720_v25 = vsel %vm8161_vm6, %v6313_v10, %v2716_v12  ;;  %v2731_v14 = vadd.f32 %v6317_v49, %v2730_v50  ;;  %v2840_v15 = vsel %vm8208_vm14, %v8111_v54, %v2836_v53  ;;  %v2851_v31 = vadd.f32 %v8135_v46, %v2850_v27 }
 0x167   : > { %v2725_v9 = vsel %vm2722_vm8, %v2724_v5, %v2720_v25  ;;  %v8196_v5 = vpop.f32.mrf.mxu1  ;;  %5645 = vmatmul.msk.bf16.gmra.mxu1 %vm443_vm2, %v6826_v20  ;;  %v8221_v35 = vadd.f32 1.0, %v6323_v16  ;;  %vm2852_vm0 = vweird.f32 %v8103_v1  ;;  %v2858_v44 = vand.u32 2147483648, %v8103_v1 }
 0x168   : > { %v2726_v57 = vmul.f32 %v2725_v9, %v7930_v29  ;;  %v2735_v10 = vsel %vm8171_vm9, %v6317_v49, %v2731_v14  ;;  %v4056_v29 = vrot.slane %v4055_v39, 1  ;;  %v4382_v18 = vpack.c.bf16 %v4362_v23, %v4362_v23  ;;  %vm8231_vm1 = vmor %vm2852_vm0, %vm2853_vm15  ;;  %v8251_v14 = vpop.f32.mrf.mxu3 }
 0x169   : > { %v2740_v36 = vsel %vm2737_vm10, %v2739_v2, %v2735_v10  ;;  %v6325_v8 = vpop.eup %6324  ;;  %v1336_v61 = vmul.f32 1.442695, %v1084_v6  ;;  %v2845_v54 = vsel %vm8182_vm13, %v2844_v63, %v2840_v15  ;;  %v2855_v1 = vsel %vm8231_vm1, %v8135_v46, %v2851_v31 }
 0x16a   : > { %v4064_v43 = vadd.f32 %v8089_v56, %v2726_v57  ;;  %v2741_v49 = vmul.f32 %v2740_v36, %v7935_v41  ;;  %v8214_v41 = vadd.f32 1.0, %v6321_v45  ;;  %v4057_v0 = vadd.f32 %v4056_v29, %v4055_v39 }
 0x16b   : > { %vm2857_vm3 = vcmp.eq.f32.partialorder %v2856_v4, 8.507059e+37  ;;  %v1092_v12 = vsub.f32 0.0, %v8133_v55  ;;  %v2859_v50 = vor.u32 1.1754944e-38, %v2858_v44  ;;  %v2991_v17 = vand.u32 2147483647, %v8149_v38 }
 0x16c   : > { %v4065_v56 = vrot.slane %v4064_v43, 4  ;;  %v4077_v19 = vadd.f32 %v8105_v32, %v2741_v49  ;;  %6326 = vrcp.f32 %v8214_v41  ;;  %v2984_v32 = vsub.f32 1.0, %v2983_v33 }
 0x16d   : > { %6328 = vrcp.f32 %v8221_v35  ;;  %v4293_v26 = vmul.f32 0.015625, %v4057_v0  ;;  %v8240_v52 = vadd.f32 1.0, %v6325_v8  ;;  %v8242_v39 = vunpack.c.l.b16 %v4382_v18 }
 0x16e   : > { %v4066_v13 = vadd.f32 %v4065_v56, %v4064_v43  ;;  %v8245_v25 = vmul.f32 %v2845_v54, %v7921_v24  ;;  %v2985_v40 = vmul.f32 %v8191_v22, %v2984_v32  ;;  %6330 = vpow2.f32 %v1336_v61 }
 0x16f   : > { %v4078_v34 = vrot.slane %v4077_v19, 4  ;;  %v2860_v9 = vsel %vm2857_vm3, %v2859_v50, %v2855_v1  ;;  %6332 = vrcp.f32 %v8240_v52  ;;  %vm2987_vm4 = vweird.f32 %v8149_v38 }
 0x170   : > { %v4067_v46 = vrot.slane %v4066_v13, 2  ;;  %v1085_v24 = vsub.f32 0.0, %v8251_v14  ;;  %v1352_v47 = vmul.f32 1.442695, %v1092_v12  ;;  %v8260_v10 = vmul.f32 %v8124_v3, %v4293_v26 }
 0x171   : > { %vm8264_vm5 = vcmp.eq.f32.partialorder %v2991_v17, 8.507059e+37  ;;  %v2993_v29 = vand.u32 2147483648, %v8149_v38  ;;  %v8270_v43 = vmul.f32 %v2860_v9, %v7937_v58  ;;  %v2986_v63 = vadd.f32 %v8191_v22, %v2985_v40  ;;  %v8388_v38 = vpop.f32.mrf.mxu3 }
 0x172   : > { %v8248_v2 = vpop.eup %6326  ;;  %vm2988_vm6 = vweird.f32 %v8191_v22  ;;  %v4068_v45 = vadd.f32 %v4067_v46, %v4066_v13  ;;  %v4079_v23 = vadd.f32 %v4078_v34, %v4077_v19  ;;  %vm2867_vm7 = vweird.f32 %v8214_v41 }
 0x173   : > { %v8253_v20 = vpop.eup %6328  ;;  %v2863_v57 = vmul.f32 %v8248_v2, %v8214_v41  ;;  %v2871_v49 = vand.u32 2147483647, %v8214_v41  ;;  %vm2868_vm8 = vweird.f32 %v8248_v2  ;;  %v1338_v16 = vmul.f32 1.442695, %v1085_v24  ;;  %vm8285_vm9 = vmor %vm2987_vm4, %vm2988_vm6 }
 0x174   : > { %v2878_v53 = vmul.f32 %v8253_v20, %v8221_v35  ;;  %v6331_v33 = vpop.eup %6330  ;;  %6334 = vpow2.f32 %v1352_v47  ;;  %v4383_v56 = vpack.c.bf16 %v8260_v10, %v8260_v10  ;;  %v2873_v48 = vand.u32 2147483648, %v8214_v41  ;;  %vm8298_vm10 = vmor %vm2867_vm7, %vm2868_vm8  ;;  %v8331_v47 = vpop.f32.mrf.mxu0 }
 0x175   : > { %v2864_v36 = vsub.f32 1.0, %v2863_v57  ;;  %v8278_v58 = vpop.eup %6332  ;;  %v2994_v15 = vor.u32 1.1754944e-38, %v2993_v29  ;;  %v2888_v0 = vand.u32 2147483648, %v8221_v35  ;;  %v2990_v44 = vsel %vm8285_vm9, %v8191_v22, %v2986_v63  ;;  %v8340_v63 = vpop.f32.mrf.mxu2 }
 0x176   : > { %v2879_v4 = vsub.f32 1.0, %v2878_v53  ;;  %v2998_v8 = vmul.f32 %v8278_v58, %v8240_v52  ;;  %v4080_v18 = vrot.slane %v4079_v23, 2  ;;  %vm8302_vm11 = vcmp.eq.f32.partialorder %v2871_v49, 8.507059e+37 }
 0x177   : > { %v2865_v6 = vmul.f32 %v8248_v2, %v2864_v36  ;;  %v8306_v61 = vadd.f32 1.0, %v6331_v33  ;;  %6336 = vpow2.f32 %v1338_v16  ;;  %v4069_v13 = vrot.slane %v4068_v45, 1 }
 0x178   : > { %vm2882_vm12 = vweird.f32 %v8221_v35  ;;  %v2999_v22 = vsub.f32 1.0, %v2998_v8  ;;  %v1093_v54 = vsub.f32 0.0, %v8151_v11  ;;  %v2874_v37 = vor.u32 1.1754944e-38, %v2873_v48 }
 0x179   : > { %v2866_v31 = vadd.f32 %v8248_v2, %v2865_v6  ;;  %v2880_v41 = vmul.f32 %v8253_v20, %v2879_v4  ;;  %v2995_v1 = vsel %vm8264_vm5, %v2994_v15, %v2990_v44  ;;  %6338 = vrcp.f32 %v8306_v61 }
 0x17a   : > { %v6335_v12 = vpop.eup %6334  ;;  %v2886_v50 = vand.u32 2147483647, %v8221_v35  ;;  %v8318_v17 = vor.u32 1.1754944e-38, %v2888_v0  ;;  %vm3002_vm13 = vweird.f32 %v8240_v52  ;;  %v8321_v40 = vadd.f32 %v4080_v18, %v4079_v23 }
 0x17b   : > { %v2870_v26 = vsel %vm8298_vm10, %v8248_v2, %v2866_v31  ;;  %vm2883_vm14 = vweird.f32 %v8253_v20  ;;  %v3000_v46 = vmul.f32 %v8278_v58, %v2999_v22  ;;  %v3006_v34 = vand.u32 2147483647, %v8240_v52 }
 0x17c   : > { %v8326_v9 = vadd.f32 %v4069_v13, %v4068_v45  ;;  %v2996_v57 = vmul.f32 %v2995_v1, %v7962_v62  ;;  %v8329_v24 = vadd.f32 1.0, %v6335_v12  ;;  %v1354_v2 = vmul.f32 1.442695, %v1093_v54  ;;  %vm8344_vm0 = vmor %vm2882_vm12, %vm2883_vm14  ;;  %v8394_v54 = vpop.f32.mrf.mxu1 }
 0x17d   : > { %v6337_v53 = vpop.eup %6336  ;;  %v2875_v27 = vsel %vm8302_vm11, %v2874_v37, %v2870_v26  ;;  %v8336_v29 = vadd.f32 %v8253_v20, %v2880_v41  ;;  %vm3003_vm15 = vweird.f32 %v8278_v58  ;;  %v3008_v36 = vand.u32 2147483648, %v8240_v52 }
 0x17e   : > { %v3021_v45 = vand.u32 2147483647, %v8306_v61  ;;  %v8349_v23 = vadd.f32 1.0, %v6337_v53  ;;  %6340 = vrcp.f32 %v8329_v24  ;;  %v1094_v49 = vsub.f32 0.0, %v8340_v63  ;;  %vm8380_vm5 = vmor %vm3002_vm13, %vm3003_vm15 }
 0x17f   : > { %v6339_v33 = vpop.eup %6338  ;;  %vm8353_vm1 = vcmp.eq.f32.partialorder %v2886_v50, 8.507059e+37  ;;  %v3001_v16 = vadd.f32 %v8278_v58, %v3000_v46  ;;  %v3023_v35 = vand.u32 2147483648, %v8306_v61  ;;  %6342 = vpow2.f32 %v1354_v2 }
 0x180   : > { %v1102_v48 = vsub.f32 0.0, %v8175_v21  ;;  %v4082_v4 = vrot.slane %v8321_v40, 1  ;;  %v8362_v19 = vadd.f32 %v2996_v57, %v8245_v25  ;;  %v3013_v15 = vmul.f32 %v6339_v33, %v8306_v61 }
 0x181   : > { %6344 = vrcp.f32 %v8349_v23  ;;  %v2876_v31 = vmul.f32 %v2875_v27, %v8143_v30  ;;  %v2885_v0 = vsel %vm8344_vm0, %v8253_v20, %v8336_v29  ;;  %vm8371_vm3 = vcmp.eq.f32.partialorder %v3006_v34, 8.507059e+37  ;;  %v8411_v29 = vpop.f32.mrf.mxu0 }
 0x182   : > { %v3009_v8 = vor.u32 1.1754944e-38, %v3008_v36  ;;  %vm3017_vm4 = vweird.f32 %v8306_v61  ;;  %v3014_v30 = vsub.f32 1.0, %v3013_v15  ;;  %vm3018_vm6 = vweird.f32 %v6339_v33  ;;  %v6827_v61 = vld [vmem:[%s7143_s3 + $0x10] sm:$0xff] }
 0x183   : > { %vm8384_vm7 = vcmp.eq.f32.partialorder %v3021_v45, 8.507059e+37  ;;  %v1356_v20 = vmul.f32 1.442695, %v1094_v49  ;;  %v3005_v32 = vsel %vm8380_vm5, %v8278_v58, %v3001_v16  ;;  %v3024_v13 = vor.u32 1.1754944e-38, %v3023_v35  ;;  %vm8401_vm8 = vmor %vm3017_vm4, %vm3018_vm6  ;;  %5638 = vmatmul.msk.bf16.gmra.mxu0 %vm443_vm2, %v6827_v61 }
 0x184   : > { %v1095_v52 = vsub.f32 0.0, %v8388_v38  ;;  %v1372_v22 = vmul.f32 1.442695, %v1102_v48  ;;  %v6341_v37 = vpop.eup %6340  ;;  %v3015_v41 = vmul.f32 %v6339_v33, %v3014_v30  ;;  %v3141_v1 = vand.u32 2147483647, %v8329_v24 }
 0x185   : > { %6346 = vpow2.f32 %v1356_v20  ;;  %v1103_v12 = vsub.f32 0.0, %v8196_v5  ;;  %v6343_v26 = vpop.eup %6342  ;;  %v3133_v50 = vmul.f32 %v6341_v37, %v8329_v24  ;;  %v3143_v46 = vand.u32 2147483648, %v8329_v24 }
 0x186   : > { %v1358_v34 = vmul.f32 1.442695, %v1095_v52  ;;  %6348 = vpow2.f32 %v1372_v22  ;;  %v3016_v2 = vadd.f32 %v6339_v33, %v3015_v41  ;;  %vm3032_vm9 = vweird.f32 %v8349_v23 }
 0x187   : > { %v6345_v57 = vpop.eup %6344  ;;  %v3036_v53 = vand.u32 2147483647, %v8349_v23  ;;  %v8409_v27 = vadd.f32 1.0, %v6343_v26  ;;  %v3038_v62 = vand.u32 2147483648, %v8349_v23  ;;  %v3134_v45 = vsub.f32 1.0, %v3133_v50 }
 0x188   : > { %v3028_v36 = vmul.f32 %v6345_v57, %v8349_v23  ;;  %6350 = vpow2.f32 %v1358_v34  ;;  %v3020_v49 = vsel %vm8401_vm8, %v6339_v33, %v3016_v2  ;;  %vm3138_vm10 = vweird.f32 %v6341_v37  ;;  %v8457_v23 = vpop.f32.mrf.mxu1  ;;  %5646 = vmatmul.msk.bf16.gmra.mxu1 %vm443_vm2, %v6827_v61 }
 0x189   : > { %6352 = vrcp.f32 %v8409_v27  ;;  %v1374_v16 = vmul.f32 1.442695, %v1103_v12  ;;  %v3025_v35 = vsel %vm8384_vm7, %v3024_v13, %v3020_v49  ;;  %vm3033_vm11 = vweird.f32 %v6345_v57 }
 0x18a   : > { %v3029_v48 = vsub.f32 1.0, %v3028_v36  ;;  %v3135_v15 = vmul.f32 %v6341_v37, %v3134_v45  ;;  %v2890_v30 = vsel %vm8353_vm1, %v8318_v17, %v2885_v0  ;;  %v3010_v20 = vsel %vm8371_vm3, %v3009_v8, %v3005_v32  ;;  %vm8444_vm15 = vmor %vm3032_vm9, %vm3033_vm11 }
 0x18b   : > { %v6347_v25 = vpop.eup %6346  ;;  %v3026_v33 = vmul.f32 %v3025_v35, %v8194_v60  ;;  %vm3137_vm12 = vweird.f32 %v8329_v24  ;;  %vm8434_vm14 = vcmp.eq.f32.partialorder %v3141_v1, 8.507059e+37  ;;  %v3039_v24 = vor.u32 1.1754944e-38, %v3038_v62 }
 0x18c   : > { %v6349_v52 = vpop.eup %6348  ;;  %v3030_v22 = vmul.f32 %v6345_v57, %v3029_v48  ;;  %v3136_v41 = vadd.f32 %v6341_v37, %v3135_v15  ;;  %vm8430_vm13 = vmor %vm3137_vm12, %vm3138_vm10  ;;  %v8438_v17 = vadd.f32 1.0, %v6347_v25  ;;  %v3144_v0 = vor.u32 1.1754944e-38, %v3143_v46 }
 0x18d   : > { %v8440_v6 = vadd.f32 %v3026_v33, %v2876_v31  ;;  %6354 = vpow2.f32 %v1374_v16  ;;  %vm8448_vm0 = vcmp.eq.f32.partialorder %v3036_v53, 8.507059e+37  ;;  %v8455_v31 = vpop.f32.mrf.mxu2  ;;  %v8464_v50 = vadd.f32 1.0, %v6349_v52 }
 0x18e   : > { %v6351_v44 = vpop.eup %6350  ;;  %v3031_v8 = vadd.f32 %v6345_v57, %v3030_v22  ;;  %v3140_v1 = vsel %vm8430_vm13, %v6341_v37, %v3136_v41  ;;  %6356 = vrcp.f32 %v8438_v17  ;;  %v1104_v46 = vsub.f32 0.0, %v8455_v31 }
 0x18f   : > { %v6353_v12 = vpop.eup %6352  ;;  %v3145_v26 = vsel %vm8434_vm14, %v3144_v0, %v3140_v1  ;;  %v8462_v58 = vadd.f32 1.0, %v6351_v44  ;;  %v2891_v37 = vmul.f32 %v2890_v30, %v8146_v42  ;;  %v3011_v61 = vmul.f32 %v3010_v20, %v8000_v7 }
 0x190   : > { %v3035_v34 = vsel %vm8444_vm15, %v6345_v57, %v3031_v8  ;;  %v3146_v2 = vmul.f32 %v3145_v26, %v8133_v55  ;;  %v3148_v53 = vmul.f32 %v6353_v12, %v8409_v27  ;;  %v1112_v62 = vsub.f32 0.0, %v8331_v47  ;;  %v8482_v55 = vpop.f32.mrf.mxu3 }
 0x191   : > { %v3040_v36 = vsel %vm8448_vm0, %v3039_v24, %v3035_v34  ;;  %6358 = vrcp.f32 %v8462_v58  ;;  %v3158_v57 = vand.u32 2147483648, %v8409_v27  ;;  %v8485_v7 = vmul.f32 0.015625, %v8326_v9 }
 0x192   : > { %v3041_v45 = vmul.f32 %v3040_v36, %v8251_v14  ;;  %v8479_v42 = vadd.f32 %v8362_v19, %v3146_v2  ;;  %v3149_v49 = vsub.f32 1.0, %v3148_v53  ;;  %6360 = vrcp.f32 %v8464_v50 }
 0x193   : > { %v6355_v16 = vpop.eup %6354  ;;  %v1376_v35 = vmul.f32 1.442695, %v1104_v46  ;;  %v1105_v48 = vsub.f32 0.0, %v8482_v55  ;;  %vm3153_vm1 = vweird.f32 %v6353_v12  ;;  %v3156_v25 = vand.u32 2147483647, %v8409_v27 }
 0x194   : > { %v8489_v15 = vpop.eup %6356  ;;  %v8491_v14 = vadd.f32 %v3041_v45, %v2891_v37  ;;  %v3150_v19 = vmul.f32 %v6353_v12, %v3149_v49  ;;  %v8497_v30 = vadd.f32 %v4082_v4, %v8321_v40  ;;  %v4175_v9 = vadd.f32 %v3011_v61, %v8270_v43 }
 0x195   : > { %v3163_v20 = vmul.f32 %v8489_v15, %v8438_v17  ;;  %v1392_v33 = vmul.f32 1.442695, %v1112_v62  ;;  %vm3152_vm3 = vweird.f32 %v8409_v27  ;;  %v3159_v22 = vor.u32 1.1754944e-38, %v3158_v57 }
 0x196   : > { %v3151_v52 = vadd.f32 %v6353_v12, %v3150_v19  ;;  %v8503_v41 = vadd.f32 1.0, %v6355_v16  ;;  %vm3154_vm4 = vmor %vm3152_vm3, %vm3153_vm1  ;;  %v3171_v60 = vand.u32 2147483647, %v8438_v17  ;;  %6362 = vpow2.f32 %v1376_v35 }
 0x197   : > { %v8505_v18 = vpop.eup %6358  ;;  %v3164_v13 = vsub.f32 1.0, %v3163_v20  ;;  %v1378_v40 = vmul.f32 1.442695, %v1105_v48  ;;  %vm3157_vm5 = vcmp.eq.f32.partialorder %v3156_v25, 8.507059e+37  ;;  %vm3167_vm6 = vweird.f32 %v8438_v17 }
 0x198   : > { %v3155_v4 = vsel %vm3154_vm4, %v6353_v12, %v3151_v52  ;;  %v3178_v43 = vmul.f32 %v8505_v18, %v8462_v58  ;;  %6364 = vrcp.f32 %v8503_v41  ;;  %v6361_v24 = vpop.eup %6360  ;;  %v3173_v0 = vand.u32 2147483648, %v8438_v17 }
 0x199   : > { %v3160_v27 = vsel %vm3157_vm5, %v3159_v22, %v3155_v4  ;;  %v1113_v44 = vsub.f32 0.0, %v8394_v54  ;;  %v3165_v32 = vmul.f32 %v8489_v15, %v3164_v13  ;;  %v3283_v12 = vmul.f32 %v6361_v24, %v8464_v50 }
 0x19a   : > { %v3161_v8 = vmul.f32 %v3160_v27, %v8151_v11  ;;  %v3179_v1 = vsub.f32 1.0, %v3178_v43  ;;  %vm3168_vm7 = vweird.f32 %v8489_v15  ;;  %vm8518_vm8 = vcmp.eq.f32.partialorder %v3171_v60, 8.507059e+37 }
 0x19b   : > { %vm3182_vm9 = vweird.f32 %v8462_v58  ;;  %6366 = vpow2.f32 %v1378_v40  ;;  %v3284_v34 = vsub.f32 1.0, %v3283_v12  ;;  %vm3183_vm10 = vweird.f32 %v8505_v18  ;;  %vm8538_vm12 = vmor %vm3167_vm6, %vm3168_vm7  ;;  %v8588_v12 = vpop.f32.mrf.mxu2 }
 0x19c   : > { %v8523_v46 = vadd.f32 %v4175_v9, %v3161_v8  ;;  %v3180_v37 = vmul.f32 %v8505_v18, %v3179_v1  ;;  %6368 = vpow2.f32 %v1392_v33  ;;  %v6363_v11 = vpop.eup %6362  ;;  %v3186_v2 = vand.u32 2147483647, %v8462_v58  ;;  %vm8548_vm13 = vmor %vm3182_vm9, %vm3183_vm10  ;;  %v8633_v33 = vpop.f32.mrf.mxu1 }
 0x19d   : > { %v3188_v53 = vand.u32 2147483648, %v8462_v58  ;;  %v1394_v61 = vmul.f32 1.442695, %v1113_v44  ;;  %v3166_v62 = vadd.f32 %v8489_v15, %v3165_v32  ;;  %v3285_v45 = vmul.f32 %v6361_v24, %v3284_v34 }
 0x19e   : > { %v8529_v36 = vpop.eup %6364  ;;  %vm3288_vm11 = vweird.f32 %v6361_v24  ;;  %v8532_v49 = vadd.f32 1.0, %v6363_v11  ;;  %v3181_v16 = vadd.f32 %v8505_v18, %v3180_v37  ;;  %v3293_v35 = vand.u32 2147483648, %v8464_v50 }
 0x19f   : > { %v3298_v48 = vmul.f32 %v8529_v36, %v8503_v41  ;;  %6370 = vpow2.f32 %v1394_v61  ;;  %v3286_v25 = vadd.f32 %v6361_v24, %v3285_v45  ;;  %vm3287_vm14 = vweird.f32 %v8464_v50  ;;  %v8605_v61 = vpop.f32.mrf.mxu3 }
 0x1a0   : > { %v3291_v17 = vand.u32 2147483647, %v8464_v50  ;;  %6372 = vrcp.f32 %v8532_v49  ;;  %v3174_v20 = vor.u32 1.1754944e-38, %v3173_v0  ;;  %vm8555_vm15 = vcmp.eq.f32.partialorder %v3186_v2, 8.507059e+37  ;;  %vm8560_vm0 = vmor %vm3287_vm14, %vm3288_vm11 }
 0x1a1   : > { %v6367_v9 = vpop.eup %6366  ;;  %v3189_v52 = vor.u32 1.1754944e-38, %v3188_v53  ;;  %v3299_v22 = vsub.f32 1.0, %v3298_v48  ;;  %v3170_v50 = vsel %vm8538_vm12, %v8489_v15, %v3166_v62  ;;  %v3290_v60 = vsel %vm8560_vm0, %v6361_v24, %v3286_v25 }
 0x1a2   : > { %v6369_v13 = vpop.eup %6368  ;;  %v3306_v40 = vand.u32 2147483647, %v8503_v41  ;;  %v8570_v4 = vadd.f32 1.0, %v6367_v9  ;;  %v3185_v43 = vsel %vm8548_vm13, %v8505_v18, %v3181_v16  ;;  %v3294_v27 = vor.u32 1.1754944e-38, %v3293_v35 }
 0x1a3   : > { %v3300_v0 = vmul.f32 %v8529_v36, %v3299_v22  ;;  %v8576_v44 = vadd.f32 1.0, %v6369_v13  ;;  %v8580_v8 = vmul.f32 %v8131_v51, %v8485_v7  ;;  %vm3292_vm1 = vcmp.eq.f32.partialorder %v3291_v17, 8.507059e+37 }
 0x1a4   : > { %v3308_v15 = vand.u32 2147483648, %v8503_v41  ;;  %6374 = vrcp.f32 %v8570_v4  ;;  %v3175_v32 = vsel %vm8518_vm8, %v3174_v20, %v3170_v50  ;;  %v3295_v1 = vsel %vm3292_vm1, %v3294_v27, %v3290_v60  ;;  %v8631_v20 = vpop.f32.mrf.mxu0 }
 0x1a5   : > { %v6371_v24 = vpop.eup %6370  ;;  %vm3302_vm3 = vweird.f32 %v8503_v41  ;;  %v3323_v18 = vand.u32 2147483648, %v8532_v49  ;;  %v3190_v7 = vsel %vm8555_vm15, %v3189_v52, %v3185_v43  ;;  %vm8594_vm4 = vcmp.eq.f32.partialorder %v3306_v40, 8.507059e+37 }
 0x1a6   : > { %v8590_v37 = vpop.eup %6372  ;;  %6376 = vrcp.f32 %v8576_v44  ;;  %v1114_v26 = vsub.f32 0.0, %v8588_v12  ;;  %v3301_v11 = vadd.f32 %v8529_v36, %v3300_v0  ;;  %vm3303_vm5 = vweird.f32 %v8529_v36 }
 0x1a7   : > { %v3313_v2 = vmul.f32 %v8590_v37, %v8532_v49  ;;  %v3321_v53 = vand.u32 2147483647, %v8532_v49  ;;  %v8608_v62 = vmul.f32 %v3175_v32, %v8340_v63  ;;  %v3296_v45 = vmul.f32 %v3295_v1, %v8175_v21  ;;  %vm8623_vm7 = vmor %vm3302_vm3, %vm3303_vm5 }
 0x1a8   : > { %v3309_v57 = vor.u32 1.1754944e-38, %v3308_v15  ;;  %vm3317_vm6 = vweird.f32 %v8532_v49  ;;  %v8613_v16 = vmul.f32 %v3190_v7, %v8388_v38  ;;  %v8615_v48 = vor.u32 1.1754944e-38, %v3323_v18  ;;  %v8661_v7 = vpop.f32.mrf.mxu2  ;;  %v8679_v49 = vpop.f32.mrf.mxu3 }
 0x1a9   : > { %v3314_v35 = vsub.f32 1.0, %v3313_v2  ;;  %v8617_v19 = vadd.f32 1.0, %v6371_v24  ;;  %vm3332_vm8 = vweird.f32 %v8570_v4  ;;  %v3336_v21 = vand.u32 2147483647, %v8570_v4 }
 0x1aa   : > { %v8619_v25 = vpop.eup %6374  ;;  %v3338_v38 = vand.u32 2147483648, %v8570_v4  ;;  %v1396_v17 = vmul.f32 1.442695, %v1114_v26  ;;  %v1115_v9 = vsub.f32 0.0, %v8605_v61  ;;  %v3305_v41 = vsel %vm8623_vm7, %v8529_v36, %v3301_v11 }
 0x1ab   : > { %v3315_v52 = vmul.f32 %v8590_v37, %v3314_v35  ;;  %vm8639_vm9 = vcmp.eq.f32.partialorder %v3321_v53, 8.507059e+37  ;;  %v3328_v22 = vmul.f32 %v8619_v25, %v8570_v4  ;;  %v1122_v13 = vsub.f32 0.0, %v8411_v29 }
 0x1ac   : > { %v6377_v50 = vpop.eup %6376  ;;  %v8647_v60 = vadd.f32 %v8479_v42, %v3296_v45  ;;  %vm3437_vm10 = vweird.f32 %v8576_v44  ;;  %6378 = vrcp.f32 %v8617_v19  ;;  %v1123_v36 = vsub.f32 0.0, %v8457_v23 }
 0x1ad   : > { %vm3318_vm11 = vweird.f32 %v8590_v37  ;;  %v3329_v40 = vsub.f32 1.0, %v3328_v22  ;;  %v3433_v43 = vmul.f32 %v6377_v50, %v8576_v44  ;;  %v3441_v27 = vand.u32 2147483647, %v8576_v44 }
 0x1ae   : > { %v3310_v0 = vsel %vm8594_vm4, %v3309_v57, %v3305_v41  ;;  %v8657_v15 = vor.u32 1.1754944e-38, %v3338_v38  ;;  %6380 = vpow2.f32 %v1396_v17  ;;  %v1398_v42 = vmul.f32 1.442695, %v1115_v9  ;;  %vm8665_vm12 = vmor %vm3317_vm6, %vm3318_vm11 }
 0x1af   : > { %v3316_v24 = vadd.f32 %v8590_v37, %v3315_v52  ;;  %v3434_v32 = vsub.f32 1.0, %v3433_v43  ;;  %v3443_v1 = vand.u32 2147483648, %v8576_v44  ;;  %v1412_v18 = vmul.f32 1.442695, %v1122_v13  ;;  %v6828_v43 = vld [vmem:[%s7143_s3 + $0x18] sm:$0xff] }
 0x1b0   : > { %v3330_v34 = vmul.f32 %v8619_v25, %v3329_v40  ;;  %vm8670_vm13 = vcmp.eq.f32.partialorder %v3336_v21, 8.507059e+37  ;;  %6382 = vpow2.f32 %v1398_v42  ;;  %v1414_v2 = vmul.f32 1.442695, %v1123_v36  ;;  %v8697_v40 = vpop.f32.mrf.mxu0  ;;  %5639 = vmatmul.msk.bf16.gmra.mxu0 %vm443_vm2, %v6828_v43 }
 0x1b1   : > { %v1124_v53 = vsub.f32 0.0, %v8661_v7  ;;  %v3435_v45 = vmul.f32 %v6377_v50, %v3434_v32  ;;  %vm3438_vm14 = vweird.f32 %v6377_v50  ;;  %vm8675_vm15 = vcmp.eq.f32.partialorder %v3441_v27, 8.507059e+37 }
 0x1b2   : > { %6384 = vpow2.f32 %v1412_v18  ;;  %v6379_v35 = vpop.eup %6378  ;;  %vm3333_vm0 = vweird.f32 %v8619_v25  ;;  %v1125_v21 = vsub.f32 0.0, %v8679_v49  ;;  %v3311_v38 = vmul.f32 %v3310_v0, %v8196_v5  ;;  %vm8692_vm1 = vmor %vm3437_vm10, %vm3438_vm14 }
 0x1b3   : > { %6386 = vpow2.f32 %v1414_v2  ;;  %v1416_v63 = vmul.f32 1.442695, %v1124_v53  ;;  %v3320_v17 = vsel %vm8665_vm12, %v8590_v37, %v3316_v24  ;;  %v3436_v9 = vadd.f32 %v6377_v50, %v3435_v45  ;;  %v8699_v37 = vpop.f32.mrf.mxu1  ;;  %5647 = vmatmul.msk.bf16.gmra.mxu1 %vm443_vm2, %v6828_v43  ;;  %vm8708_vm4 = vmor %vm3332_vm8, %vm3333_vm0 }
 0x1b4   : > { %v3448_v41 = vmul.f32 %v6379_v35, %v8617_v19  ;;  %v6381_v52 = vpop.eup %6380  ;;  %v3331_v22 = vadd.f32 %v8619_v25, %v3330_v34  ;;  %v3444_v36 = vor.u32 1.1754944e-38, %v3443_v1  ;;  %vm3452_vm3 = vweird.f32 %v8617_v19 }
 0x1b5   : > { %v1418_v5 = vmul.f32 1.442695, %v1125_v21  ;;  %v3440_v27 = vsel %vm8692_vm1, %v6377_v50, %v3436_v9  ;;  %v3456_v42 = vand.u32 2147483647, %v8617_v19  ;;  %v8715_v24 = vadd.f32 1.0, %v6381_v52 }
 0x1b6   : > { %v3449_v0 = vsub.f32 1.0, %v3448_v41  ;;  %v6383_v32 = vpop.eup %6382  ;;  %v3325_v1 = vsel %vm8639_vm9, %v8615_v48, %v3320_v17  ;;  %v3445_v4 = vsel %vm8675_vm15, %v3444_v36, %v3440_v27  ;;  %v3458_v18 = vand.u32 2147483648, %v8617_v19 }
 0x1b7   : > { %6388 = vpow2.f32 %v1416_v63  ;;  %v3446_v34 = vmul.f32 %v3445_v4, %v8331_v47  ;;  %vm3453_vm5 = vweird.f32 %v6379_v35  ;;  %v3335_v53 = vsel %vm8708_vm4, %v8619_v25, %v3331_v22 }
 0x1b8   : > { %v6385_v26 = vpop.eup %6384  ;;  %v3450_v50 = vmul.f32 %v6379_v35, %v3449_v0  ;;  %6390 = vrcp.f32 %v8715_v24  ;;  %v8728_v58 = vadd.f32 1.0, %v6383_v32  ;;  %v1132_v48 = vsub.f32 0.0, %v8631_v20  ;;  %vm3454_vm6 = vmor %vm3452_vm3, %vm3453_vm5 }
 0x1b9   : > { %v6387_v2 = vpop.eup %6386  ;;  %6392 = vpow2.f32 %v1418_v5  ;;  %v8732_v45 = vadd.f32 %v8647_v60, %v3446_v34  ;;  %v8734_v63 = vadd.f32 1.0, %v6385_v26  ;;  %v4189_v21 = vadd.f32 %v8440_v6, %v8608_v62 }
 0x1ba   : > { %v3451_v57 = vadd.f32 %v6379_v35, %v3450_v50  ;;  %v8736_v47 = vadd.f32 1.0, %v6387_v2  ;;  %v3326_v17 = vmul.f32 %v3325_v1, %v8455_v31  ;;  %v3459_v25 = vor.u32 1.1754944e-38, %v3458_v18 }
 0x1bb   : > { %6394 = vrcp.f32 %v8728_v58  ;;  %v3340_v60 = vsel %vm8670_vm13, %v8657_v15, %v3335_v53  ;;  %vm3457_vm7 = vcmp.eq.f32.partialorder %v3456_v42, 8.507059e+37  ;;  %v4384_v6 = vpack.c.bf16 %v8580_v8, %v8580_v8 }
 0x1bc   : > { %v3455_v9 = vsel %vm3454_vm6, %v6379_v35, %v3451_v57  ;;  %6396 = vrcp.f32 %v8734_v63  ;;  %v8751_v31 = vmul.f32 0.015625, %v8497_v30  ;;  %v1432_v19 = vmul.f32 1.442695, %v1132_v48 }
 0x1bd   : > { %v6389_v41 = vpop.eup %6388  ;;  %v3460_v62 = vsel %vm3457_vm7, %v3459_v25, %v3455_v9  ;;  %v4202_v22 = vadd.f32 %v8491_v14, %v8613_v16  ;;  %v4177_v15 = vadd.f32 %v8523_v46, %v3311_v38  ;;  %6398 = vrcp.f32 %v8736_v47 }
 0x1be   : > { %v8753_v52 = vpop.eup %6390  ;;  %v3461_v11 = vmul.f32 %v3460_v62, %v8394_v54  ;;  %v8760_v13 = vadd.f32 %v4189_v21, %v3326_v17  ;;  %v3341_v36 = vmul.f32 %v3340_v60, %v8482_v55  ;;  %v1133_v5 = vsub.f32 0.0, %v8633_v33 }
 0x1bf   : > { %v6393_v35 = vpop.eup %6392  ;;  %v3463_v30 = vmul.f32 %v8753_v52, %v8715_v24  ;;  %vm3467_vm8 = vweird.f32 %v8715_v24  ;;  %v3471_v14 = vand.u32 2147483647, %v8715_v24  ;;  %v3473_v54 = vand.u32 2147483648, %v8715_v24 }
 0x1c0   : > { %v8766_v43 = vadd.f32 %v4177_v15, %v3461_v11  ;;  %v3486_v38 = vand.u32 2147483647, %v8728_v58  ;;  %v8774_v44 = vadd.f32 1.0, %v6389_v41  ;;  %6400 = vpow2.f32 %v1432_v19  ;;  %v8816_v15 = vpop.f32.mrf.mxu2 }
 0x1c1   : > { %v8771_v46 = vpop.eup %6394  ;;  %v3464_v16 = vsub.f32 1.0, %v3463_v30  ;;  %v3488_v0 = vand.u32 2147483648, %v8728_v58  ;;  %v3593_v42 = vand.u32 2147483648, %v8734_v63  ;;  %v8782_v32 = vadd.f32 1.0, %v6393_v35 }
 0x1c2   : > { %v8776_v55 = vpop.eup %6396  ;;  %v3478_v27 = vmul.f32 %v8771_v46, %v8728_v58  ;;  %vm3468_vm9 = vweird.f32 %v8753_v52  ;;  %6402 = vrcp.f32 %v8774_v44  ;;  %v8789_v26 = vadd.f32 %v4202_v22, %v3341_v36 }
 0x1c3   : > { %v3465_v1 = vmul.f32 %v8753_v52, %v3464_v16  ;;  %v3583_v4 = vmul.f32 %v8776_v55, %v8734_v63  ;;  %v6399_v18 = vpop.eup %6398  ;;  %vm8791_vm10 = vcmp.eq.f32.partialorder %v3471_v14, 8.507059e+37  ;;  %v3606_v2 = vand.u32 2147483647, %v8736_v47  ;;  %vm8800_vm11 = vmor %vm3467_vm8, %vm3468_vm9 }
 0x1c4   : > { %v3479_v50 = vsub.f32 1.0, %v3478_v27  ;;  %v3474_v48 = vor.u32 1.1754944e-38, %v3473_v54  ;;  %v3598_v21 = vmul.f32 %v6399_v18, %v8736_v47  ;;  %vm3482_vm12 = vweird.f32 %v8728_v58 }
 0x1c5   : > { %v3466_v53 = vadd.f32 %v8753_v52, %v3465_v1  ;;  %v3584_v57 = vsub.f32 1.0, %v3583_v4  ;;  %v3591_v25 = vand.u32 2147483647, %v8734_v63  ;;  %v3608_v60 = vand.u32 2147483648, %v8736_v47 }
 0x1c6   : > { %6404 = vrcp.f32 %v8782_v32  ;;  %v6401_v9 = vpop.eup %6400  ;;  %v3480_v41 = vmul.f32 %v8771_v46, %v3479_v50  ;;  %vm8809_vm13 = vcmp.eq.f32.partialorder %v3486_v38, 8.507059e+37  ;;  %v3489_v24 = vor.u32 1.1754944e-38, %v3488_v0 }
 0x1c7   : > { %vm3587_vm14 = vweird.f32 %v8734_v63  ;;  %v8814_v19 = vor.u32 1.1754944e-38, %v3593_v42  ;;  %v3599_v22 = vsub.f32 1.0, %v3598_v21  ;;  %vm3483_vm15 = vweird.f32 %v8771_v46 }
 0x1c8   : > { %vm3602_vm0 = vweird.f32 %v8736_v47  ;;  %vm8820_vm1 = vcmp.eq.f32.partialorder %v3606_v2, 8.507059e+37  ;;  %v3621_v35 = vand.u32 2147483647, %v8774_v44  ;;  %v8825_v36 = vpop.eup %6402  ;;  %v3470_v30 = vsel %vm8800_vm11, %v8753_v52, %v3466_v53  ;;  %vm8839_vm5 = vmor %vm3482_vm12, %vm3483_vm15 }
 0x1c9   : > { %v3585_v14 = vmul.f32 %v8776_v55, %v3584_v57  ;;  %v3600_v54 = vmul.f32 %v6399_v18, %v3599_v22  ;;  %vm3603_vm3 = vweird.f32 %v6399_v18  ;;  %vm3588_vm4 = vweird.f32 %v8776_v55  ;;  %v8857_v57 = vpop.f32.mrf.mxu3 }
 0x1ca   : > { %v3609_v16 = vor.u32 1.1754944e-38, %v3608_v60  ;;  %v3613_v38 = vmul.f32 %v8825_v36, %v8774_v44  ;;  %v8834_v27 = vadd.f32 1.0, %v6401_v9  ;;  %v3481_v0 = vadd.f32 %v8771_v46, %v3480_v41  ;;  %vm3604_vm7 = vmor %vm3602_vm0, %vm3603_vm3 }
 0x1cb   : > { %v3601_v52 = vadd.f32 %v6399_v18, %v3600_v54  ;;  %vm3617_vm6 = vweird.f32 %v8774_v44  ;;  %v3623_v1 = vand.u32 2147483648, %v8774_v44  ;;  %v3475_v50 = vsel %vm8791_vm10, %v3474_v48, %v3470_v30  ;;  %vm8882_vm15 = vmor %vm3587_vm14, %vm3588_vm4 }
 0x1cc   : > { %v8845_v4 = vpop.eup %6404  ;;  %v3614_v2 = vsub.f32 1.0, %v3613_v38  ;;  %vm8851_vm8 = vcmp.eq.f32.partialorder %v3621_v35, 8.507059e+37  ;;  %vm3632_vm9 = vweird.f32 %v8782_v32  ;;  %v3636_v53 = vand.u32 2147483647, %v8782_v32  ;;  %v8903_v38 = vpop.f32.mrf.mxu2 }
 0x1cd   : > { %v3586_v21 = vadd.f32 %v8776_v55, %v3585_v14  ;;  %vm8860_vm11 = vcmp.eq.f32.partialorder %v3591_v25, 8.507059e+37  ;;  %v3605_v34 = vsel %vm3604_vm7, %v6399_v18, %v3601_v52  ;;  %v3628_v47 = vmul.f32 %v8845_v4, %v8782_v32 }
 0x1ce   : > { %v3638_v48 = vand.u32 2147483648, %v8782_v32  ;;  %v3610_v60 = vsel %vm8820_vm1, %v3609_v16, %v3605_v34  ;;  %v3615_v9 = vmul.f32 %v8825_v36, %v3614_v2  ;;  %vm3618_vm10 = vweird.f32 %v8825_v36 }
 0x1cf   : > { %6406 = vrcp.f32 %v8834_v27  ;;  %v3485_v25 = vsel %vm8839_vm5, %v8771_v46, %v3481_v0  ;;  %v3611_v18 = vmul.f32 %v3610_v60, %v8457_v23  ;;  %v3629_v41 = vsub.f32 1.0, %v3628_v47  ;;  %v8889_v23 = vpop.f32.mrf.mxu0  ;;  %vm8896_vm0 = vmor %vm3617_vm6, %vm3618_vm10 }
 0x1d0   : > { %vm3633_vm12 = vweird.f32 %v8845_v4  ;;  %v3476_v22 = vmul.f32 %v3475_v50, %v8588_v12  ;;  %v3616_v35 = vadd.f32 %v8825_v36, %v3615_v9  ;;  %v3624_v30 = vor.u32 1.1754944e-38, %v3623_v1 }
 0x1d1   : > { %v1434_v46 = vmul.f32 1.442695, %v1133_v5  ;;  %v8892_v14 = vadd.f32 %v8766_v43, %v3611_v18  ;;  %v3630_v63 = vmul.f32 %v8845_v4, %v3629_v41  ;;  %v1134_v54 = vsub.f32 0.0, %v8816_v15  ;;  %vm8914_vm14 = vmor %vm3632_vm9, %vm3633_vm12  ;;  %v8938_v60 = vpop.f32.mrf.mxu3  ;;  %v8943_v18 = vpop.f32.mrf.mxu1 }
 0x1d2   : > { %v1135_v16 = vsub.f32 0.0, %v8857_v57  ;;  %v3490_v5 = vsel %vm8809_vm13, %v3489_v24, %v3485_v25  ;;  %v3590_v43 = vsel %vm8882_vm15, %v8776_v55, %v3586_v21  ;;  %vm8918_vm1 = vcmp.eq.f32.partialorder %v3636_v53, 8.507059e+37 }
 0x1d3   : > { %6408 = vpow2.f32 %v1434_v46  ;;  %v3631_v62 = vadd.f32 %v8845_v4, %v3630_v63  ;;  %v3639_v24 = vor.u32 1.1754944e-38, %v3638_v48  ;;  %v1436_v42 = vmul.f32 1.442695, %v1134_v54 }
 0x1d4   : > { %v1438_v52 = vmul.f32 1.442695, %v1135_v16  ;;  %v3620_v55 = vsel %vm8896_vm0, %v8825_v36, %v3616_v35  ;;  %v1142_v32 = vsub.f32 0.0, %v8697_v40  ;;  %v1143_v50 = vsub.f32 0.0, %v8699_v37  ;;  %v6829_v16 = vld [vmem:[%s7143_s3 + $0x20] sm:$0xff] }
 0x1d5   : > { %v6407_v1 = vpop.eup %6406  ;;  %v1144_v2 = vsub.f32 0.0, %v8903_v38  ;;  %v3491_v53 = vmul.f32 %v3490_v5, %v8605_v61  ;;  %v3635_v21 = vsel %vm8914_vm14, %v8845_v4, %v3631_v62  ;;  %6410 = vpow2.f32 %v1436_v42 }
 0x1d6   : > { %v3733_v34 = vmul.f32 %v6407_v1, %v8834_v27  ;;  %v3595_v47 = vsel %vm8860_vm11, %v8814_v19, %v3590_v43  ;;  %v3741_v36 = vand.u32 2147483647, %v8834_v27  ;;  %6412 = vpow2.f32 %v1438_v52 }
 0x1d7   : > { %v1452_v48 = vmul.f32 1.442695, %v1142_v32  ;;  %v3625_v61 = vsel %vm8851_vm8, %v3624_v30, %v3620_v55  ;;  %v3743_v25 = vand.u32 2147483648, %v8834_v27  ;;  %v1454_v4 = vmul.f32 1.442695, %v1143_v50  ;;  %v8954_v54 = vpop.f32.mrf.mxu0  ;;  %5640 = vmatmul.msk.bf16.gmra.mxu0 %vm443_vm2, %v6829_v16 }
 0x1d8   : > { %v3734_v9 = vsub.f32 1.0, %v3733_v34  ;;  %v3640_v19 = vsel %vm8918_vm1, %v3639_v24, %v3635_v21  ;;  %vm3738_vm13 = vweird.f32 %v6407_v1  ;;  %v1456_v17 = vmul.f32 1.442695, %v1144_v2 }
 0x1d9   : > { %v6409_v41 = vpop.eup %6408  ;;  %6414 = vpow2.f32 %v1452_v48  ;;  %v1145_v58 = vsub.f32 0.0, %v8938_v60  ;;  %v4191_v30 = vadd.f32 %v8760_v13, %v3476_v22  ;;  %v4204_v46 = vadd.f32 %v8789_v26, %v3491_v53 }
 0x1da   : > { %v3735_v11 = vmul.f32 %v6407_v1, %v3734_v9  ;;  %v8947_v35 = vadd.f32 1.0, %v6409_v41  ;;  %6416 = vpow2.f32 %v1454_v4  ;;  %v3596_v12 = vmul.f32 %v3595_v47, %v8411_v29 }
 0x1db   : > { %v996_v63 = vsub.f32 0.0, %v8889_v23  ;;  %v6411_v5 = vpop.eup %6410  ;;  %vm3737_vm3 = vweird.f32 %v8834_v27  ;;  %vm3742_vm4 = vcmp.eq.f32.partialorder %v3741_v36, 8.507059e+37  ;;  %v3626_v13 = vmul.f32 %v3625_v61, %v8661_v7  ;;  %v8988_v36 = vpop.f32.mrf.mxu1  ;;  %5648 = vmatmul.msk.bf16.gmra.mxu1 %vm443_vm2, %v6829_v16 }
 0x1dc   : > { %v3736_v43 = vadd.f32 %v6407_v1, %v3735_v11  ;;  %6418 = vrcp.f32 %v8947_v35  ;;  %v6413_v44 = vpop.eup %6412  ;;  %v3641_v26 = vmul.f32 %v3640_v19, %v8679_v49  ;;  %vm3739_vm5 = vmor %vm3737_vm3, %vm3738_vm13  ;;  %v3744_v29 = vor.u32 1.1754944e-38, %v3743_v25 }
 0x1dd   : > { %v8963_v22 = vadd.f32 1.0, %v6411_v5  ;;  %v8965_v62 = vadd.f32 1.0, %v6413_v44  ;;  %6420 = vpow2.f32 %v1456_v17  ;;  %v1458_v24 = vmul.f32 1.442695, %v1145_v58 }
 0x1de   : > { %v3740_v0 = vsel %vm3739_vm5, %v6407_v1, %v3736_v43  ;;  %v1160_v52 = vmul.f32 1.442695, %v996_v63  ;;  %v997_v55 = vsub.f32 0.0, %v8943_v18  ;;  %v4166_v49 = vadd.f32 %v8732_v45, %v3596_v12  ;;  %v6033_v12 = vld [vmem:[#allocation5 + $0x38] sm:$0xff] }
 0x1df   : > { %v6415_v42 = vpop.eup %6414  ;;  %v3745_v27 = vsel %vm3742_vm4, %v3744_v29, %v3740_v0  ;;  %6422 = vrcp.f32 %v8963_v22  ;;  %v3756_v50 = vand.u32 2147483647, %v8947_v35  ;;  %v8975_v1 = vmul.f32 %v8140_v28, %v8751_v31  ;;  %v6041_v63 = vld [vmem:[#allocation5 + $0x78] sm:$0xff]  ;;  %5123 = vmatpush.bf16.msra.mxu2 %v6033_v12 }
 0x1e0   : > { %v6417_v7 = vpop.eup %6416  ;;  %v3746_v32 = vmul.f32 %v3745_v27, %v8631_v20  ;;  %6424 = vrcp.f32 %v8965_v62  ;;  %v8977_v2 = vadd.f32 %v4191_v30, %v3626_v13  ;;  %v3758_v53 = vand.u32 2147483648, %v8947_v35  ;;  %5136 = vmatpush.bf16.msra.mxu3 %v6041_v63 }
 0x1e1   : > { %v8980_v21 = vadd.f32 1.0, %v6415_v42  ;;  %v8982_v47 = vadd.f32 %v4204_v46, %v3641_v26  ;;  %v8986_v20 = vadd.f32 1.0, %v6417_v7  ;;  %6426 = vpow2.f32 %v1458_v24 }
 0x1e2   : > { %v6419_v34 = vpop.eup %6418  ;;  %v8984_v45 = vadd.f32 %v4166_v49, %v3746_v32  ;;  %v3771_v48 = vand.u32 2147483647, %v8963_v22  ;;  %6428 = vpow2.f32 %v1160_v52  ;;  %v8993_v61 = vmul.f32 1.442695, %v997_v55  ;;  %v6032_v32 = vld [vmem:[#allocation5 + $0x30] sm:$0xff] }
 0x1e3   : > { %v3748_v31 = vmul.f32 %v6419_v34, %v8947_v35  ;;  %v6421_v9 = vpop.eup %6420  ;;  %vm3752_vm6 = vweird.f32 %v8947_v35  ;;  %vm8996_vm7 = vcmp.eq.f32.partialorder %v3756_v50, 8.507059e+37  ;;  %v3773_v4 = vand.u32 2147483648, %v8963_v22  ;;  %v6040_v50 = vld [vmem:[#allocation5 + $0x70] sm:$0xff]  ;;  %5124 = vmatpush.bf16.msra.mxu2 %v6032_v32 }
 0x1e4   : > { %6430 = vrcp.f32 %v8980_v21  ;;  %v3759_v17 = vor.u32 1.1754944e-38, %v3758_v53  ;;  %v3788_v11 = vand.u32 2147483648, %v8965_v62  ;;  %vm3767_vm8 = vweird.f32 %v8963_v22  ;;  %5137 = vmatpush.bf16.msra.mxu3 %v6040_v50 }
 0x1e5   : > { %v9002_v41 = vpop.eup %6422  ;;  %v3749_v19 = vsub.f32 1.0, %v3748_v31  ;;  %6432 = vrcp.f32 %v8986_v20  ;;  %vm3782_vm9 = vweird.f32 %v8965_v62  ;;  %v3786_v46 = vand.u32 2147483647, %v8965_v62 }
 0x1e6   : > { %v9006_v58 = vpop.eup %6424  ;;  %v3763_v30 = vmul.f32 %v9002_v41, %v8963_v22  ;;  %vm3753_vm11 = vweird.f32 %v6419_v34  ;;  %vm9013_vm10 = vcmp.eq.f32.partialorder %v3771_v48, 8.507059e+37  ;;  %vm3768_vm12 = vweird.f32 %v9002_v41 }
 0x1e7   : > { %v3750_v16 = vmul.f32 %v6419_v34, %v3749_v19  ;;  %v3778_v43 = vmul.f32 %v9006_v58, %v8965_v62  ;;  %v6427_v44 = vpop.eup %6426  ;;  %v3774_v26 = vor.u32 1.1754944e-38, %v3773_v4  ;;  %v9020_v29 = vadd.f32 1.0, %v6421_v9  ;;  %vm3754_vm15 = vmor %vm3752_vm6, %vm3753_vm11 }
 0x1e8   : > { %v3764_v13 = vsub.f32 1.0, %v3763_v30  ;;  %v9022_v0 = vpop.eup %6428  ;;  %v9024_v27 = vor.u32 1.1754944e-38, %v3788_v11  ;;  %v3891_v52 = vand.u32 2147483647, %v8980_v21  ;;  %vm3887_vm0 = vweird.f32 %v8980_v21  ;;  %vm9038_vm14 = vmor %vm3767_vm8, %vm3768_vm12 }
 0x1e9   : > { %v3751_v24 = vadd.f32 %v6419_v34, %v3750_v16  ;;  %v3779_v42 = vsub.f32 1.0, %v3778_v43  ;;  %v3893_v49 = vand.u32 2147483648, %v8980_v21  ;;  %6434 = vrcp.f32 %v9020_v29 }
 0x1ea   : > { %v6431_v55 = vpop.eup %6430  ;;  %v3765_v7 = vmul.f32 %v9002_v41, %v3764_v13  ;;  %vm9043_vm1 = vcmp.eq.f32.partialorder %v3786_v46, 8.507059e+37  ;;  %vm3902_vm13 = vweird.f32 %v8986_v20  ;;  %v3908_v11 = vand.u32 2147483648, %v8986_v20 }
 0x1eb   : > { %v6433_v53 = vpop.eup %6432  ;;  %v3755_v31 = vsel %vm3754_vm15, %v6419_v34, %v3751_v24  ;;  %v3780_v35 = vmul.f32 %v9006_v58, %v3779_v42  ;;  %v3883_v4 = vmul.f32 %v6431_v55, %v8980_v21  ;;  %vm3783_vm3 = vweird.f32 %v9006_v58 }
 0x1ec   : > { %v3760_v34 = vsel %vm8996_vm7, %v3759_v17, %v3755_v31  ;;  %v3766_v19 = vadd.f32 %v9002_v41, %v3765_v7  ;;  %v3898_v22 = vmul.f32 %v6433_v53, %v8986_v20  ;;  %vm9056_vm4 = vcmp.eq.f32.partialorder %v3891_v52, 8.507059e+37  ;;  %vm9069_vm6 = vmor %vm3782_vm9, %vm3783_vm3 }
 0x1ed   : > { %v3761_v30 = vmul.f32 %v3760_v34, %v8633_v33  ;;  %v3884_v46 = vsub.f32 1.0, %v3883_v4  ;;  %v3894_v17 = vor.u32 1.1754944e-38, %v3893_v49  ;;  %v9063_v16 = vadd.f32 1.0, %v6427_v44 }
 0x1ee   : > { %v3770_v25 = vsel %vm9038_vm14, %v9002_v41, %v3766_v19  ;;  %v3899_v63 = vsub.f32 1.0, %v3898_v22  ;;  %v3781_v13 = vadd.f32 %v9006_v58, %v3780_v35  ;;  %vm3888_vm5 = vweird.f32 %v6431_v55 }
 0x1ef   : > { %v4180_v43 = vadd.f32 %v8892_v14, %v3761_v30  ;;  %v3885_v33 = vmul.f32 %v6431_v55, %v3884_v46  ;;  %v6435_v24 = vpop.eup %6434  ;;  %vm3903_vm7 = vweird.f32 %v6433_v53  ;;  %v3906_v41 = vand.u32 2147483647, %v8986_v20  ;;  %vm3889_vm11 = vmor %vm3887_vm0, %vm3888_vm5 }
 0x1f0   : > { %v3900_v52 = vmul.f32 %v6433_v53, %v3899_v63  ;;  %v3909_v7 = vor.u32 1.1754944e-38, %v3908_v11  ;;  %v3775_v44 = vsel %vm9013_vm10, %v3774_v26, %v3770_v25  ;;  %v3913_v49 = vmul.f32 %v6435_v24, %v9020_v29  ;;  %vm3904_vm9 = vmor %vm3902_vm13, %vm3903_vm7 }
 0x1f1   : > { %v3886_v14 = vadd.f32 %v6431_v55, %v3885_v33  ;;  %vm3917_vm8 = vweird.f32 %v9020_v29  ;;  %v3921_v32 = vand.u32 2147483647, %v9020_v29  ;;  %v3923_v50 = vand.u32 2147483648, %v9020_v29 }
 0x1f2   : > { %v3901_v62 = vadd.f32 %v6433_v53, %v3900_v52  ;;  %6436 = vrcp.f32 %v9063_v16  ;;  %v3785_v5 = vsel %vm9069_vm6, %v9006_v58, %v3781_v13  ;;  %v3914_v31 = vsub.f32 1.0, %v3913_v49  ;;  %v9125_v52 = vpop.f32.mrf.mxu0 }
 0x1f3   : > { %v3890_v26 = vsel %vm3889_vm11, %v6431_v55, %v3886_v14  ;;  %vm3918_vm10 = vweird.f32 %v6435_v24  ;;  %v3776_v21 = vmul.f32 %v3775_v44, %v8816_v15  ;;  %vm3907_vm12 = vcmp.eq.f32.partialorder %v3906_v41, 8.507059e+37  ;;  %v6031_v41 = vld [vmem:[#allocation5 + $0x28] sm:$0xff] }
 0x1f4   : > { %v3895_v48 = vsel %vm9056_vm4, %v3894_v17, %v3890_v26  ;;  %v3905_v35 = vsel %vm3904_vm9, %v6433_v53, %v3901_v62  ;;  %v3915_v19 = vmul.f32 %v6435_v24, %v3914_v31  ;;  %v1006_v22 = vsub.f32 0.0, %v8954_v54  ;;  %vm9099_vm15 = vmor %vm3917_vm8, %vm3918_vm10  ;;  %5125 = vmatpush.bf16.msra.mxu2 %v6031_v41 }
 0x1f5   : > { %v3896_v4 = vmul.f32 %v3895_v48, %v8697_v40  ;;  %v3910_v34 = vsel %vm3907_vm12, %v3909_v7, %v3905_v35  ;;  %v3790_v20 = vsel %vm9043_vm1, %v9024_v27, %v3785_v5  ;;  %v3924_v55 = vor.u32 1.1754944e-38, %v3923_v50  ;;  %v6039_v7 = vld [vmem:[#allocation5 + $0x68] sm:$0xff] }
 0x1f6   : > { %v3911_v58 = vmul.f32 %v3910_v34, %v8699_v37  ;;  %v9104_v53 = vadd.f32 1.0, %v9022_v0  ;;  %v3916_v11 = vadd.f32 %v6435_v24, %v3915_v19  ;;  %vm3922_vm0 = vcmp.eq.f32.partialorder %v3921_v32, 8.507059e+37  ;;  %5138 = vmatpush.bf16.msra.mxu3 %v6039_v7  ;;  %v6030_v19 = vld [vmem:[#allocation5 + $0x20] sm:$0xff] }
 0x1f7   : > { %v4168_v40 = vadd.f32 %v8984_v45, %v3896_v4  ;;  %6438 = vpow2.f32 %v8993_v61  ;;  %v4193_v27 = vadd.f32 %v8977_v2, %v3776_v21  ;;  %v3936_v29 = vand.u32 2147483647, %v9063_v16 }
 0x1f8   : > { %v6437_v9 = vpop.eup %6436  ;;  %v4181_v37 = vadd.f32 %v4180_v43, %v3911_v58  ;;  %6440 = vrcp.f32 %v9104_v53  ;;  %v3920_v46 = vsel %vm9099_vm15, %v6435_v24, %v3916_v11  ;;  %v3938_v45 = vand.u32 2147483648, %v9063_v16  ;;  %v9117_v43 = vpop.f32.mrf.mxu2  ;;  %5126 = vmatpush.bf16.msra.mxu2 %v6030_v19 }
 0x1f9   : > { %v4169_v30 = vrot.slane %v4168_v40, 4  ;;  %v3928_v0 = vmul.f32 %v6437_v9, %v9063_v16  ;;  %v3925_v25 = vsel %vm3922_vm0, %v3924_v55, %v3920_v46  ;;  %vm3932_vm14 = vweird.f32 %v9063_v16 }
 0x1fa   : > { %v4182_v12 = vrot.slane %v4181_v37, 4  ;;  %v1180_v61 = vmul.f32 1.442695, %v1006_v22  ;;  %v3926_v2 = vmul.f32 %v3925_v25, %v8903_v38  ;;  %vm3933_vm1 = vweird.f32 %v6437_v9  ;;  %v6038_v22 = vld [vmem:[#allocation5 + $0x60] sm:$0xff]  ;;  %v9162_v41 = vpop.f32.mrf.mxu0 }
 0x1fb   : > { %v4170_v17 = vadd.f32 %v4169_v30, %v4168_v40  ;;  %v3929_v63 = vsub.f32 1.0, %v3928_v0  ;;  %v3791_v13 = vmul.f32 %v3790_v20, %v8857_v57  ;;  %vm9120_vm13 = vcmp.eq.f32.partialorder %v3936_v29, 8.507059e+37  ;;  %vm9132_vm3 = vmor %vm3932_vm14, %vm3933_vm1  ;;  %v9145_v40 = vpop.f32.mrf.mxu3  ;;  %5139 = vmatpush.bf16.msra.mxu3 %v6038_v22 }
 0x1fc   : > { %v4183_v33 = vadd.f32 %v4182_v12, %v4181_v37  ;;  %v998_v42 = vsub.f32 0.0, %v9117_v43  ;;  %v4194_v38 = vadd.f32 %v4193_v27, %v3926_v2  ;;  %v3939_v62 = vor.u32 1.1754944e-38, %v3938_v45  ;;  %v9152_v45 = vpop.f32.mrf.mxu1 }
 0x1fd   : > { %v6439_v44 = vpop.eup %6438  ;;  %v4171_v14 = vrot.slane %v4170_v17, 2  ;;  %v3930_v49 = vmul.f32 %v6437_v9, %v3929_v63  ;;  %6442 = vpow2.f32 %v1180_v61  ;;  %v1007_v26 = vsub.f32 0.0, %v8988_v36 }
 0x1fe   : > { %v9127_v32 = vpop.eup %6440  ;;  %v4184_v50 = vrot.slane %v4183_v33, 2  ;;  %v9136_v5 = vadd.f32 1.0, %v6439_v44  ;;  %v4195_v21 = vrot.slane %v4194_v38, 4  ;;  %v4206_v4 = vadd.f32 %v8982_v47, %v3791_v13 }
 0x1ff   : > { %v4172_v31 = vadd.f32 %v4171_v14, %v4170_v17  ;;  %v3931_v48 = vadd.f32 %v6437_v9, %v3930_v49  ;;  %v1693_v35 = vmul.f32 %v9127_v32, %v9104_v53  ;;  %v1164_v34 = vmul.f32 1.442695, %v998_v42 }
 0x200   : > { %v4185_v16 = vadd.f32 %v4184_v50, %v4183_v33  ;;  %6444 = vrcp.f32 %v9136_v5  ;;  %v4196_v58 = vadd.f32 %v4195_v21, %v4194_v38  ;;  %v999_v47 = vsub.f32 0.0, %v9145_v40 }
 0x201   : > { %v4173_v20 = vrot.slane %v4172_v31, 1  ;;  %v3935_v15 = vsel %vm9132_vm3, %v6437_v9, %v3931_v48  ;;  %v1694_v55 = vsub.f32 1.0, %v1693_v35  ;;  %v1182_v37 = vmul.f32 1.442695, %v1007_v26 }
 0x202   : > { %v4186_v11 = vrot.slane %v4185_v16, 1  ;;  %v3940_v27 = vsel %vm9120_vm13, %v3939_v62, %v3935_v15  ;;  %v4197_v30 = vrot.slane %v4196_v58, 2  ;;  %v4332_v12 = vrot.slane %v8122_v59, 1  ;;  %v6830_v59 = vld [vmem:[%s7143_s3 + $0x28] sm:$0xff] }
 0x203   : > { %v4174_v29 = vadd.f32 %v4173_v20, %v4172_v31  ;;  %v3941_v46 = vmul.f32 %v3940_v27, %v8938_v60  ;;  %v1695_v0 = vmul.f32 %v9127_v32, %v1694_v55  ;;  %v6443_v9 = vpop.eup %6442  ;;  %v4333_v61 = vrot.slane %v8124_v3, 1  ;;  %5641 = vmatmul.msk.bf16.gmra.mxu0 %vm443_vm2, %v6830_v59 }
 0x204   : > { %v4187_v25 = vadd.f32 %v4186_v11, %v4185_v16  ;;  %6446 = vpow2.f32 %v1164_v34  ;;  %v4198_v2 = vadd.f32 %v4197_v30, %v4196_v58  ;;  %v1701_v13 = vand.u32 2147483647, %v9104_v53  ;;  %v9194_v11 = vpop.f32.mrf.mxu1  ;;  %5649 = vmatmul.msk.bf16.gmra.mxu1 %vm443_vm2, %v6830_v59 }
 0x205   : > { %v4302_v17 = vmul.f32 0.015625, %v4174_v29  ;;  %v4207_v63 = vadd.f32 %v4206_v4, %v3941_v46  ;;  %v1696_v60 = vadd.f32 %v9127_v32, %v1695_v0  ;;  %vm1698_vm4 = vweird.f32 %v9127_v32 }
 0x206   : > { %v9157_v33 = vpop.eup %6444  ;;  %v1703_v24 = vand.u32 2147483648, %v9104_v53  ;;  %v1166_v42 = vmul.f32 1.442695, %v999_v47  ;;  %v4303_v3 = vmul.f32 0.015625, %v4187_v25  ;;  %v4199_v7 = vrot.slane %v4198_v2, 1 }
 0x207   : > { %v4208_v44 = vrot.slane %v4207_v63, 4  ;;  %6448 = vpow2.f32 %v1182_v37  ;;  %v4385_v14 = vpack.c.bf16 %v8975_v1, %v8975_v1  ;;  %v4372_v38 = vmul.f32 %v4332_v12, %v4302_v17  ;;  %v6037_v17 = vld [vmem:[#allocation5 + $0x58] sm:$0xff] }
 0x208   : > { %v1708_v49 = vmul.f32 %v9157_v33, %v9136_v5  ;;  %v9170_v62 = vadd.f32 1.0, %v6443_v9  ;;  %v4200_v50 = vadd.f32 %v4199_v7, %v4198_v2  ;;  %v4334_v57 = vrot.slane %v8131_v51, 1  ;;  %5140 = vmatpush.bf16.msra.mxu3 %v6037_v17 }
 0x209   : > { %v4209_v26 = vadd.f32 %v4208_v44, %v4207_v63  ;;  %vm1697_vm5 = vweird.f32 %v9104_v53  ;;  %vm9180_vm7 = vcmp.eq.f32.partialorder %v1701_v13, 8.507059e+37  ;;  %v1704_v48 = vor.u32 1.1754944e-38, %v1703_v24 }
 0x20a   : > { %v6447_v31 = vpop.eup %6446  ;;  %vm9176_vm6 = vmor %vm1697_vm5, %vm1698_vm4  ;;  %v1709_v35 = vsub.f32 1.0, %v1708_v49  ;;  %6450 = vpow2.f32 %v1166_v42  ;;  %v4373_v4 = vmul.f32 %v4333_v61, %v4303_v3  ;;  %v4392_v34 = vpack.c.bf16 %v4372_v38, %v4372_v38  ;;  %v6029_v61 = vld [vmem:[#allocation5 + $0x18] sm:$0xff]  ;;  %v9254_v38 = vpop.f32.mrf.mxu2 }
 0x20b   : > { %v4210_v16 = vrot.slane %v4209_v26, 2  ;;  %v1700_v51 = vsel %vm9176_vm6, %v9127_v32, %v1696_v60  ;;  %v9187_v53 = vadd.f32 1.0, %v6447_v31  ;;  %v1716_v22 = vand.u32 2147483647, %v9136_v5  ;;  %5127 = vmatpush.bf16.msra.mxu2 %v6029_v61  ;;  %v6036_v31 = vld [vmem:[#allocation5 + $0x50] sm:$0xff]  ;;  %v6049_v61 = vld [vmem:[#allocation5 + $0xb8] sm:$0xff] }
 0x20c   : > { %v1710_v19 = vmul.f32 %v9157_v33, %v1709_v35  ;;  %6452 = vrcp.f32 %v9170_v62  ;;  %v4304_v58 = vmul.f32 0.015625, %v4200_v50  ;;  %v1718_v55 = vand.u32 2147483648, %v9136_v5  ;;  %5141 = vmatpush.bf16.msra.mxu3 %v6036_v31 }
 0x20d   : > { %v6449_v20 = vpop.eup %6448  ;;  %v4211_v15 = vadd.f32 %v4210_v16, %v4209_v26  ;;  %6454 = vrcp.f32 %v9187_v53  ;;  %v9200_v32 = vunpack.c.l.b16 %v4383_v56  ;;  %v9205_v27 = vunpack.c.l.b16 %v4384_v6  ;;  %v6028_v26 = vld [vmem:[#allocation5 + $0x10] sm:$0xff] }
 0x20e   : > { %v9207_v47 = vunpack.c.l.b16 %v4385_v14  ;;  %v1705_v37 = vsel %vm9180_vm7, %v1704_v48, %v1700_v51  ;;  %v4393_v29 = vpack.c.bf16 %v4373_v4, %v4373_v4  ;;  %v1711_v46 = vadd.f32 %v9157_v33, %v1710_v19 }
 0x20f   : > { %v4212_v30 = vrot.slane %v4211_v15, 1  ;;  %vm1713_vm8 = vweird.f32 %v9157_v33  ;;  %v9213_v10 = vunpack.c.l.b16 %v4392_v34  ;;  %v4335_v56 = vrot.slane %v8140_v28, 1  ;;  %5128 = vmatpush.bf16.msra.mxu2 %v6028_v26 }
 0x210   : > { %v6451_v0 = vpop.eup %6450  ;;  %vm1712_vm11 = vweird.f32 %v9136_v5  ;;  %v9217_v8 = vadd.f32 1.0, %v6449_v20  ;;  %v9219_v6 = vmul.f32 %v4334_v57, %v4304_v58  ;;  %v9222_v9 = vmul.f32 %v1705_v37, %v8889_v23  ;;  %v9260_v57 = vpop.f32.mrf.mxu3 }
 0x211   : > { %vm9224_vm9 = vcmp.eq.f32.partialorder %v1716_v22, 8.507059e+37  ;;  %v1719_v25 = vor.u32 1.1754944e-38, %v1718_v55  ;;  %vm9230_vm10 = vmor %vm1712_vm11, %vm1713_vm8  ;;  %v1733_v5 = vand.u32 2147483648, %v9187_v53  ;;  %v9235_v13 = vadd.f32 1.0, %v6451_v0 }
 0x212   : > { %v9228_v2 = vpop.eup %6452  ;;  %v1853_v23 = vand.u32 2147483648, %v9170_v62  ;;  %6456 = vrcp.f32 %v9217_v8  ;;  %v9241_v24 = vunpack.c.l.b16 %v4393_v29  ;;  %v4213_v42 = vadd.f32 %v4212_v30, %v4211_v15  ;;  %v9323_v31 = vpop.f32.mrf.mxu2 }
 0x213   : > { %v9239_v60 = vpop.eup %6454  ;;  %v1715_v59 = vsel %vm9230_vm10, %v9157_v33, %v1711_v46  ;;  %v1843_v3 = vmul.f32 %v9228_v2, %v9170_v62  ;;  %v4602_v7 = vrot.slane %v9213_v10, 7  ;;  %6458 = vrcp.f32 %v9235_v13 }
 0x214   : > { %v1723_v44 = vmul.f32 %v9239_v60, %v9187_v53  ;;  %vm1847_vm12 = vweird.f32 %v9170_v62  ;;  %v1851_v14 = vand.u32 2147483647, %v9170_v62  ;;  %v4394_v33 = vpack.c.bf16 %v9219_v6, %v9219_v6 }
 0x215   : > { %vm1727_vm15 = vweird.f32 %v9187_v53  ;;  %v1731_v49 = vand.u32 2147483647, %v9187_v53  ;;  %v1844_v50 = vsub.f32 1.0, %v1843_v3  ;;  %v9264_v21 = vsel %vm9224_vm9, %v1719_v25, %v1715_v59 }
 0x216   : > { %v1724_v1 = vsub.f32 1.0, %v1723_v44  ;;  %v9266_v48 = vor.u32 1.1754944e-38, %v1733_v5  ;;  %v1854_v35 = vor.u32 1.1754944e-38, %v1853_v23  ;;  %v9268_v4 = vmul.f32 0.015625, %v4213_v42 }
 0x217   : > { %v1746_v16 = vand.u32 2147483647, %v9235_v13  ;;  %v1748_v51 = vand.u32 2147483648, %v9235_v13  ;;  %v1845_v34 = vmul.f32 %v9228_v2, %v1844_v50  ;;  %vm1728_vm0 = vweird.f32 %v9239_v60 }
 0x218   : > { %v6457_v19 = vpop.eup %6456  ;;  %vm1848_vm14 = vweird.f32 %v9228_v2  ;;  %vm9275_vm1 = vcmp.eq.f32.partialorder %v1851_v14, 8.507059e+37  ;;  %v1866_v20 = vand.u32 2147483647, %v9217_v8  ;;  %v1008_v58 = vsub.f32 0.0, %v9254_v38  ;;  %vm9315_vm9 = vmor %vm1727_vm15, %vm1728_vm0  ;;  %v9326_v53 = vpop.f32.mrf.mxu3  ;;  %v6026_v14 = vld [vmem:[#allocation5] sm:$0xff] }
 0x219   : > { %v1725_v15 = vmul.f32 %v9239_v60, %v1724_v1  ;;  %vm1742_vm13 = vweird.f32 %v9235_v13  ;;  %v1858_v55 = vmul.f32 %v6457_v19, %v9217_v8  ;;  %vm1862_vm3 = vweird.f32 %v9217_v8  ;;  %v6459_v37 = vpop.eup %6458  ;;  %vm9307_vm11 = vmor %vm1847_vm12, %vm1848_vm14 }
 0x21a   : > { %vm9285_vm4 = vcmp.eq.f32.partialorder %v1731_v49, 8.507059e+37  ;;  %v1846_v30 = vadd.f32 %v9228_v2, %v1845_v34  ;;  %v1184_v46 = vmul.f32 1.442695, %v1008_v58  ;;  %v1009_v0 = vsub.f32 0.0, %v9260_v57  ;;  %v9400_v34 = vpop.f32.mrf.mxu1 }
 0x21b   : > { %v1016_v12 = vsub.f32 0.0, %v9125_v52  ;;  %v1738_v25 = vmul.f32 %v6459_v37, %v9235_v13  ;;  %vm9293_vm5 = vcmp.eq.f32.partialorder %v1746_v16, 8.507059e+37  ;;  %v1749_v17 = vor.u32 1.1754944e-38, %v1748_v51 }
 0x21c   : > { %v1868_v63 = vand.u32 2147483648, %v9217_v8  ;;  %v1859_v5 = vsub.f32 1.0, %v1858_v55  ;;  %vm1863_vm6 = vweird.f32 %v6457_v19  ;;  %vm9298_vm7 = vcmp.eq.f32.partialorder %v1866_v20, 8.507059e+37 }
 0x21d   : > { %6460 = vpow2.f32 %v1184_v46  ;;  %v1726_v42 = vadd.f32 %v9239_v60, %v1725_v15  ;;  %v1739_v59 = vsub.f32 1.0, %v1738_v25  ;;  %vm1743_vm8 = vweird.f32 %v6459_v37  ;;  %vm1864_vm12 = vmor %vm1862_vm3, %vm1863_vm6  ;;  %v9343_v46 = vpop.f32.mrf.mxu0 }
 0x21e   : > { %v1186_v44 = vmul.f32 1.442695, %v1009_v0  ;;  %v1850_v49 = vsel %vm9307_vm11, %v9228_v2, %v1846_v30  ;;  %v1860_v50 = vmul.f32 %v6457_v19, %v1859_v5  ;;  %v1200_v26 = vmul.f32 1.442695, %v1016_v12  ;;  %vm9330_vm10 = vmor %vm1742_vm13, %vm1743_vm8  ;;  %v6027_v0 = vld [vmem:[#allocation5 + $0x8] sm:$0xff] }
 0x21f   : > { %v1017_v62 = vsub.f32 0.0, %v9152_v45  ;;  %v1740_v1 = vmul.f32 %v6459_v37, %v1739_v59  ;;  %v1869_v16 = vor.u32 1.1754944e-38, %v1868_v63  ;;  %v1018_v51 = vsub.f32 0.0, %v9323_v31  ;;  %v6035_v12 = vld [vmem:[#allocation5 + $0x48] sm:$0xff]  ;;  %5129 = vmatpush.bf16.msra.mxu2 %v6027_v0 }
 0x220   : > { %6462 = vpow2.f32 %v1186_v44  ;;  %v1861_v2 = vadd.f32 %v6457_v19, %v1860_v50  ;;  %v1019_v58 = vsub.f32 0.0, %v9326_v53  ;;  %v1730_v15 = vsel %vm9315_vm9, %v9239_v60, %v1726_v42  ;;  %5142 = vmatpush.bf16.msra.mxu3 %v6035_v12 }
 0x221   : > { %6464 = vpow2.f32 %v1200_v26  ;;  %v1202_v20 = vmul.f32 1.442695, %v1017_v62  ;;  %v1741_v55 = vadd.f32 %v6459_v37, %v1740_v1  ;;  %v1855_v30 = vsel %vm9275_vm1, %v1854_v35, %v1850_v49  ;;  %v6034_v49 = vld [vmem:[#allocation5 + $0x40] sm:$0xff] }
 0x222   : > { %v1204_v13 = vmul.f32 1.442695, %v1018_v51  ;;  %v1865_v63 = vsel %vm1864_vm12, %v6457_v19, %v1861_v2  ;;  %v1206_v5 = vmul.f32 1.442695, %v1019_v58  ;;  %v1026_v59 = vsub.f32 0.0, %v9162_v41 }
 0x223   : > { %v6461_v25 = vpop.eup %6460  ;;  %6466 = vpow2.f32 %v1202_v20  ;;  %v1745_v60 = vsel %vm9330_vm10, %v6459_v37, %v1741_v55  ;;  %v1870_v35 = vsel %vm9298_vm7, %v1869_v16, %v1865_v63  ;;  %v4605_v8 = vrot.slane %v9241_v24, 7  ;;  %5130 = vmatpush.bf16.msra.mxu2 %v6026_v14  ;;  %v6048_v20 = vld [vmem:[#allocation5 + $0xb0] sm:$0xff] }
 0x224   : > { %v9350_v22 = vadd.f32 1.0, %v6461_v25  ;;  %6468 = vpow2.f32 %v1204_v13  ;;  %v9356_v19 = vunpack.c.l.b16 %v4394_v33  ;;  %v1856_v42 = vmul.f32 %v1855_v30, %v8954_v54  ;;  %5143 = vmatpush.bf16.msra.mxu3 %v6034_v49  ;;  %v6831_v13 = vld [vmem:[%s7143_s3 + $0x30] sm:$0xff] }
 0x225   : > { %6470 = vpow2.f32 %v1206_v5  ;;  %v1735_v37 = vsel %vm9285_vm4, %v9266_v48, %v1730_v15  ;;  %v1750_v23 = vsel %vm9293_vm5, %v1749_v17, %v1745_v60  ;;  %v1871_v44 = vmul.f32 %v1870_v35, %v8988_v36  ;;  %v6057_v17 = vld [vmem:[#allocation5 + $0xf8] sm:$0xff]  ;;  %v9409_v30 = vpop.f32.mrf.mxu0  ;;  %5642 = vmatmul.msk.bf16.gmra.mxu0 %vm443_vm2, %v6831_v13 }
 0x226   : > { %v6463_v3 = vpop.eup %6462  ;;  %6472 = vrcp.f32 %v9350_v22  ;;  %v9369_v54 = vmul.f32 %v4335_v56, %v9268_v4  ;;  %v1721_v33 = vmul.f32 %v9264_v21, %v8943_v18  ;;  %v1220_v48 = vmul.f32 1.442695, %v1026_v59 }
 0x227   : > { %v6465_v6 = vpop.eup %6464  ;;  %v9373_v29 = vadd.f32 1.0, %v6463_v3  ;;  %v1881_v36 = vand.u32 2147483647, %v9350_v22  ;;  %v1027_v26 = vsub.f32 0.0, %v9194_v11  ;;  %v1036_v62 = vsub.f32 0.0, %v9343_v46  ;;  %5149 = vmatpush.bf16.msrb.mxu2 %v6049_v61 }
 0x228   : > { %v9376_v50 = vadd.f32 1.0, %v6465_v6  ;;  %v9381_v56 = vmul.f32 %v1735_v37, %v9117_v43  ;;  %v9384_v18 = vmul.f32 %v1750_v23, %v9145_v40  ;;  %v9387_v21 = vadd.f32 %v1856_v42, %v9222_v9  ;;  %5162 = vmatpush.bf16.msrb.mxu3 %v6057_v17 }
 0x229   : > { %v6467_v28 = vpop.eup %6466  ;;  %6474 = vrcp.f32 %v9373_v29  ;;  %v9390_v1 = vadd.f32 %v1871_v44, %v1721_v33  ;;  %vm1877_vm15 = vweird.f32 %v9350_v22  ;;  %v1883_v16 = vand.u32 2147483648, %v9350_v22 }
 0x22a   : > { %v6469_v4 = vpop.eup %6468  ;;  %6476 = vrcp.f32 %v9376_v50  ;;  %v1896_v40 = vand.u32 2147483647, %v9373_v29  ;;  %v9396_v51 = vadd.f32 1.0, %v6467_v28  ;;  %vm9402_vm0 = vcmp.eq.f32.partialorder %v1881_v36, 8.507059e+37 }
 0x22b   : > { %v6471_v43 = vpop.eup %6470  ;;  %v9398_v9 = vadd.f32 1.0, %v6469_v4  ;;  %6478 = vpow2.f32 %v1220_v48  ;;  %v1898_v58 = vand.u32 2147483648, %v9373_v29  ;;  %v1222_v15 = vmul.f32 1.442695, %v1027_v26  ;;  %5150 = vmatpush.bf16.msrb.mxu2 %v6048_v20 }
 0x22c   : > { %v6473_v2 = vpop.eup %6472  ;;  %v9407_v55 = vmul.f32 1.442695, %v1036_v62  ;;  %v2001_v12 = vand.u32 2147483647, %v9376_v50  ;;  %v2003_v25 = vand.u32 2147483648, %v9376_v50  ;;  %6480 = vrcp.f32 %v9396_v51 }
 0x22d   : > { %v1873_v0 = vmul.f32 %v6473_v2, %v9350_v22  ;;  %v1884_v63 = vor.u32 1.1754944e-38, %v1883_v16  ;;  %vm1892_vm14 = vweird.f32 %v9373_v29  ;;  %6482 = vrcp.f32 %v9398_v9 }
 0x22e   : > { %v9419_v5 = vadd.f32 1.0, %v6471_v43  ;;  %vm1878_vm1 = vweird.f32 %v6473_v2  ;;  %vm9421_vm13 = vcmp.eq.f32.partialorder %v1896_v40, 8.507059e+37  ;;  %vm1997_vm3 = vweird.f32 %v9376_v50 }
 0x22f   : > { %v6475_v59 = vpop.eup %6474  ;;  %v1874_v60 = vsub.f32 1.0, %v1873_v0  ;;  %v2018_v42 = vand.u32 2147483648, %v9396_v51  ;;  %v1899_v23 = vor.u32 1.1754944e-38, %v1898_v58  ;;  %v2016_v44 = vand.u32 2147483647, %v9396_v51  ;;  %vm9438_vm5 = vmor %vm1877_vm15, %vm1878_vm1  ;;  %v9527_v58 = vpop.f32.mrf.mxu3 }
 0x230   : > { %v6477_v3 = vpop.eup %6476  ;;  %v1888_v37 = vmul.f32 %v6475_v59, %v9373_v29  ;;  %6484 = vpow2.f32 %v1222_v15  ;;  %vm9430_vm4 = vcmp.eq.f32.partialorder %v2001_v12, 8.507059e+37  ;;  %v2004_v48 = vor.u32 1.1754944e-38, %v2003_v25 }
 0x231   : > { %v6479_v14 = vpop.eup %6478  ;;  %v1875_v49 = vmul.f32 %v6473_v2, %v1874_v60  ;;  %v1993_v6 = vmul.f32 %v6477_v3, %v9376_v50  ;;  %v2031_v61 = vand.u32 2147483647, %v9398_v9  ;;  %vm1893_vm6 = vweird.f32 %v6475_v59 }
 0x232   : > { %v1889_v36 = vsub.f32 1.0, %v1888_v37  ;;  %vm2012_vm7 = vweird.f32 %v9396_v51  ;;  %v2033_v26 = vand.u32 2147483648, %v9398_v9  ;;  %6486 = vrcp.f32 %v9419_v5  ;;  %v6481_v62 = vpop.eup %6480  ;;  %vm9458_vm10 = vmor %vm1892_vm14, %vm1893_vm6  ;;  %v9467_v37 = vpop.f32.mrf.mxu1  ;;  %5650 = vmatmul.msk.bf16.gmra.mxu1 %vm443_vm2, %v6831_v13 }
 0x233   : > { %v1876_v28 = vadd.f32 %v6473_v2, %v1875_v49  ;;  %v1994_v4 = vsub.f32 1.0, %v1993_v6  ;;  %v2019_v16 = vor.u32 1.1754944e-38, %v2018_v42  ;;  %vm2027_vm8 = vweird.f32 %v9398_v9  ;;  %v6483_v43 = vpop.eup %6482 }
 0x234   : > { %v1890_v22 = vmul.f32 %v6475_v59, %v1889_v36  ;;  %vm1998_vm11 = vweird.f32 %v6477_v3  ;;  %v2008_v40 = vmul.f32 %v6481_v62, %v9396_v51  ;;  %vm9447_vm9 = vcmp.eq.f32.partialorder %v2016_v44, 8.507059e+37 }
 0x235   : > { %v9451_v15 = vadd.f32 1.0, %v6479_v14  ;;  %v1880_v0 = vsel %vm9438_vm5, %v6473_v2, %v1876_v28  ;;  %v1995_v25 = vmul.f32 %v6477_v3, %v1994_v4  ;;  %v2023_v60 = vmul.f32 %v6483_v43, %v9398_v9  ;;  %vm1999_vm14 = vmor %vm1997_vm3, %vm1998_vm11 }
 0x236   : > { %vm9463_vm12 = vcmp.eq.f32.partialorder %v2031_v61, 8.507059e+37  ;;  %v6485_v44 = vpop.eup %6484  ;;  %v1885_v2 = vsel %vm9402_vm0, %v1884_v63, %v1880_v0  ;;  %v1891_v29 = vadd.f32 %v6475_v59, %v1890_v22  ;;  %v2009_v14 = vsub.f32 1.0, %v2008_v40  ;;  %v6056_v63 = vld [vmem:[#allocation5 + $0xf0] sm:$0xff] }
 0x237   : > { %v2034_v49 = vor.u32 1.1754944e-38, %v2033_v26  ;;  %v1996_v6 = vadd.f32 %v6477_v3, %v1995_v25  ;;  %v2024_v17 = vsub.f32 1.0, %v2023_v60  ;;  %vm2028_vm15 = vweird.f32 %v6483_v43  ;;  %v9493_v25 = vpop.f32.mrf.mxu2  ;;  %5163 = vmatpush.bf16.msrb.mxu3 %v6056_v63  ;;  %v6055_v60 = vld [vmem:[#allocation5 + $0xe8] sm:$0xff] }
 0x238   : > { %v2046_v36 = vand.u32 2147483647, %v9419_v5  ;;  %v6487_v61 = vpop.eup %6486  ;;  %v1895_v28 = vsel %vm9458_vm10, %v6475_v59, %v1891_v29  ;;  %v2010_v13 = vmul.f32 %v6481_v62, %v2009_v14  ;;  %vm2013_vm1 = vweird.f32 %v6481_v62  ;;  %vm9488_vm0 = vmor %vm2027_vm8, %vm2028_vm15 }
 0x239   : > { %6488 = vrcp.f32 %v9451_v15  ;;  %v1886_v26 = vmul.f32 %v1885_v2, %v9254_v38  ;;  %v1900_v4 = vsel %vm9421_vm13, %v1899_v23, %v1895_v28  ;;  %v2000_v22 = vsel %vm1999_vm14, %v6477_v3, %v1996_v6  ;;  %vm2014_vm13 = vmor %vm2012_vm7, %vm2013_vm1 }
 0x23a   : > { %v2025_v40 = vmul.f32 %v6483_v43, %v2024_v17  ;;  %v1901_v0 = vmul.f32 %v1900_v4, %v9260_v57  ;;  %v2005_v59 = vsel %vm9430_vm4, %v2004_v48, %v2000_v22  ;;  %v2011_v50 = vadd.f32 %v6481_v62, %v2010_v13  ;;  %v6047_v48 = vld [vmem:[#allocation5 + $0xa8] sm:$0xff] }
 0x23b   : > { %v2038_v38 = vmul.f32 %v6487_v61, %v9419_v5  ;;  %v2006_v35 = vmul.f32 %v2005_v59, %v9125_v52  ;;  %vm2042_vm3 = vweird.f32 %v9419_v5  ;;  %v2048_v9 = vand.u32 2147483648, %v9419_v5  ;;  %5151 = vmatpush.bf16.msrb.mxu2 %v6047_v48  ;;  %5164 = vmatpush.bf16.msrb.mxu3 %v6055_v60  ;;  %v9570_v60 = vpop.f32.mrf.mxu0 }
 0x23c   : > { %v2026_v57 = vadd.f32 %v6483_v43, %v2025_v40  ;;  %v4123_v3 = vadd.f32 %v1901_v0, %v9384_v18  ;;  %v2015_v23 = vsel %vm2014_vm13, %v6481_v62, %v2011_v50  ;;  %vm2043_vm4 = vweird.f32 %v6487_v61 }
 0x23d   : > { %v2039_v33 = vsub.f32 1.0, %v2038_v38  ;;  %v4110_v2 = vadd.f32 %v1886_v26, %v9381_v56  ;;  %v9504_v52 = vadd.f32 %v9387_v21, %v2006_v35  ;;  %v2020_v51 = vsel %vm9447_vm9, %v2019_v16, %v2015_v23  ;;  %vm9520_vm6 = vmor %vm2042_vm3, %vm2043_vm4 }
 0x23e   : > { %v2030_v29 = vsel %vm9488_vm0, %v6483_v43, %v2026_v57  ;;  %v2021_v6 = vmul.f32 %v2020_v51, %v9152_v45  ;;  %vm9513_vm5 = vcmp.eq.f32.partialorder %v2046_v36, 8.507059e+37  ;;  %v2049_v16 = vor.u32 1.1754944e-38, %v2048_v9  ;;  %v6054_v51 = vld [vmem:[#allocation5 + $0xe0] sm:$0xff] }
 0x23f   : > { %v6489_v14 = vpop.eup %6488  ;;  %v2035_v18 = vsel %vm9463_vm12, %v2034_v49, %v2030_v29  ;;  %v2040_v62 = vmul.f32 %v6487_v61, %v2039_v33  ;;  %v9525_v43 = vadd.f32 1.0, %v6485_v44  ;;  %v1029_v5 = vsub.f32 0.0, %v9527_v58  ;;  %v9547_v0 = vpop.f32.mrf.mxu2  ;;  %5165 = vmatpush.bf16.msrb.mxu3 %v6054_v51 }
 0x240   : > { %v2036_v56 = vmul.f32 %v2035_v18, %v9323_v31  ;;  %v2143_v45 = vmul.f32 %v6489_v14, %v9451_v15  ;;  %v9530_v42 = vadd.f32 %v9390_v1, %v2021_v6  ;;  %v1028_v31 = vsub.f32 0.0, %v9493_v25 }
 0x241   : > { %v2041_v49 = vadd.f32 %v6487_v61, %v2040_v62  ;;  %v2151_v13 = vand.u32 2147483647, %v9451_v15  ;;  %6490 = vrcp.f32 %v9525_v43  ;;  %vm2148_vm7 = vweird.f32 %v6489_v14 }
 0x242   : > { %v9534_v36 = vadd.f32 %v4110_v2, %v2036_v56  ;;  %v2144_v28 = vsub.f32 1.0, %v2143_v45  ;;  %v2153_v20 = vand.u32 2147483648, %v9451_v15  ;;  %v1224_v1 = vmul.f32 1.442695, %v1028_v31  ;;  %v6046_v2 = vld [vmem:[#allocation5 + $0xa0] sm:$0xff]  ;;  %v9578_v45 = vpop.f32.mrf.mxu1 }
 0x243   : > { %v2045_v44 = vsel %vm9520_vm6, %v6487_v61, %v2041_v49  ;;  %v1226_v4 = vmul.f32 1.442695, %v1029_v5  ;;  %6492 = vpow2.f32 %v9407_v55  ;;  %vm2147_vm8 = vweird.f32 %v9451_v15  ;;  %5152 = vmatpush.bf16.msrb.mxu2 %v6046_v2 }
 0x244   : > { %v2050_v63 = vsel %vm9513_vm5, %v2049_v16, %v2045_v44  ;;  %v2145_v26 = vmul.f32 %v6489_v14, %v2144_v28  ;;  %v2166_v40 = vand.u32 2147483647, %v9525_v43  ;;  %6494 = vpow2.f32 %v1224_v1  ;;  %vm9556_vm11 = vmor %vm2147_vm8, %vm2148_vm7 }
 0x245   : > { %v2051_v22 = vmul.f32 %v2050_v63, %v9326_v53  ;;  %6496 = vpow2.f32 %v1226_v4  ;;  %v1037_v59 = vsub.f32 0.0, %v9400_v34  ;;  %v1038_v50 = vsub.f32 0.0, %v9547_v0 }
 0x246   : > { %v2146_v61 = vadd.f32 %v6489_v14, %v2145_v26  ;;  %v4395_v12 = vpack.c.bf16 %v9369_v54, %v9369_v54  ;;  %vm2152_vm9 = vcmp.eq.f32.partialorder %v2151_v13, 8.507059e+37  ;;  %v1046_v55 = vsub.f32 0.0, %v9409_v30 }
 0x247   : > { %v9553_v38 = vadd.f32 %v4123_v3, %v2051_v22  ;;  %v6491_v15 = vpop.eup %6490  ;;  %v2154_v57 = vor.u32 1.1754944e-38, %v2153_v20  ;;  %v1242_v9 = vmul.f32 1.442695, %v1037_v59  ;;  %v1244_v23 = vmul.f32 1.442695, %v1038_v50 }
 0x248   : > { %v2150_v35 = vsel %vm9556_vm11, %v6489_v14, %v2146_v61  ;;  %v2158_v33 = vmul.f32 %v6491_v15, %v9525_v43  ;;  %vm2162_vm10 = vweird.f32 %v9525_v43  ;;  %vm9565_vm12 = vcmp.eq.f32.partialorder %v2166_v40, 8.507059e+37  ;;  %v9572_v14 = vpop.f32.mrf.mxu3 }
 0x249   : > { %v2168_v48 = vand.u32 2147483648, %v9525_v43  ;;  %v6493_v29 = vpop.eup %6492  ;;  %v2155_v6 = vsel %vm2152_vm9, %v2154_v57, %v2150_v35  ;;  %6498 = vpow2.f32 %v1242_v9  ;;  %v1260_v18 = vmul.f32 1.442695, %v1046_v55  ;;  %v6053_v43 = vld [vmem:[#allocation5 + $0xd8] sm:$0xff] }
 0x24a   : > { %v1047_v62 = vsub.f32 0.0, %v9467_v37  ;;  %v6495_v17 = vpop.eup %6494  ;;  %v2159_v56 = vsub.f32 1.0, %v2158_v33  ;;  %v9575_v21 = vadd.f32 1.0, %v6493_v29  ;;  %6500 = vpow2.f32 %v1244_v23  ;;  %v6045_v23 = vld [vmem:[#allocation5 + $0x98] sm:$0xff]  ;;  %5166 = vmatpush.bf16.msrb.mxu3 %v6053_v43 }
 0x24b   : > { %v1039_v16 = vsub.f32 0.0, %v9572_v14  ;;  %v6497_v49 = vpop.eup %6496  ;;  %vm2163_vm15 = vweird.f32 %v6491_v15  ;;  %v9580_v31 = vadd.f32 1.0, %v6495_v17  ;;  %6502 = vpow2.f32 %v1260_v18  ;;  %5153 = vmatpush.bf16.msrb.mxu2 %v6045_v23 }
 0x24c   : > { %v1056_v5 = vsub.f32 0.0, %v9570_v60  ;;  %v2156_v28 = vmul.f32 %v2155_v6, %v9162_v41  ;;  %v2160_v13 = vmul.f32 %v6491_v15, %v2159_v56  ;;  %v9584_v44 = vadd.f32 1.0, %v6497_v49  ;;  %vm2164_vm14 = vmor %vm2162_vm10, %vm2163_vm15 }
 0x24d   : > { %6504 = vrcp.f32 %v9575_v21  ;;  %v2169_v20 = vor.u32 1.1754944e-38, %v2168_v48  ;;  %v9588_v1 = vmul.f32 1.442695, %v1047_v62  ;;  %v1057_v63 = vsub.f32 0.0, %v9578_v45 }
 0x24e   : > { %6506 = vrcp.f32 %v9580_v31  ;;  %v2161_v26 = vadd.f32 %v6491_v15, %v2160_v13  ;;  %v2181_v4 = vand.u32 2147483647, %v9580_v31  ;;  %v1246_v22 = vmul.f32 1.442695, %v1039_v16 }
 0x24f   : > { %6508 = vrcp.f32 %v9584_v44  ;;  %v6499_v40 = vpop.eup %6498  ;;  %v2183_v41 = vand.u32 2147483648, %v9580_v31  ;;  %v2196_v61 = vand.u32 2147483647, %v9584_v44  ;;  %v2198_v59 = vand.u32 2147483648, %v9584_v44 }
 0x250   : > { %v9599_v50 = vmul.f32 1.442695, %v1056_v5  ;;  %v6501_v53 = vpop.eup %6500  ;;  %v9602_v55 = vadd.f32 %v9504_v52, %v2156_v28  ;;  %v2165_v35 = vsel %vm2164_vm14, %v6491_v15, %v2161_v26  ;;  %v2301_v57 = vand.u32 2147483647, %v9575_v21  ;;  %v6832_v26 = vld [vmem:[%s7143_s3 + $0x38] sm:$0xff] }
 0x251   : > { %v9605_v9 = vadd.f32 1.0, %v6499_v40  ;;  %v6503_v33 = vpop.eup %6502  ;;  %v2170_v48 = vsel %vm9565_vm12, %v2169_v20, %v2165_v35  ;;  %vm2177_vm1 = vweird.f32 %v9580_v31  ;;  %vm2297_vm0 = vweird.f32 %v9575_v21  ;;  %v9634_v20 = vpop.f32.mrf.mxu0  ;;  %5643 = vmatmul.msk.bf16.gmra.mxu0 %vm443_vm2, %v6832_v26 }
 0x252   : > { %v9611_v2 = vadd.f32 1.0, %v6501_v53  ;;  %vm9613_vm13 = vcmp.eq.f32.partialorder %v2181_v4, 8.507059e+37  ;;  %vm2192_vm3 = vweird.f32 %v9584_v44  ;;  %v2303_v15 = vand.u32 2147483648, %v9575_v21 }
 0x253   : > { %v6505_v51 = vpop.eup %6504  ;;  %6510 = vrcp.f32 %v9605_v9  ;;  %v2184_v29 = vor.u32 1.1754944e-38, %v2183_v41  ;;  %vm9620_vm4 = vcmp.eq.f32.partialorder %v2196_v61, 8.507059e+37  ;;  %v2199_v18 = vor.u32 1.1754944e-38, %v2198_v59 }
 0x254   : > { %v6507_v3 = vpop.eup %6506  ;;  %v2293_v62 = vmul.f32 %v6505_v51, %v9575_v21  ;;  %v2171_v56 = vmul.f32 %v2170_v48, %v9194_v11  ;;  %vm9627_vm5 = vcmp.eq.f32.partialorder %v2301_v57, 8.507059e+37  ;;  %6512 = vrcp.f32 %v9611_v2  ;;  %v9737_v21 = vpop.f32.mrf.mxu2 }
 0x255   : > { %v6509_v17 = vpop.eup %6508  ;;  %v2173_v16 = vmul.f32 %v6507_v3, %v9580_v31  ;;  %vm2298_vm6 = vweird.f32 %v6505_v51  ;;  %v2316_v13 = vand.u32 2147483647, %v9605_v9  ;;  %vm2178_vm7 = vweird.f32 %v6507_v3  ;;  %v6043_v31 = vld [vmem:[#allocation5 + $0x88] sm:$0xff] }
 0x256   : > { %v2188_v5 = vmul.f32 %v6509_v17, %v9584_v44  ;;  %v2294_v28 = vsub.f32 1.0, %v2293_v62  ;;  %v2304_v4 = vor.u32 1.1754944e-38, %v2303_v15  ;;  %v2318_v40 = vand.u32 2147483648, %v9605_v9  ;;  %vm9646_vm9 = vmor %vm2297_vm0, %vm2298_vm6 }
 0x257   : > { %v2174_v11 = vsub.f32 1.0, %v2173_v16  ;;  %vm2193_vm8 = vweird.f32 %v6509_v17  ;;  %vm2312_vm11 = vweird.f32 %v9605_v9  ;;  %6514 = vpow2.f32 %v1246_v22  ;;  %vm9655_vm12 = vmor %vm2177_vm1, %vm2178_vm7  ;;  %v6044_v22 = vld [vmem:[#allocation5 + $0x90] sm:$0xff] }
 0x258   : > { %v2189_v41 = vsub.f32 1.0, %v2188_v5  ;;  %v2295_v61 = vmul.f32 %v6505_v51, %v2294_v28  ;;  %v9641_v53 = vadd.f32 %v9530_v42, %v2171_v56  ;;  %vm2327_vm10 = vweird.f32 %v9611_v2  ;;  %vm9670_vm14 = vmor %vm2192_vm3, %vm2193_vm8  ;;  %5154 = vmatpush.bf16.msrb.mxu2 %v6044_v22 }
 0x259   : > { %v6511_v59 = vpop.eup %6510  ;;  %v2175_v35 = vmul.f32 %v6507_v3, %v2174_v11  ;;  %v9651_v23 = vadd.f32 1.0, %v6503_v33  ;;  %vm9660_vm15 = vcmp.eq.f32.partialorder %v2316_v13, 8.507059e+37  ;;  %6516 = vpow2.f32 %v9588_v1  ;;  %v9681_v13 = vpop.f32.mrf.mxu1  ;;  %5651 = vmatmul.msk.bf16.gmra.mxu1 %vm443_vm2, %v6832_v26 }
 0x25a   : > { %v2190_v42 = vmul.f32 %v6509_v17, %v2189_v41  ;;  %v2296_v43 = vadd.f32 %v6505_v51, %v2295_v61  ;;  %v2308_v48 = vmul.f32 %v6511_v59, %v9605_v9  ;;  %v9665_v15 = vpop.eup %6512  ;;  %v2331_v62 = vand.u32 2147483647, %v9611_v2 }
 0x25b   : > { %v2176_v33 = vadd.f32 %v6507_v3, %v2175_v35  ;;  %v2333_v56 = vand.u32 2147483648, %v9611_v2  ;;  %6518 = vrcp.f32 %v9651_v23  ;;  %v2323_v28 = vmul.f32 %v9665_v15, %v9611_v2  ;;  %v6051_v2 = vld [vmem:[#allocation5 + $0xc8] sm:$0xff] }
 0x25c   : > { %v2191_v16 = vadd.f32 %v6509_v17, %v2190_v42  ;;  %v2300_v1 = vsel %vm9646_vm9, %v6505_v51, %v2296_v43  ;;  %v2309_v5 = vsub.f32 1.0, %v2308_v48  ;;  %vm2313_vm1 = vweird.f32 %v6511_v59  ;;  %v6052_v42 = vld [vmem:[#allocation5 + $0xd0] sm:$0xff]  ;;  %5155 = vmatpush.bf16.msrb.mxu2 %v6043_v31  ;;  %v9799_v24 = vpop.f32.mrf.mxu2 }
 0x25d   : > { %v2180_v44 = vsel %vm9655_vm12, %v6507_v3, %v2176_v33  ;;  %v2305_v11 = vsel %vm9627_vm5, %v2304_v4, %v2300_v1  ;;  %vm2328_vm0 = vweird.f32 %v9665_v15  ;;  %v6515_v41 = vpop.eup %6514  ;;  %v2324_v49 = vsub.f32 1.0, %v2323_v28  ;;  %vm2314_vm2 = vmor %vm2312_vm11, %vm2313_vm1  ;;  %5167 = vmatpush.bf16.msrb.mxu3 %v6052_v42 }
 0x25e   : > { %v2185_v51 = vsel %vm9613_vm13, %v2184_v29, %v2180_v44  ;;  %v2195_v61 = vsel %vm9670_vm14, %v6509_v17, %v2191_v16  ;;  %v2306_v35 = vmul.f32 %v2305_v11, %v9343_v46  ;;  %v2310_v57 = vmul.f32 %v6511_v59, %v2309_v5  ;;  %vm9717_vm13 = vmor %vm2327_vm10, %vm2328_vm0 }
 0x25f   : > { %v2186_v26 = vmul.f32 %v2185_v51, %v9493_v25  ;;  %v2200_v3 = vsel %vm9620_vm4, %v2199_v18, %v2195_v61  ;;  %v9697_v4 = vadd.f32 1.0, %v6515_v41  ;;  %v6517_v43 = vpop.eup %6516  ;;  %v2451_v46 = vand.u32 2147483647, %v9651_v23 }
 0x260   : > { %v2201_v52 = vmul.f32 %v2200_v3, %v9527_v58  ;;  %v9701_v29 = vadd.f32 %v9602_v55, %v2306_v35  ;;  %v2311_v17 = vadd.f32 %v6511_v59, %v2310_v57  ;;  %v2319_v6 = vor.u32 1.1754944e-38, %v2318_v40  ;;  %v9756_v3 = vpop.f32.mrf.mxu3 }
 0x261   : > { %v6519_v48 = vpop.eup %6518  ;;  %v4112_v25 = vadd.f32 %v9534_v36, %v2186_v26  ;;  %v2325_v18 = vmul.f32 %v9665_v15, %v2324_v49  ;;  %6520 = vrcp.f32 %v9697_v4  ;;  %vm9721_vm3 = vcmp.eq.f32.partialorder %v2331_v62, 8.507059e+37  ;;  %5168 = vmatpush.bf16.msrb.mxu3 %v6051_v2 }
 0x262   : > { %v9711_v58 = vadd.f32 %v9553_v38, %v2201_v52  ;;  %v2315_v55 = vsel %vm2314_vm2, %v6511_v59, %v2311_v17  ;;  %v2334_v40 = vor.u32 1.1754944e-38, %v2333_v56  ;;  %v2443_v59 = vmul.f32 %v6519_v48, %v9651_v23 }
 0x263   : > { %v2320_v33 = vsel %vm9660_vm15, %v2319_v6, %v2315_v55  ;;  %v2326_v38 = vadd.f32 %v9665_v15, %v2325_v18  ;;  %vm2447_vm4 = vweird.f32 %v9651_v23  ;;  %v2348_v1 = vand.u32 2147483648, %v9697_v4 }
 0x264   : > { %v2321_v16 = vmul.f32 %v2320_v33, %v9400_v34  ;;  %vm9732_vm5 = vcmp.eq.f32.partialorder %v2451_v46, 8.507059e+37  ;;  %v2453_v56 = vand.u32 2147483648, %v9651_v23  ;;  %v2444_v28 = vsub.f32 1.0, %v2443_v59 }
 0x265   : > { %v2330_v5 = vsel %vm9717_vm13, %v9665_v15, %v2326_v38  ;;  %v9742_v44 = vadd.f32 1.0, %v6517_v43  ;;  %v1048_v11 = vsub.f32 0.0, %v9737_v21  ;;  %vm2342_vm6 = vweird.f32 %v9697_v4 }
 0x266   : > { %v9746_v34 = vadd.f32 %v9641_v53, %v2321_v16  ;;  %v2335_v41 = vsel %vm9721_vm3, %v2334_v40, %v2330_v5  ;;  %6522 = vpow2.f32 %v9599_v50  ;;  %v2445_v61 = vmul.f32 %v6519_v48, %v2444_v28 }
 0x267   : > { %v6521_v51 = vpop.eup %6520  ;;  %v2336_v15 = vmul.f32 %v2335_v41, %v9547_v0  ;;  %vm2448_vm7 = vweird.f32 %v6519_v48  ;;  %6524 = vrcp.f32 %v9742_v44  ;;  %v2346_v57 = vand.u32 2147483647, %v9697_v4 }
 0x268   : > { %v2338_v35 = vmul.f32 %v6521_v51, %v9697_v4  ;;  %v2349_v53 = vor.u32 1.1754944e-38, %v2348_v1  ;;  %v2454_v26 = vor.u32 1.1754944e-38, %v2453_v56  ;;  %v2446_v22 = vadd.f32 %v6519_v48, %v2445_v61  ;;  %vm2449_vm11 = vmor %vm2447_vm4, %vm2448_vm7 }
 0x269   : > { %v9758_v49 = vadd.f32 %v4112_v25, %v2336_v15  ;;  %v1264_v42 = vmul.f32 1.442695, %v1048_v11  ;;  %v1049_v50 = vsub.f32 0.0, %v9756_v3  ;;  %vm2343_vm8 = vweird.f32 %v6521_v51 }
 0x26a   : > { %v2339_v43 = vsub.f32 1.0, %v2338_v35  ;;  %v2468_v0 = vand.u32 2147483648, %v9742_v44  ;;  %v1282_v52 = vmul.f32 1.442695, %v1057_v63  ;;  %v2450_v17 = vsel %vm2449_vm11, %v6519_v48, %v2446_v22  ;;  %vm9774_vm10 = vmor %vm2342_vm6, %vm2343_vm8 }
 0x26b   : > { %6526 = vpow2.f32 %v1264_v42  ;;  %v1266_v46 = vmul.f32 1.442695, %v1049_v50  ;;  %vm4603_vm9 = vcmask 1041409   ;;  %v2455_v18 = vsel %vm9732_vm5, %v2454_v26, %v2450_v17  ;;  %v6050_v26 = vld [vmem:[#allocation5 + $0xc0] sm:$0xff] }
 0x26c   : > { %v6523_v25 = vpop.eup %6522  ;;  %v2340_v6 = vmul.f32 %v6521_v51, %v2339_v43  ;;  %6528 = vpow2.f32 %v1282_v52  ;;  %v4604_v23 = vsel %vm4603_vm9, %v4602_v7, %v8242_v39  ;;  %v2456_v48 = vmul.f32 %v2455_v18, %v9409_v30  ;;  %5169 = vmatpush.bf16.msrb.mxu3 %v6050_v26 }
 0x26d   : > { %v6525_v55 = vpop.eup %6524  ;;  %6530 = vpow2.f32 %v1266_v46  ;;  %v9779_v36 = vadd.f32 1.0, %v6523_v25  ;;  %v4623_v9 = vpack.c.b16 %v4604_v23, %v4604_v23  ;;  %vm2347_vm12 = vcmp.eq.f32.partialorder %v2346_v57, 8.507059e+37  ;;  %v9836_v25 = vpop.f32.mrf.mxu3 }
 0x26e   : > { %v2341_v40 = vadd.f32 %v6521_v51, %v2340_v6  ;;  %v2458_v33 = vmul.f32 %v6525_v55, %v9742_v44  ;;  %v4606_v39 = vsel %vm4603_vm9, %v4605_v8, %v9200_v32  ;;  %v4607_v10 = vrot.slane %v9356_v19, 7 }
 0x26f   : > { %v9790_v7 = vunpack.c.l.b16 %v4395_v12  ;;  %v9793_v30 = vadd.f32 %v9701_v29, %v2456_v48  ;;  %6532 = vrcp.f32 %v9779_v36  ;;  %5131 = vmatmul.bf16.vlgmr.msra.gmra.mxu2 %v4623_v9  ;;  %vm2462_vm15 = vweird.f32 %v9742_v44 }
 0x270   : > { %v2345_v4 = vsel %vm9774_vm10, %v6521_v51, %v2341_v40  ;;  %v2459_v38 = vsub.f32 1.0, %v2458_v33  ;;  %v4624_v32 = vpack.c.b16 %v4606_v39, %v4606_v39  ;;  %v2466_v54 = vand.u32 2147483647, %v9742_v44 }
 0x271   : > { %v6527_v8 = vpop.eup %6526  ;;  %v2350_v59 = vsel %vm2347_vm12, %v2349_v53, %v2345_v4  ;;  %v2469_v12 = vor.u32 1.1754944e-38, %v2468_v0  ;;  %v1058_v29 = vsub.f32 0.0, %v9799_v24  ;;  %vm2463_vm14 = vweird.f32 %v6525_v55  ;;  %v6042_v53 = vld [vmem:[#allocation5 + $0x80] sm:$0xff] }
 0x272   : > { %v6529_v31 = vpop.eup %6528  ;;  %v2351_v2 = vmul.f32 %v2350_v59, %v9572_v14  ;;  %v2460_v16 = vmul.f32 %v6525_v55, %v2459_v38  ;;  %v9804_v1 = vadd.f32 1.0, %v6527_v8  ;;  %5144 = vmatmul.bf16.vlgmr.msra.gmra.mxu3 %v4624_v32  ;;  %v2601_v56 = vand.u32 2147483647, %v9779_v36  ;;  %vm2464_vm1 = vmor %vm2462_vm15, %vm2463_vm14  ;;  %5156 = vmatpush.bf16.msrb.mxu2 %v6042_v53 }
 0x273   : > { %v6531_v62 = vpop.eup %6530  ;;  %v2603_v5 = vand.u32 2147483648, %v9779_v36  ;;  %v9808_v28 = vadd.f32 1.0, %v6529_v31  ;;  %v1066_v11 = vsub.f32 0.0, %v9634_v20  ;;  %v1284_v14 = vmul.f32 1.442695, %v1058_v29 }
 0x274   : > { %v9812_v41 = vadd.f32 %v9711_v58, %v2351_v2  ;;  %v2461_v51 = vadd.f32 %v6525_v55, %v2460_v16  ;;  %6534 = vrcp.f32 %v9804_v1  ;;  %v2481_v61 = vand.u32 2147483647, %v9804_v1 }
 0x275   : > { %v6533_v15 = vpop.eup %6532  ;;  %v2483_v35 = vand.u32 2147483648, %v9804_v1  ;;  %v9819_v57 = vadd.f32 1.0, %v6531_v62  ;;  %6536 = vrcp.f32 %v9808_v28  ;;  %vm2467_vm0 = vcmp.eq.f32.partialorder %v2466_v54, 8.507059e+37 }
 0x276   : > { %v2465_v58 = vsel %vm2464_vm1, %v6525_v55, %v2461_v51  ;;  %v2593_v22 = vmul.f32 %v6533_v15, %v9779_v36  ;;  %vm2597_vm2 = vweird.f32 %v9779_v36  ;;  %vm9825_vm13 = vcmp.eq.f32.partialorder %v2601_v56, 8.507059e+37  ;;  %v9866_v51 = vpop.f32.mrf.mxu0 }
 0x277   : > { %v2470_v42 = vsel %vm2467_vm0, %v2469_v12, %v2465_v58  ;;  %6538 = vrcp.f32 %v9819_v57  ;;  %v2604_v50 = vor.u32 1.1754944e-38, %v2603_v5  ;;  %vm2477_vm3 = vweird.f32 %v9804_v1  ;;  %v9935_v12 = vpop.f32.mrf.mxu2 }
 0x278   : > { %vm2598_vm4 = vweird.f32 %v6533_v15  ;;  %v1300_v43 = vmul.f32 1.442695, %v1066_v11  ;;  %v1067_v0 = vsub.f32 0.0, %v9681_v13  ;;  %vm9831_vm5 = vcmp.eq.f32.partialorder %v2481_v61, 8.507059e+37 }
 0x279   : > { %v2484_v17 = vor.u32 1.1754944e-38, %v2483_v35  ;;  %v2594_v46 = vsub.f32 1.0, %v2593_v22  ;;  %vm2612_vm6 = vweird.f32 %v9808_v28  ;;  %6540 = vpow2.f32 %v1284_v14  ;;  %vm2599_vm10 = vmor %vm2597_vm2, %vm2598_vm4 }
 0x27a   : > { %v6535_v6 = vpop.eup %6534  ;;  %v2471_v18 = vmul.f32 %v2470_v42, %v9467_v37  ;;  %vm2492_vm7 = vweird.f32 %v9819_v57  ;;  %v2496_v23 = vand.u32 2147483647, %v9819_v57  ;;  %v1059_v55 = vsub.f32 0.0, %v9836_v25 }
 0x27b   : > { %v6537_v63 = vpop.eup %6536  ;;  %v2473_v48 = vmul.f32 %v6535_v6, %v9804_v1  ;;  %v2498_v9 = vand.u32 2147483648, %v9819_v57  ;;  %v2595_v40 = vmul.f32 %v6533_v15, %v2594_v46  ;;  %v2616_v33 = vand.u32 2147483647, %v9808_v28 }
 0x27c   : > { %vm2478_vm8 = vweird.f32 %v6535_v6  ;;  %v2608_v39 = vmul.f32 %v6537_v63, %v9808_v28  ;;  %v2618_v4 = vand.u32 2147483648, %v9808_v28  ;;  %v1286_v37 = vmul.f32 1.442695, %v1059_v55 }
 0x27d   : > { %v6539_v38 = vpop.eup %6538  ;;  %v2474_v32 = vsub.f32 1.0, %v2473_v48  ;;  %v2596_v8 = vadd.f32 %v6533_v15, %v2595_v40  ;;  %6542 = vpow2.f32 %v1300_v43  ;;  %v1302_v59 = vmul.f32 1.442695, %v1067_v0  ;;  %vm9858_vm14 = vmor %vm2477_vm3, %vm2478_vm8 }
 0x27e   : > { %v2488_v54 = vmul.f32 %v6539_v38, %v9819_v57  ;;  %vm9848_vm11 = vcmp.eq.f32.partialorder %v2496_v23, 8.507059e+37  ;;  %v2609_v29 = vsub.f32 1.0, %v2608_v39  ;;  %6544 = vpow2.f32 %v1286_v37  ;;  %v4313_v57 = vld [vmem:[%s7109_s23 + $0x8] sm:$0xff] }
 0x27f   : > { %v6541_v31 = vpop.eup %6540  ;;  %v2475_v2 = vmul.f32 %v6535_v6, %v2474_v32  ;;  %vm2493_vm12 = vweird.f32 %v6539_v38  ;;  %v2600_v16 = vsel %vm2599_vm10, %v6533_v15, %v2596_v8  ;;  %vm2613_vm15 = vweird.f32 %v6537_v63  ;;  %4320 = vst [vmem:[#allocation1 + $0x20] ss:$4 sm:$0xff] %v4313_v57 }
 0x280   : > { %v2489_v56 = vsub.f32 1.0, %v2488_v54  ;;  %v2605_v5 = vsel %vm9825_vm13, %v2604_v50, %v2600_v16  ;;  %v2610_v36 = vmul.f32 %v6537_v63, %v2609_v29  ;;  %v9864_v11 = vadd.f32 1.0, %v6541_v31  ;;  %vm9871_vm1 = vmor %vm2612_vm6, %vm2613_vm15 }
 0x281   : > { %v2476_v14 = vadd.f32 %v6535_v6, %v2475_v2  ;;  %v2499_v61 = vor.u32 1.1754944e-38, %v2498_v9  ;;  %v2606_v15 = vmul.f32 %v2605_v5, %v9570_v60  ;;  %6546 = vpow2.f32 %v1302_v59  ;;  %vm9885_vm2 = vmor %vm2492_vm7, %vm2493_vm12 }
 0x282   : > { %v2490_v35 = vmul.f32 %v6539_v38, %v2489_v56  ;;  %v2611_v1 = vadd.f32 %v6537_v63, %v2610_v36  ;;  %vm9875_vm0 = vcmp.eq.f32.partialorder %v2616_v33, 8.507059e+37  ;;  %6548 = vrcp.f32 %v9864_v11 }
 0x283   : > { %v6543_v58 = vpop.eup %6542  ;;  %v2480_v60 = vsel %vm9858_vm14, %v6535_v6, %v2476_v14  ;;  %v9890_v28 = vadd.f32 %v9793_v30, %v2606_v15  ;;  %v2619_v42 = vor.u32 1.1754944e-38, %v2618_v4  ;;  %v1076_v44 = vsub.f32 0.0, %v9866_v51 }
 0x284   : > { %v6545_v50 = vpop.eup %6544  ;;  %v2485_v43 = vsel %vm9831_vm5, %v2484_v17, %v2480_v60  ;;  %v2491_v0 = vadd.f32 %v6539_v38, %v2490_v35  ;;  %v2615_v46 = vsel %vm9871_vm1, %v6537_v63, %v2611_v1  ;;  %v9897_v6 = vadd.f32 1.0, %v6543_v58  ;;  %v9911_v63 = vpop.f32.mrf.mxu1 }
 0x285   : > { %v4609_v23 = vrot.slane %v9790_v7, 7  ;;  %v4101_v55 = vadd.f32 %v9746_v34, %v2471_v18  ;;  %v2486_v30 = vmul.f32 %v2485_v43, %v9737_v21  ;;  %v2620_v48 = vsel %vm9875_vm0, %v2619_v42, %v2615_v46 }
 0x286   : > { %v2495_v52 = vsel %vm9885_vm2, %v6539_v38, %v2491_v0  ;;  %v2621_v17 = vmul.f32 %v2620_v48, %v9578_v45  ;;  %v9908_v9 = vadd.f32 1.0, %v6545_v50  ;;  %6550 = vrcp.f32 %v9897_v6 }
 0x287   : > { %v6547_v40 = vpop.eup %6546  ;;  %v9914_v34 = vadd.f32 %v9758_v49, %v2486_v30  ;;  %v2500_v21 = vsel %vm9848_vm11, %v2499_v61, %v2495_v52  ;;  %v2631_v18 = vand.u32 2147483647, %v9864_v11  ;;  %v1320_v33 = vmul.f32 1.442695, %v1076_v44  ;;  %v9955_v61 = vpop.f32.mrf.mxu3 }
 0x288   : > { %v6549_v39 = vpop.eup %6548  ;;  %v2501_v4 = vmul.f32 %v2500_v21, %v9756_v3  ;;  %v9920_v45 = vadd.f32 %v4101_v55, %v2621_v17  ;;  %v2633_v37 = vand.u32 2147483648, %v9864_v11  ;;  %6552 = vrcp.f32 %v9908_v9 }
 0x289   : > { %v2623_v38 = vmul.f32 %v6549_v39, %v9864_v11  ;;  %v2646_v49 = vand.u32 2147483647, %v9908_v9  ;;  %v2751_v32 = vand.u32 2147483647, %v9897_v6  ;;  %v1077_v8 = vsub.f32 0.0, %v9911_v63 }
 0x28a   : > { %v9929_v59 = vadd.f32 %v9812_v41, %v2501_v4  ;;  %vm2627_vm13 = vweird.f32 %v9864_v11  ;;  %v2648_v3 = vand.u32 2147483648, %v9908_v9  ;;  %v9933_v54 = vadd.f32 1.0, %v6547_v40 }
 0x28b   : > { %v2624_v29 = vsub.f32 1.0, %v2623_v38  ;;  %vm2628_vm3 = vweird.f32 %v6549_v39  ;;  %vm9937_vm4 = vcmp.eq.f32.partialorder %v2631_v18, 8.507059e+37  ;;  %v1068_v2 = vsub.f32 0.0, %v9935_v12 }
 0x28c   : > { %v6551_v16 = vpop.eup %6550  ;;  %v2634_v62 = vor.u32 1.1754944e-38, %v2633_v37  ;;  %vm2642_vm5 = vweird.f32 %v9908_v9  ;;  %vm2747_vm6 = vweird.f32 %v9897_v6  ;;  %6554 = vrcp.f32 %v9933_v54  ;;  %vm9960_vm11 = vmor %vm2627_vm13, %vm2628_vm3 }
 0x28d   : > { %v2625_v41 = vmul.f32 %v6549_v39, %v2624_v29  ;;  %vm9945_vm7 = vcmp.eq.f32.partialorder %v2646_v49, 8.507059e+37  ;;  %v2743_v5 = vmul.f32 %v6551_v16, %v9897_v6  ;;  %vm9950_vm8 = vcmp.eq.f32.partialorder %v2751_v32, 8.507059e+37  ;;  %v10002_v49 = vpop.f32.mrf.mxu0 }
 0x28e   : > { %v2753_v14 = vand.u32 2147483648, %v9897_v6  ;;  %v6553_v15 = vpop.eup %6552  ;;  %v2649_v1 = vor.u32 1.1754944e-38, %v2648_v3  ;;  %v1304_v53 = vmul.f32 1.442695, %v1068_v2  ;;  %v1069_v26 = vsub.f32 0.0, %v9955_v61 }
 0x28f   : > { %6556 = vpow2.f32 %v1320_v33  ;;  %v2626_v58 = vadd.f32 %v6549_v39, %v2625_v41  ;;  %v2638_v60 = vmul.f32 %v6553_v15, %v9908_v9  ;;  %v2744_v22 = vsub.f32 1.0, %v2743_v5 }
 0x290   : > { %vm2748_vm10 = vweird.f32 %v6551_v16  ;;  %vm2643_vm12 = vweird.f32 %v6553_v15  ;;  %6558 = vpow2.f32 %v1304_v53  ;;  %v1306_v42 = vmul.f32 1.442695, %v1069_v26 }
 0x291   : > { %v1322_v44 = vmul.f32 1.442695, %v1077_v8  ;;  %v2630_v11 = vsel %vm9960_vm11, %v6549_v39, %v2626_v58  ;;  %v2639_v50 = vsub.f32 1.0, %v2638_v60  ;;  %v2745_v43 = vmul.f32 %v6551_v16, %v2744_v22  ;;  %vm2749_vm15 = vmor %vm2747_vm6, %vm2748_vm10 }
 0x292   : > { %v4608_v0 = vsel %vm4603_vm9, %v4607_v10, %v9205_v27  ;;  %v6555_v46 = vpop.eup %6554  ;;  %v2635_v57 = vsel %vm9937_vm4, %v2634_v62, %v2630_v11  ;;  %6560 = vpow2.f32 %v1306_v42  ;;  %v4610_v30 = vsel %vm4603_vm9, %v4609_v23, %v9207_v47  ;;  %vm9986_vm14 = vmor %vm2642_vm5, %vm2643_vm12 }
 0x293   : > { %v4625_v55 = vpack.c.b16 %v4608_v0, %v4608_v0  ;;  %v2636_v48 = vmul.f32 %v2635_v57, %v9799_v24  ;;  %v2640_v52 = vmul.f32 %v6553_v15, %v2639_v50  ;;  %v2746_v17 = vadd.f32 %v6551_v16, %v2745_v43  ;;  %v10028_v0 = vpop.f32.mrf.mxu1 }
 0x294   : > { %v2758_v27 = vmul.f32 %v6555_v46, %v9933_v54  ;;  %v2754_v7 = vor.u32 1.1754944e-38, %v2753_v14  ;;  %v2766_v47 = vand.u32 2147483647, %v9933_v54  ;;  %6562 = vpow2.f32 %v1322_v44 }
 0x295   : > { %v6557_v19 = vpop.eup %6556  ;;  %5157 = vmatmul.bf16.vlgmr.msrb.gmra.mxu2 %v4625_v55  ;;  %v4626_v24 = vpack.c.b16 %v4610_v30, %v4610_v30  ;;  %v9992_v23 = vadd.f32 %v9914_v34, %v2636_v48  ;;  %v2641_v6 = vadd.f32 %v6553_v15, %v2640_v52  ;;  %v2750_v40 = vsel %vm2749_vm15, %v6551_v16, %v2746_v17 }
 0x296   : > { %v2759_v21 = vsub.f32 1.0, %v2758_v27  ;;  %v6559_v18 = vpop.eup %6558  ;;  %v2755_v9 = vsel %vm9950_vm8, %v2754_v7, %v2750_v40  ;;  %vm2763_vm1 = vweird.f32 %v6555_v46  ;;  %v2768_v33 = vand.u32 2147483648, %v9933_v54  ;;  %v10034_v27 = vpop.f32.mrf.mxu2 }
 0x297   : > { %v9997_v39 = vadd.f32 1.0, %v6557_v19  ;;  %5170 = vmatmul.bf16.vlgmr.msrb.gmra.mxu3 %v4626_v24  ;;  %v2645_v4 = vsel %vm9986_vm14, %v6553_v15, %v2641_v6  ;;  %v2756_v37 = vmul.f32 %v2755_v9, %v9634_v20  ;;  %v1548_v38 = vadd.f32 1.0, %v6559_v18 }
 0x298   : > { %v2760_v34 = vmul.f32 %v6555_v46, %v2759_v21  ;;  %v6561_v32 = vpop.eup %6560  ;;  %v2650_v8 = vsel %vm9945_vm7, %v2649_v1, %v2645_v4  ;;  %vm2762_vm0 = vweird.f32 %v9933_v54  ;;  %vm2767_vm13 = vcmp.eq.f32.partialorder %v2766_v47, 8.507059e+37 }
 0x299   : > { %v2651_v3 = vmul.f32 %v2650_v8, %v9836_v25  ;;  %v4090_v29 = vadd.f32 %v9890_v28, %v2756_v37  ;;  %6564 = vrcp.f32 %v1548_v38  ;;  %vm2764_vm2 = vmor %vm2762_vm0, %vm2763_vm1  ;;  %v2769_v20 = vor.u32 1.1754944e-38, %v2768_v33  ;;  %v10052_v8 = vpop.f32.mrf.mxu3 }
 0x29a   : > { %v2761_v31 = vadd.f32 %v6555_v46, %v2760_v34  ;;  %v6563_v2 = vpop.eup %6562  ;;  %6566 = vrcp.f32 %v9997_v39  ;;  %v1086_v16 = vsub.f32 0.0, %v10002_v49  ;;  %v1549_v56 = vadd.f32 1.0, %v6561_v32 }
 0x29b   : > { %v10013_v62 = vadd.f32 %v9929_v59, %v2651_v3  ;;  %v4091_v41 = vrot.slane %v4090_v29, 4  ;;  %v10016_v36 = vadd.f32 1.0, %v6563_v2  ;;  %v2781_v59 = vand.u32 2147483647, %v1548_v38 }
 0x29c   : > { %v2765_v54 = vsel %vm2764_vm2, %v6555_v46, %v2761_v31  ;;  %6568 = vrcp.f32 %v1549_v56  ;;  %v1340_v35 = vmul.f32 1.442695, %v1086_v16  ;;  %v2783_v60 = vand.u32 2147483648, %v1548_v38 }
 0x29d   : > { %v2770_v25 = vsel %vm2767_vm13, %v2769_v20, %v2765_v54  ;;  %v4092_v5 = vadd.f32 %v4091_v41, %v4090_v29  ;;  %vm2777_vm3 = vweird.f32 %v1548_v38  ;;  %6570 = vrcp.f32 %v10016_v36  ;;  %v10061_v54 = vpop.f32.mrf.mxu0 }
 0x29e   : > { %v2771_v28 = vmul.f32 %v2770_v25, %v9681_v13  ;;  %6572 = vpow2.f32 %v1340_v35  ;;  %vm10024_vm5 = vcmp.eq.f32.partialorder %v2781_v59, 8.507059e+37  ;;  %v2784_v55 = vor.u32 1.1754944e-38, %v2783_v60  ;;  %v4325_v60 = vld.sshfl [vmem:[#allocation1 + $0x20] sm:$0xff pattern:$0x73625140] }
 0x29f   : > { %v6565_v14 = vpop.eup %6564  ;;  %v4093_v53 = vrot.slane %v4092_v5, 2  ;;  %vm2792_vm7 = vweird.f32 %v1549_v56  ;;  %v2798_v30 = vand.u32 2147483648, %v1549_v56  ;;  %v2796_v17 = vand.u32 2147483647, %v1549_v56 }
 0x2a0   : > { %v4103_v15 = vadd.f32 %v9920_v45, %v2771_v28  ;;  %v10019_v1 = vpop.eup %6566  ;;  %v2773_v26 = vmul.f32 %v6565_v14, %v1548_v38  ;;  %vm2778_vm4 = vweird.f32 %v6565_v14  ;;  %v1078_v7 = vsub.f32 0.0, %v10034_v27 }
 0x2a1   : > { %v2893_v44 = vmul.f32 %v10019_v1, %v9997_v39  ;;  %v4094_v45 = vadd.f32 %v4093_v53, %v4092_v5  ;;  %vm10030_vm6 = vmor %vm2777_vm3, %vm2778_vm4  ;;  %v1087_v47 = vsub.f32 0.0, %v10028_v0  ;;  %v2799_v37 = vor.u32 1.1754944e-38, %v2798_v30 }
 0x2a2   : > { %v4104_v58 = vrot.slane %v4103_v15, 4  ;;  %v2774_v22 = vsub.f32 1.0, %v2773_v26  ;;  %v6569_v13 = vpop.eup %6568  ;;  %vm2797_vm10 = vcmp.eq.f32.partialorder %v2796_v17, 8.507059e+37  ;;  %v1324_v29 = vmul.f32 1.442695, %v1078_v7  ;;  %v10094_v7 = vpop.f32.mrf.mxu2 }
 0x2a3   : > { %v2788_v43 = vmul.f32 %v6569_v13, %v1549_v56  ;;  %vm2793_vm8 = vweird.f32 %v6569_v13  ;;  %v2894_v10 = vsub.f32 1.0, %v2893_v44  ;;  %v10038_v24 = vpop.eup %6570  ;;  %v4095_v6 = vrot.slane %v4094_v45, 1 }
 0x2a4   : > { %v4105_v42 = vadd.f32 %v4104_v58, %v4103_v15  ;;  %v2775_v11 = vmul.f32 %v6565_v14, %v2774_v22  ;;  %v6573_v18 = vpop.eup %6572  ;;  %vm10045_vm11 = vmor %vm2792_vm7, %vm2793_vm8  ;;  %v2908_v32 = vmul.f32 %v10038_v24, %v10016_v36  ;;  %v1079_v31 = vsub.f32 0.0, %v10052_v8 }
 0x2a5   : > { %v2789_v52 = vsub.f32 1.0, %v2788_v43  ;;  %v2895_v3 = vmul.f32 %v10019_v1, %v2894_v10  ;;  %v1342_v2 = vmul.f32 1.442695, %v1087_v47  ;;  %v4096_v20 = vadd.f32 %v4095_v6, %v4094_v45  ;;  %v10096_v47 = vpop.f32.mrf.mxu1 }
 0x2a6   : > { %v4106_v46 = vrot.slane %v4105_v42, 2  ;;  %v2776_v48 = vadd.f32 %v6565_v14, %v2775_v11  ;;  %v2909_v5 = vsub.f32 1.0, %v2908_v32  ;;  %6574 = vpow2.f32 %v1324_v29 }
 0x2a7   : > { %v2790_v21 = vmul.f32 %v6569_v13, %v2789_v52  ;;  %v2901_v15 = vand.u32 2147483647, %v9997_v39  ;;  %v1326_v35 = vmul.f32 1.442695, %v1079_v31  ;;  %vm2898_vm12 = vweird.f32 %v10019_v1 }
 0x2a8   : > { %v4107_v19 = vadd.f32 %v4106_v46, %v4105_v42  ;;  %v2780_v40 = vsel %vm10030_vm6, %v6565_v14, %v2776_v48  ;;  %v1096_v53 = vsub.f32 0.0, %v10061_v54  ;;  %v4296_v26 = vmul.f32 0.015625, %v4096_v20  ;;  %v4326_v42 = vld.sshfl [vmem:[#allocation1 + $0x28] sm:$0xff pattern:$0x73625140] }
 0x2a9   : > { %v2785_v33 = vsel %vm10024_vm5, %v2784_v55, %v2780_v40  ;;  %v2791_v38 = vadd.f32 %v6569_v13, %v2790_v21  ;;  %vm2897_vm15 = vweird.f32 %v9997_v39  ;;  %vm10073_vm14 = vcmp.eq.f32.partialorder %v2901_v15, 8.507059e+37 }
 0x2aa   : > { %v4108_v9 = vrot.slane %v4107_v19, 1  ;;  %v2786_v34 = vmul.f32 %v2785_v33, %v9935_v12  ;;  %v10059_v12 = vadd.f32 1.0, %v6573_v18  ;;  %vm2912_vm1 = vweird.f32 %v10016_v36  ;;  %vm10081_vm0 = vmor %vm2897_vm15, %vm2898_vm12 }
 0x2ab   : > { %v2795_v41 = vsel %vm10045_vm11, %v6569_v13, %v2791_v38  ;;  %v2910_v13 = vmul.f32 %v10038_v24, %v2909_v5  ;;  %v1360_v46 = vmul.f32 1.442695, %v1096_v53  ;;  %v4366_v57 = vmul.f32 %v4325_v60, %v4296_v26 }
 0x2ac   : > { %v4116_v16 = vadd.f32 %v9992_v23, %v2786_v34  ;;  %v4109_v56 = vadd.f32 %v4108_v9, %v4107_v19  ;;  %v2800_v25 = vsel %vm2797_vm10, %v2799_v37, %v2795_v41  ;;  %v2903_v23 = vand.u32 2147483648, %v9997_v39  ;;  %v6575_v50 = vpop.eup %6574 }
 0x2ad   : > { %v2801_v14 = vmul.f32 %v2800_v25, %v9955_v61  ;;  %6576 = vrcp.f32 %v10059_v12  ;;  %v2896_v61 = vadd.f32 %v10019_v1, %v2895_v3  ;;  %v10085_v39 = vadd.f32 1.0, %v6575_v50 }
 0x2ae   : > { %v4117_v28 = vrot.slane %v4116_v16, 4  ;;  %6578 = vpow2.f32 %v1326_v35  ;;  %v4297_v22 = vmul.f32 0.015625, %v4109_v56  ;;  %v2904_v43 = vor.u32 1.1754944e-38, %v2903_v23 }
 0x2af   : > { %v4129_v58 = vadd.f32 %v10013_v62, %v2801_v14  ;;  %6580 = vpow2.f32 %v1342_v2  ;;  %v2918_v62 = vand.u32 2147483648, %v10016_v36  ;;  %v2900_v19 = vsel %vm10081_vm0, %v10019_v1, %v2896_v61 }
 0x2b0   : > { %v4118_v59 = vadd.f32 %v4117_v28, %v4116_v16  ;;  %v4367_v17 = vmul.f32 %v4326_v42, %v4297_v22  ;;  %v2911_v10 = vadd.f32 %v10038_v24, %v2910_v13  ;;  %vm2913_vm2 = vweird.f32 %v10038_v24  ;;  %v10138_v22 = vpop.f32.mrf.mxu3  ;;  %v10234_v42 = vpop.f32.mrf.mxu2 }
 0x2b1   : > { %v4130_v45 = vrot.slane %v4129_v58, 4  ;;  %6582 = vrcp.f32 %v10085_v39  ;;  %v1088_v18 = vsub.f32 0.0, %v10094_v7  ;;  %v2916_v33 = vand.u32 2147483647, %v10016_v36  ;;  %vm10111_vm13 = vmor %vm2912_vm1, %vm2913_vm2 }
 0x2b2   : > { %v4119_v44 = vrot.slane %v4118_v59, 2  ;;  %6584 = vpow2.f32 %v1360_v46  ;;  %v4386_v37 = vpack.c.bf16 %v4366_v57, %v4366_v57  ;;  %v2905_v34 = vsel %vm10073_vm14, %v2904_v43, %v2900_v19  ;;  %v10156_v43 = vpop.f32.mrf.mxu0 }
 0x2b3   : > { %v4131_v30 = vadd.f32 %v4130_v45, %v4129_v58  ;;  %v10087_v52 = vpop.eup %6576  ;;  %v1097_v3 = vsub.f32 0.0, %v10096_v47  ;;  %v2915_v31 = vsel %vm10111_vm13, %v10038_v24, %v2911_v10  ;;  %v2919_v2 = vor.u32 1.1754944e-38, %v2918_v62 }
 0x2b4   : > { %v4120_v55 = vadd.f32 %v4119_v44, %v4118_v59  ;;  %v6579_v6 = vpop.eup %6578  ;;  %v3043_v1 = vmul.f32 %v10087_v52, %v10059_v12  ;;  %v4387_v20 = vpack.c.bf16 %v4367_v17, %v4367_v17  ;;  %v3053_v36 = vand.u32 2147483648, %v10059_v12  ;;  %v4327_v59 = vld.sshfl [vmem:[#allocation1 + $0x30] sm:$0xff pattern:$0x73625140] }
 0x2b5   : > { %v4132_v21 = vrot.slane %v4131_v30, 2  ;;  %v6581_v9 = vpop.eup %6580  ;;  %v10101_v4 = vadd.f32 1.0, %v6579_v6  ;;  %v1344_v41 = vmul.f32 1.442695, %v1088_v18  ;;  %vm2917_vm3 = vcmp.eq.f32.partialorder %v2916_v33, 8.507059e+37 }
 0x2b6   : > { %v4121_v40 = vrot.slane %v4120_v55, 1  ;;  %v10115_v32 = vadd.f32 1.0, %v6581_v9  ;;  %v3044_v56 = vsub.f32 1.0, %v3043_v1  ;;  %v3051_v25 = vand.u32 2147483647, %v10059_v12  ;;  %v10260_v9 = vpop.f32.mrf.mxu1 }
 0x2b7   : > { %6586 = vrcp.f32 %v10101_v4  ;;  %v4133_v16 = vadd.f32 %v4132_v21, %v4131_v30  ;;  %v10125_v5 = vpop.eup %6582  ;;  %v10127_v28 = vunpack.c.l.b16 %v4386_v37  ;;  %v10130_v24 = vmul.f32 %v2905_v34, %v9866_v51 }
 0x2b8   : > { %v4122_v29 = vadd.f32 %v4121_v40, %v4120_v55  ;;  %6588 = vrcp.f32 %v10115_v32  ;;  %v2920_v14 = vsel %vm2917_vm3, %v2919_v2, %v2915_v31  ;;  %v6585_v15 = vpop.eup %6584  ;;  %v2923_v23 = vmul.f32 %v10125_v5, %v10085_v39 }
 0x2b9   : > { %v3045_v53 = vmul.f32 %v10087_v52, %v3044_v56  ;;  %vm3047_vm4 = vweird.f32 %v10059_v12  ;;  %v10136_v26 = vunpack.c.l.b16 %v4387_v20  ;;  %v4134_v58 = vrot.slane %v4133_v16, 1  ;;  %v10300_v56 = vpop.f32.mrf.mxu2 }
 0x2ba   : > { %v4298_v35 = vmul.f32 0.015625, %v4122_v29  ;;  %v3054_v60 = vor.u32 1.1754944e-38, %v3053_v36  ;;  %6590 = vpow2.f32 %v1344_v41  ;;  %v10143_v61 = vmul.f32 %v2920_v14, %v9911_v63 }
 0x2bb   : > { %v2924_v13 = vsub.f32 1.0, %v2923_v23  ;;  %vm10145_vm5 = vcmp.eq.f32.partialorder %v3051_v25, 8.507059e+37  ;;  %v1089_v44 = vsub.f32 0.0, %v10138_v22  ;;  %v1362_v45 = vmul.f32 1.442695, %v1097_v3 }
 0x2bc   : > { %vm2927_vm6 = vweird.f32 %v10085_v39  ;;  %vm3048_vm7 = vweird.f32 %v10087_v52  ;;  %v10154_v50 = vadd.f32 1.0, %v6585_v15  ;;  %v4368_v62 = vmul.f32 %v4327_v59, %v4298_v35 }
 0x2bd   : > { %v10140_v51 = vpop.eup %6586  ;;  %v2925_v46 = vmul.f32 %v10125_v5, %v2924_v13  ;;  %v3046_v57 = vadd.f32 %v10087_v52, %v3045_v53  ;;  %v1346_v55 = vmul.f32 1.442695, %v1089_v44  ;;  %v4135_v30 = vadd.f32 %v4134_v58, %v4133_v16  ;;  %vm10175_vm10 = vmor %vm3047_vm4, %vm3048_vm7 }
 0x2be   : > { %v2938_v11 = vmul.f32 %v10140_v51, %v10101_v4  ;;  %v10158_v63 = vpop.eup %6588  ;;  %vm2928_vm8 = vweird.f32 %v10125_v5  ;;  %v2931_v19 = vand.u32 2147483647, %v10085_v39  ;;  %v2933_v10 = vand.u32 2147483648, %v10085_v39  ;;  %v4328_v39 = vld.sshfl [vmem:[#allocation1 + $0x38] sm:$0xff pattern:$0x73625140] }
 0x2bf   : > { %v3058_v17 = vmul.f32 %v10158_v63, %v10115_v32  ;;  %6592 = vpow2.f32 %v1346_v55  ;;  %v1106_v6 = vsub.f32 0.0, %v10156_v43  ;;  %v2926_v21 = vadd.f32 %v10125_v5, %v2925_v46  ;;  %vm10182_vm12 = vmor %vm2927_vm6, %vm2928_vm8 }
 0x2c0   : > { %v2939_v48 = vsub.f32 1.0, %v2938_v11  ;;  %v6591_v40 = vpop.eup %6590  ;;  %vm2942_vm11 = vweird.f32 %v10101_v4  ;;  %6594 = vrcp.f32 %v10154_v50  ;;  %v2946_v1 = vand.u32 2147483647, %v10101_v4  ;;  %v10242_v11 = vpop.f32.mrf.mxu3 }
 0x2c1   : > { %v3050_v37 = vsel %vm10175_vm10, %v10087_v52, %v3046_v57  ;;  %v3059_v34 = vsub.f32 1.0, %v3058_v17  ;;  %v10190_v12 = vadd.f32 1.0, %v6591_v40  ;;  %v4388_v38 = vpack.c.bf16 %v4368_v62, %v4368_v62 }
 0x2c2   : > { %v2940_v18 = vmul.f32 %v10140_v51, %v2939_v48  ;;  %v4299_v3 = vmul.f32 0.015625, %v4135_v30  ;;  %vm2943_vm15 = vweird.f32 %v10140_v51  ;;  %v2948_v29 = vand.u32 2147483648, %v10101_v4 }
 0x2c3   : > { %vm10194_vm14 = vcmp.eq.f32.partialorder %v2931_v19, 8.507059e+37  ;;  %v2934_v2 = vor.u32 1.1754944e-38, %v2933_v10  ;;  %v3068_v20 = vand.u32 2147483648, %v10115_v32  ;;  %6596 = vrcp.f32 %v10190_v12  ;;  %vm10209_vm0 = vmor %vm2942_vm11, %vm2943_vm15 }
 0x2c4   : > { %v2930_v52 = vsel %vm10182_vm12, %v10125_v5, %v2926_v21  ;;  %v2941_v16 = vadd.f32 %v10140_v51, %v2940_v18  ;;  %v3055_v36 = vsel %vm10145_vm5, %v3054_v60, %v3050_v37  ;;  %vm3062_vm1 = vweird.f32 %v10115_v32 }
 0x2c5   : > { %v6593_v41 = vpop.eup %6592  ;;  %vm10213_vm2 = vcmp.eq.f32.partialorder %v2946_v1, 8.507059e+37  ;;  %v3060_v5 = vmul.f32 %v10158_v63, %v3059_v34  ;;  %v3066_v14 = vand.u32 2147483647, %v10115_v32  ;;  %6598 = vpow2.f32 %v1362_v45 }
 0x2c6   : > { %v10219_v15 = vpop.eup %6594  ;;  %v10221_v35 = vunpack.c.l.b16 %v4388_v38  ;;  %v10223_v23 = vmul.f32 %v4328_v39, %v4299_v3  ;;  %v2949_v4 = vor.u32 1.1754944e-38, %v2948_v29  ;;  %v10225_v53 = vadd.f32 1.0, %v6593_v41 }
 0x2c7   : > { %v2935_v59 = vsel %vm10194_vm14, %v2934_v2, %v2930_v52  ;;  %v10230_v58 = vmul.f32 %v3055_v36, %v10002_v49  ;;  %v3069_v60 = vor.u32 1.1754944e-38, %v3068_v20  ;;  %v3193_v13 = vmul.f32 %v10219_v15, %v10154_v50 }
 0x2c8   : > { %v2945_v44 = vsel %vm10209_vm0, %v10140_v51, %v2941_v16  ;;  %vm3063_vm13 = vweird.f32 %v10158_v63  ;;  %v3081_v45 = vand.u32 2147483647, %v10190_v12  ;;  %6600 = vrcp.f32 %v10225_v53 }
 0x2c9   : > { %v6597_v49 = vpop.eup %6596  ;;  %v3061_v62 = vadd.f32 %v10158_v63, %v3060_v5  ;;  %vm10245_vm3 = vcmp.eq.f32.partialorder %v3066_v14, 8.507059e+37  ;;  %v3194_v57 = vsub.f32 1.0, %v3193_v13  ;;  %vm3197_vm4 = vweird.f32 %v10154_v50  ;;  %vm10266_vm6 = vmor %vm3062_vm1, %vm3063_vm13 }
 0x2ca   : > { %v1098_v51 = vsub.f32 0.0, %v10234_v42  ;;  %v1099_v55 = vsub.f32 0.0, %v10242_v11  ;;  %v2936_v30 = vmul.f32 %v2935_v59, %v10034_v27  ;;  %v3073_v48 = vmul.f32 %v6597_v49, %v10190_v12 }
 0x2cb   : > { %v3083_v17 = vand.u32 2147483648, %v10190_v12  ;;  %v3201_v19 = vand.u32 2147483647, %v10154_v50  ;;  %v6599_v10 = vpop.eup %6598  ;;  %v2950_v40 = vsel %vm10213_vm2, %v2949_v4, %v2945_v44  ;;  %vm3077_vm5 = vweird.f32 %v10190_v12 }
 0x2cc   : > { %v3195_v21 = vmul.f32 %v10219_v15, %v3194_v57  ;;  %v1364_v18 = vmul.f32 1.442695, %v1098_v51  ;;  %v3074_v33 = vsub.f32 1.0, %v3073_v48  ;;  %vm3078_vm7 = vweird.f32 %v6597_v49 }
 0x2cd   : > { %v10270_v1 = vadd.f32 1.0, %v6599_v10  ;;  %v1366_v37 = vmul.f32 1.442695, %v1099_v55  ;;  %v3065_v34 = vsel %vm10266_vm6, %v10158_v63, %v3061_v62  ;;  %vm10275_vm8 = vcmp.eq.f32.partialorder %v3081_v45, 8.507059e+37  ;;  %vm10289_vm10 = vmor %vm3077_vm5, %vm3078_vm7 }
 0x2ce   : > { %6602 = vpow2.f32 %v1364_v18  ;;  %v1380_v32 = vmul.f32 1.442695, %v1106_v6  ;;  %v6601_v3 = vpop.eup %6600  ;;  %v3075_v29 = vmul.f32 %v6597_v49, %v3074_v33  ;;  %v3084_v39 = vor.u32 1.1754944e-38, %v3083_v17 }
 0x2cf   : > { %vm10281_vm11 = vcmp.eq.f32.partialorder %v3201_v19, 8.507059e+37  ;;  %6604 = vrcp.f32 %v10270_v1  ;;  %v1107_v2 = vsub.f32 0.0, %v10260_v9  ;;  %v3088_v20 = vmul.f32 %v6601_v3, %v10225_v53 }
 0x2d0   : > { %v3098_v6 = vand.u32 2147483648, %v10225_v53  ;;  %v3196_v52 = vadd.f32 %v10219_v15, %v3195_v21  ;;  %vm3198_vm12 = vweird.f32 %v10219_v15  ;;  %v3076_v16 = vadd.f32 %v6597_v49, %v3075_v29 }
 0x2d1   : > { %vm3092_vm15 = vweird.f32 %v10225_v53  ;;  %v3203_v36 = vand.u32 2147483648, %v10154_v50  ;;  %6606 = vpow2.f32 %v1366_v37  ;;  %v3089_v41 = vsub.f32 1.0, %v3088_v20  ;;  %vm10308_vm1 = vmor %vm3197_vm4, %vm3198_vm12  ;;  %v10343_v37 = vpop.f32.mrf.mxu3 }
 0x2d2   : > { %vm3093_vm14 = vweird.f32 %v6601_v3  ;;  %v3096_v12 = vand.u32 2147483647, %v10225_v53  ;;  %6608 = vpow2.f32 %v1380_v32  ;;  %v3070_v25 = vsel %vm10245_vm3, %v3069_v60, %v3065_v34 }
 0x2d3   : > { %v3080_v5 = vsel %vm10289_vm10, %v6597_v49, %v3076_v16  ;;  %v1382_v4 = vmul.f32 1.442695, %v1107_v2  ;;  %v1108_v59 = vsub.f32 0.0, %v10300_v56  ;;  %v3090_v45 = vmul.f32 %v6601_v3, %v3089_v41  ;;  %vm10324_vm0 = vmor %vm3092_vm15, %vm3093_vm14  ;;  %v10359_v2 = vpop.f32.mrf.mxu1 }
 0x2d4   : > { %v6603_v13 = vpop.eup %6602  ;;  %v3085_v44 = vsel %vm10275_vm8, %v3084_v39, %v3080_v5  ;;  %v3099_v62 = vor.u32 1.1754944e-38, %v3098_v6  ;;  %v3200_v60 = vsel %vm10308_vm1, %v10219_v15, %v3196_v52  ;;  %vm3097_vm2 = vcmp.eq.f32.partialorder %v3096_v12, 8.507059e+37 }
 0x2d5   : > { %v10318_v49 = vpop.eup %6604  ;;  %v3086_v50 = vmul.f32 %v3085_v44, %v10094_v7  ;;  %v10328_v57 = vadd.f32 1.0, %v6603_v13  ;;  %6610 = vpow2.f32 %v1382_v4  ;;  %v1384_v51 = vmul.f32 1.442695, %v1108_v59 }
 0x2d6   : > { %v3091_v55 = vadd.f32 %v6601_v3, %v3090_v45  ;;  %v3204_v48 = vor.u32 1.1754944e-38, %v3203_v36  ;;  %v3208_v15 = vmul.f32 %v10318_v49, %v10270_v1  ;;  %v2951_v7 = vmul.f32 %v2950_v40, %v10052_v8 }
 0x2d7   : > { %v6607_v17 = vpop.eup %6606  ;;  %v3071_v19 = vmul.f32 %v3070_v25, %v10028_v0  ;;  %v10334_v53 = vadd.f32 %v3086_v50, %v2936_v30  ;;  %6612 = vrcp.f32 %v10328_v57  ;;  %v1109_v0 = vsub.f32 0.0, %v10343_v37  ;;  %v10348_v30 = vpop.f32.mrf.mxu0 }
 0x2d8   : > { %v6609_v10 = vpop.eup %6608  ;;  %v3095_v21 = vsel %vm10324_vm0, %v6601_v3, %v3091_v55  ;;  %v3205_v18 = vsel %vm10281_vm11, %v3204_v48, %v3200_v60  ;;  %v3209_v27 = vsub.f32 1.0, %v3208_v15  ;;  %v10341_v33 = vadd.f32 1.0, %v6607_v17 }
 0x2d9   : > { %v3100_v34 = vsel %vm3097_vm2, %v3099_v62, %v3095_v21  ;;  %v10345_v8 = vadd.f32 1.0, %v6609_v10  ;;  %6614 = vpow2.f32 %v1384_v51  ;;  %v4214_v40 = vadd.f32 %v10230_v58, %v10130_v24 }
 0x2da   : > { %v3101_v38 = vmul.f32 %v3100_v34, %v10138_v22  ;;  %v3210_v32 = vmul.f32 %v10318_v49, %v3209_v27  ;;  %6616 = vrcp.f32 %v10341_v33  ;;  %v3206_v29 = vmul.f32 %v3205_v18, %v10061_v54 }
 0x2db   : > { %v6611_v3 = vpop.eup %6610  ;;  %v3216_v39 = vand.u32 2147483647, %v10270_v1  ;;  %v3218_v31 = vand.u32 2147483648, %v10270_v1  ;;  %6618 = vrcp.f32 %v10345_v8  ;;  %v10362_v63 = vadd.f32 %v3071_v19, %v10143_v61 }
 0x2dc   : > { %v10364_v24 = vadd.f32 %v3101_v38, %v2951_v7  ;;  %v3233_v22 = vand.u32 2147483648, %v10328_v57  ;;  %v1116_v58 = vsub.f32 0.0, %v10348_v30  ;;  %v3211_v54 = vadd.f32 %v10318_v49, %v3210_v32 }
 0x2dd   : > { %v10368_v20 = vpop.eup %6612  ;;  %vm3213_vm13 = vweird.f32 %v10318_v49  ;;  %v10372_v6 = vadd.f32 1.0, %v6611_v3  ;;  %v1386_v52 = vmul.f32 1.442695, %v1109_v0  ;;  %vm3212_vm3 = vweird.f32 %v10270_v1 }
 0x2de   : > { %v3223_v61 = vmul.f32 %v10368_v20, %v10328_v57  ;;  %v3231_v16 = vand.u32 2147483647, %v10328_v57  ;;  %v1117_v36 = vsub.f32 0.0, %v10359_v2  ;;  %v10379_v12 = vadd.f32 %v4214_v40, %v3206_v29  ;;  %vm10388_vm5 = vmor %vm3212_vm3, %vm3213_vm13 }
 0x2df   : > { %v6615_v41 = vpop.eup %6614  ;;  %vm10381_vm4 = vcmp.eq.f32.partialorder %v3216_v39, 8.507059e+37  ;;  %v3219_v5 = vor.u32 1.1754944e-38, %v3218_v31  ;;  %6620 = vrcp.f32 %v10372_v6  ;;  %vm3227_vm6 = vweird.f32 %v10328_v57 }
 0x2e0   : > { %v10386_v14 = vpop.eup %6616  ;;  %v3224_v4 = vsub.f32 1.0, %v3223_v61  ;;  %v3234_v59 = vor.u32 1.1754944e-38, %v3233_v22  ;;  %v1400_v13 = vmul.f32 1.442695, %v1116_v58  ;;  %v3215_v45 = vsel %vm10388_vm5, %v10318_v49, %v3211_v54  ;;  %v10456_v61 = vpop.f32.mrf.mxu2 }
 0x2e1   : > { %v10393_v44 = vpop.eup %6618  ;;  %v3238_v62 = vmul.f32 %v10386_v14, %v10341_v33  ;;  %v10400_v60 = vadd.f32 1.0, %v6615_v41  ;;  %6622 = vpow2.f32 %v1386_v52  ;;  %vm10403_vm7 = vcmp.eq.f32.partialorder %v3231_v16, 8.507059e+37 }
 0x2e2   : > { %v3225_v50 = vmul.f32 %v10368_v20, %v3224_v4  ;;  %vm3242_vm8 = vweird.f32 %v10341_v33  ;;  %v3246_v51 = vand.u32 2147483647, %v10341_v33  ;;  %v3343_v55 = vmul.f32 %v10393_v44, %v10345_v8 }
 0x2e3   : > { %v3239_v49 = vsub.f32 1.0, %v3238_v62  ;;  %v3248_v48 = vand.u32 2147483648, %v10341_v33  ;;  %v3351_v15 = vand.u32 2147483647, %v10345_v8  ;;  %6624 = vrcp.f32 %v10400_v60 }
 0x2e4   : > { %v3220_v17 = vsel %vm10381_vm4, %v3219_v5, %v3215_v45  ;;  %vm3228_vm11 = vweird.f32 %v10368_v20  ;;  %v3344_v7 = vsub.f32 1.0, %v3343_v55  ;;  %v3353_v19 = vand.u32 2147483648, %v10345_v8 }
 0x2e5   : > { %v10418_v10 = vpop.eup %6620  ;;  %v3240_v21 = vmul.f32 %v10386_v14, %v3239_v49  ;;  %vm3243_vm10 = vweird.f32 %v10386_v14  ;;  %6626 = vpow2.f32 %v1400_v13  ;;  %v1402_v18 = vmul.f32 1.442695, %v1117_v36  ;;  %vm10430_vm15 = vmor %vm3227_vm6, %vm3228_vm11 }
 0x2e6   : > { %v3226_v27 = vadd.f32 %v10368_v20, %v3225_v50  ;;  %v3345_v34 = vmul.f32 %v10393_v44, %v3344_v7  ;;  %vm3347_vm12 = vweird.f32 %v10345_v8  ;;  %v3358_v0 = vmul.f32 %v10418_v10, %v10372_v6  ;;  %vm10441_vm1 = vmor %vm3242_vm8, %vm3243_vm10 }
 0x2e7   : > { %v6623_v40 = vpop.eup %6622  ;;  %v3221_v38 = vmul.f32 %v3220_v17, %v10096_v47  ;;  %v3241_v3 = vadd.f32 %v10386_v14, %v3240_v21  ;;  %vm10435_vm14 = vcmp.eq.f32.partialorder %v3246_v51, 8.507059e+37  ;;  %v3249_v39 = vor.u32 1.1754944e-38, %v3248_v48  ;;  %v10494_v51 = vpop.f32.mrf.mxu3 }
 0x2e8   : > { %v3346_v47 = vadd.f32 %v10393_v44, %v3345_v34  ;;  %vm3348_vm0 = vweird.f32 %v10393_v44  ;;  %v3359_v57 = vsub.f32 1.0, %v3358_v0  ;;  %v10447_v22 = vadd.f32 1.0, %v6623_v40 }
 0x2e9   : > { %v10449_v58 = vpop.eup %6624  ;;  %vm10451_vm2 = vcmp.eq.f32.partialorder %v3351_v15, 8.507059e+37  ;;  %v3354_v52 = vor.u32 1.1754944e-38, %v3353_v19  ;;  %v3366_v33 = vand.u32 2147483647, %v10372_v6  ;;  %6628 = vpow2.f32 %v1402_v18  ;;  %vm10474_vm3 = vmor %vm3347_vm12, %vm3348_vm0  ;;  %v10511_v19 = vpop.f32.mrf.mxu0 }
 0x2ea   : > { %v3230_v16 = vsel %vm10430_vm15, %v10368_v20, %v3226_v27  ;;  %v3360_v36 = vmul.f32 %v10418_v10, %v3359_v57  ;;  %vm3362_vm13 = vweird.f32 %v10372_v6  ;;  %v1118_v41 = vsub.f32 0.0, %v10456_v61 }
 0x2eb   : > { %v6627_v25 = vpop.eup %6626  ;;  %v10465_v5 = vadd.f32 %v10362_v63, %v3221_v38  ;;  %v3245_v1 = vsel %vm10441_vm1, %v10386_v14, %v3241_v3  ;;  %v3368_v4 = vand.u32 2147483648, %v10372_v6  ;;  %v3373_v13 = vmul.f32 %v10449_v58, %v10400_v60 }
 0x2ec   : > { %v3350_v63 = vsel %vm10474_vm3, %v10393_v44, %v3346_v47  ;;  %v3361_v45 = vadd.f32 %v10418_v10, %v3360_v36  ;;  %vm3363_vm4 = vweird.f32 %v10418_v10  ;;  %6630 = vrcp.f32 %v10447_v22 }
 0x2ed   : > { %v3235_v8 = vsel %vm10403_vm7, %v3234_v59, %v3230_v16  ;;  %vm10489_vm5 = vcmp.eq.f32.partialorder %v3366_v33, 8.507059e+37  ;;  %v3374_v62 = vsub.f32 1.0, %v3373_v13  ;;  %v3381_v50 = vand.u32 2147483647, %v10400_v60  ;;  %vm10505_vm6 = vmor %vm3362_vm13, %vm3363_vm4 }
 0x2ee   : > { %v3250_v44 = vsel %vm10435_vm14, %v3249_v39, %v3245_v1  ;;  %v10498_v55 = vadd.f32 1.0, %v6627_v25  ;;  %v1404_v49 = vmul.f32 1.442695, %v1118_v41  ;;  %v1119_v48 = vsub.f32 0.0, %v10494_v51  ;;  %v10536_v39 = vpop.f32.mrf.mxu1 }
 0x2ef   : > { %v6629_v15 = vpop.eup %6628  ;;  %v3355_v59 = vsel %vm10451_vm2, %v3354_v52, %v3350_v63  ;;  %v3369_v17 = vor.u32 1.1754944e-38, %v3368_v4  ;;  %vm3377_vm7 = vweird.f32 %v10400_v60  ;;  %v3383_v7 = vand.u32 2147483648, %v10400_v60  ;;  %v10569_v4 = vpop.f32.mrf.mxu2 }
 0x2f0   : > { %v3236_v21 = vmul.f32 %v3235_v8, %v10234_v42  ;;  %v3365_v18 = vsel %vm10505_vm6, %v10418_v10, %v3361_v45  ;;  %v3375_v27 = vmul.f32 %v10449_v58, %v3374_v62  ;;  %6632 = vrcp.f32 %v10498_v55 }
 0x2f1   : > { %v3251_v6 = vmul.f32 %v3250_v44, %v10242_v11  ;;  %vm10520_vm8 = vcmp.eq.f32.partialorder %v3381_v50, 8.507059e+37  ;;  %v10524_v0 = vadd.f32 1.0, %v6629_v15  ;;  %6634 = vpow2.f32 %v1404_v49 }
 0x2f2   : > { %v10526_v40 = vpop.eup %6630  ;;  %v3356_v42 = vmul.f32 %v3355_v59, %v10156_v43  ;;  %vm3378_vm11 = vweird.f32 %v10449_v58  ;;  %v1406_v10 = vmul.f32 1.442695, %v1119_v48  ;;  %v1126_v38 = vsub.f32 0.0, %v10511_v19 }
 0x2f3   : > { %v3370_v32 = vsel %vm10489_vm5, %v3369_v17, %v3365_v18  ;;  %v3384_v11 = vor.u32 1.1754944e-38, %v3383_v7  ;;  %v3388_v3 = vmul.f32 %v10526_v40, %v10447_v22  ;;  %v3396_v29 = vand.u32 2147483647, %v10447_v22  ;;  %vm10549_vm12 = vmor %vm3377_vm7, %vm3378_vm11 }
 0x2f4   : > { %v10539_v31 = vadd.f32 %v10334_v53, %v3236_v21  ;;  %v3376_v43 = vadd.f32 %v10449_v58, %v3375_v27  ;;  %vm3392_vm10 = vweird.f32 %v10447_v22  ;;  %6636 = vrcp.f32 %v10524_v0 }
 0x2f5   : > { %v10545_v47 = vadd.f32 %v10364_v24, %v3251_v6  ;;  %v3389_v54 = vsub.f32 1.0, %v3388_v3  ;;  %v3398_v52 = vand.u32 2147483648, %v10447_v22  ;;  %6638 = vpow2.f32 %v1406_v10 }
 0x2f6   : > { %v10554_v53 = vpop.eup %6632  ;;  %v10557_v33 = vadd.f32 %v10379_v12, %v3356_v42  ;;  %v3371_v16 = vmul.f32 %v3370_v32, %v10260_v9  ;;  %v1420_v36 = vmul.f32 1.442695, %v1126_v38  ;;  %v1127_v24 = vsub.f32 0.0, %v10536_v39  ;;  %v10610_v42 = vpop.f32.mrf.mxu3 }
 0x2f7   : > { %v6635_v41 = vpop.eup %6634  ;;  %v3390_v60 = vmul.f32 %v10526_v40, %v3389_v54  ;;  %vm10562_vm15 = vcmp.eq.f32.partialorder %v3396_v29, 8.507059e+37  ;;  %v3493_v1 = vmul.f32 %v10554_v53, %v10498_v55  ;;  %v3501_v20 = vand.u32 2147483647, %v10498_v55 }
 0x2f8   : > { %v3380_v9 = vsel %vm10549_vm12, %v10449_v58, %v3376_v43  ;;  %v10574_v12 = vadd.f32 1.0, %v6635_v41  ;;  %6640 = vpow2.f32 %v1420_v36  ;;  %v1128_v13 = vsub.f32 0.0, %v10569_v4  ;;  %v10727_v43 = vpop.f32.mrf.mxu2 }
 0x2f9   : > { %vm3393_vm14 = vweird.f32 %v10526_v40  ;;  %v3399_v63 = vor.u32 1.1754944e-38, %v3398_v52  ;;  %v3494_v45 = vsub.f32 1.0, %v3493_v1  ;;  %v1422_v8 = vmul.f32 1.442695, %v1127_v24 }
 0x2fa   : > { %v10578_v14 = vpop.eup %6636  ;;  %v10581_v62 = vadd.f32 %v10465_v5, %v3371_v16  ;;  %vm3497_vm1 = vweird.f32 %v10498_v55  ;;  %v3503_v50 = vand.u32 2147483648, %v10498_v55  ;;  %6642 = vrcp.f32 %v10574_v12  ;;  %vm10594_vm0 = vmor %vm3392_vm10, %vm3393_vm14 }
 0x2fb   : > { %v6639_v58 = vpop.eup %6638  ;;  %v3385_v44 = vsel %vm10520_vm8, %v3384_v11, %v3380_v9  ;;  %v3391_v49 = vadd.f32 %v10526_v40, %v3390_v60  ;;  %v3495_v48 = vmul.f32 %v10554_v53, %v3494_v45  ;;  %v3508_v15 = vmul.f32 %v10578_v14, %v10524_v0 }
 0x2fc   : > { %vm3498_vm2 = vweird.f32 %v10554_v53  ;;  %vm10599_vm13 = vcmp.eq.f32.partialorder %v3501_v20, 8.507059e+37  ;;  %v10603_v46 = vadd.f32 1.0, %v6639_v58  ;;  %v1424_v17 = vmul.f32 1.442695, %v1128_v13 }
 0x2fd   : > { %v3496_v7 = vadd.f32 %v10554_v53, %v3495_v48  ;;  %v3509_v21 = vsub.f32 1.0, %v3508_v15  ;;  %v3516_v18 = vand.u32 2147483647, %v10524_v0  ;;  %6644 = vpow2.f32 %v1422_v8  ;;  %vm10619_vm3 = vmor %vm3497_vm1, %vm3498_vm2  ;;  %v10672_v8 = vpop.f32.mrf.mxu0 }
 0x2fe   : > { %v6641_v22 = vpop.eup %6640  ;;  %v3386_v27 = vmul.f32 %v3385_v44, %v10300_v56  ;;  %v3504_v6 = vor.u32 1.1754944e-38, %v3503_v50  ;;  %v3518_v34 = vand.u32 2147483648, %v10524_v0  ;;  %6646 = vrcp.f32 %v10603_v46 }
 0x2ff   : > { %v3395_v10 = vsel %vm10594_vm0, %v10526_v40, %v3391_v49  ;;  %v3510_v56 = vmul.f32 %v10578_v14, %v3509_v21  ;;  %v10624_v32 = vadd.f32 1.0, %v6641_v22  ;;  %v1129_v11 = vsub.f32 0.0, %v10610_v42  ;;  %v10701_v22 = vpop.f32.mrf.mxu1 }
 0x300   : > { %v10627_v3 = vpop.eup %6642  ;;  %v3500_v40 = vsel %vm10619_vm3, %v10554_v53, %v3496_v7  ;;  %vm3513_vm4 = vweird.f32 %v10578_v14  ;;  %v3531_v55 = vand.u32 2147483647, %v10574_v12  ;;  %6648 = vpow2.f32 %v1424_v17 }
 0x301   : > { %v3511_v29 = vadd.f32 %v10578_v14, %v3510_v56  ;;  %vm3512_vm5 = vweird.f32 %v10524_v0  ;;  %vm10636_vm6 = vcmp.eq.f32.partialorder %v3516_v18, 8.507059e+37  ;;  %v3523_v57 = vmul.f32 %v10627_v3, %v10574_v12 }
 0x302   : > { %v10643_v54 = vadd.f32 %v10539_v31, %v3386_v27  ;;  %v3400_v52 = vsel %vm10562_vm15, %v3399_v63, %v3395_v10  ;;  %v3519_v53 = vor.u32 1.1754944e-38, %v3518_v34  ;;  %6650 = vrcp.f32 %v10624_v32  ;;  %vm10650_vm7 = vmor %vm3512_vm5, %vm3513_vm4 }
 0x303   : > { %v6645_v16 = vpop.eup %6644  ;;  %v3505_v0 = vsel %vm10599_vm13, %v3504_v6, %v3500_v40  ;;  %v3524_v24 = vsub.f32 1.0, %v3523_v57  ;;  %vm3527_vm8 = vweird.f32 %v10574_v12  ;;  %v3533_v31 = vand.u32 2147483648, %v10574_v12 }
 0x304   : > { %v10656_v41 = vpop.eup %6646  ;;  %v3515_v60 = vsel %vm10650_vm7, %v10578_v14, %v3511_v29  ;;  %vm10661_vm11 = vcmp.eq.f32.partialorder %v3531_v55, 8.507059e+37  ;;  %v10665_v1 = vadd.f32 1.0, %v6645_v16  ;;  %v1426_v20 = vmul.f32 1.442695, %v1129_v11 }
 0x305   : > { %v3401_v9 = vmul.f32 %v3400_v52, %v10343_v37  ;;  %v3525_v13 = vmul.f32 %v10627_v3, %v3524_v24  ;;  %v3538_v63 = vmul.f32 %v10656_v41, %v10603_v46  ;;  %v3548_v45 = vand.u32 2147483648, %v10603_v46 }
 0x306   : > { %v6649_v50 = vpop.eup %6648  ;;  %v3506_v14 = vmul.f32 %v3505_v0, %v10348_v30  ;;  %vm3528_vm10 = vweird.f32 %v10627_v3  ;;  %v3546_v58 = vand.u32 2147483647, %v10603_v46  ;;  %6652 = vrcp.f32 %v10665_v1 }
 0x307   : > { %v3520_v37 = vsel %vm10636_vm6, %v3519_v53, %v3515_v60  ;;  %v3539_v44 = vsub.f32 1.0, %v3538_v63  ;;  %v3653_v49 = vand.u32 2147483648, %v10624_v32  ;;  %v10681_v48 = vadd.f32 1.0, %v6649_v50  ;;  %vm10692_vm12 = vmor %vm3527_vm8, %vm3528_vm10  ;;  %v10743_v60 = vpop.f32.mrf.mxu3  ;;  %v10758_v63 = vpop.f32.mrf.mxu0 }
 0x308   : > { %v10683_v15 = vpop.eup %6650  ;;  %v3526_v5 = vadd.f32 %v10627_v3, %v3525_v13  ;;  %v3534_v59 = vor.u32 1.1754944e-38, %v3533_v31  ;;  %6654 = vpow2.f32 %v1426_v20  ;;  %v1136_v30 = vsub.f32 0.0, %v10672_v8  ;;  %v10783_v7 = vpop.f32.mrf.mxu1 }
 0x309   : > { %v10688_v17 = vadd.f32 %v10545_v47, %v3401_v9  ;;  %vm3542_vm15 = vweird.f32 %v10603_v46  ;;  %v10697_v21 = vor.u32 1.1754944e-38, %v3548_v45  ;;  %v3643_v18 = vmul.f32 %v10683_v15, %v10624_v32 }
 0x30a   : > { %v3521_v27 = vmul.f32 %v3520_v37, %v10359_v2  ;;  %vm3647_vm14 = vweird.f32 %v10624_v32  ;;  %v3651_v47 = vand.u32 2147483647, %v10624_v32  ;;  %6656 = vrcp.f32 %v10681_v48 }
 0x30b   : > { %v10708_v12 = vadd.f32 %v10557_v33, %v3506_v14  ;;  %v3540_v6 = vmul.f32 %v10656_v41, %v3539_v44  ;;  %vm10711_vm1 = vcmp.eq.f32.partialorder %v3546_v58, 8.507059e+37  ;;  %v3644_v10 = vsub.f32 1.0, %v3643_v18 }
 0x30c   : > { %v3654_v38 = vor.u32 1.1754944e-38, %v3653_v49  ;;  %v10715_v56 = vpop.eup %6652  ;;  %v3530_v2 = vsel %vm10692_vm12, %v10627_v3, %v3526_v5  ;;  %vm3543_vm0 = vweird.f32 %v10656_v41  ;;  %v1440_v11 = vmul.f32 1.442695, %v1136_v30 }
 0x30d   : > { %v1137_v33 = vsub.f32 0.0, %v10701_v22  ;;  %v3645_v40 = vmul.f32 %v10683_v15, %v3644_v10  ;;  %v3658_v55 = vmul.f32 %v10715_v56, %v10665_v1  ;;  %vm3662_vm2 = vweird.f32 %v10665_v1  ;;  %vm10751_vm3 = vmor %vm3542_vm15, %vm3543_vm0 }
 0x30e   : > { %v3666_v29 = vand.u32 2147483647, %v10665_v1  ;;  %v6655_v57 = vpop.eup %6654  ;;  %v10730_v52 = vadd.f32 %v10581_v62, %v3521_v27  ;;  %vm10732_vm13 = vcmp.eq.f32.partialorder %v3651_v47, 8.507059e+37  ;;  %v3668_v53 = vand.u32 2147483648, %v10665_v1 }
 0x30f   : > { %6658 = vpow2.f32 %v1440_v11  ;;  %v1138_v16 = vsub.f32 0.0, %v10727_v43  ;;  %v3535_v0 = vsel %vm10661_vm11, %v3534_v59, %v3530_v2  ;;  %v3541_v36 = vadd.f32 %v10656_v41, %v3540_v6 }
 0x310   : > { %v3659_v24 = vsub.f32 1.0, %v3658_v55  ;;  %v10741_v31 = vadd.f32 1.0, %v6655_v57  ;;  %v10745_v62 = vpop.eup %6656  ;;  %v3646_v25 = vadd.f32 %v10683_v15, %v3645_v40  ;;  %vm3648_vm4 = vweird.f32 %v10683_v15 }
 0x311   : > { %v1442_v9 = vmul.f32 1.442695, %v1137_v33  ;;  %v1139_v13 = vsub.f32 0.0, %v10743_v60  ;;  %v3673_v50 = vmul.f32 %v10745_v62, %v10681_v48  ;;  %vm3677_vm5 = vweird.f32 %v10681_v48  ;;  %vm10773_vm7 = vmor %vm3647_vm14, %vm3648_vm4 }
 0x312   : > { %v3660_v45 = vmul.f32 %v10715_v56, %v3659_v24  ;;  %v3681_v46 = vand.u32 2147483647, %v10681_v48  ;;  %v3536_v14 = vmul.f32 %v3535_v0, %v10456_v61  ;;  %vm3663_vm6 = vweird.f32 %v10715_v56 }
 0x313   : > { %6660 = vrcp.f32 %v10741_v31  ;;  %v1444_v58 = vmul.f32 1.442695, %v1138_v16  ;;  %v3545_v37 = vsel %vm10751_vm3, %v10656_v41, %v3541_v36  ;;  %v3674_v5 = vsub.f32 1.0, %v3673_v50  ;;  %vm10787_vm11 = vmor %vm3662_vm2, %vm3663_vm6 }
 0x314   : > { %v3661_v49 = vadd.f32 %v10715_v56, %v3660_v45  ;;  %v1146_v61 = vsub.f32 0.0, %v10758_v63  ;;  %v3650_v30 = vsel %vm10773_vm7, %v10683_v15, %v3646_v25  ;;  %vm3678_vm8 = vweird.f32 %v10745_v62 }
 0x315   : > { %v6659_v59 = vpop.eup %6658  ;;  %6662 = vpow2.f32 %v1442_v9  ;;  %v1446_v41 = vmul.f32 1.442695, %v1139_v13  ;;  %vm10791_vm10 = vcmp.eq.f32.partialorder %v3666_v29, 8.507059e+37  ;;  %v3669_v27 = vor.u32 1.1754944e-38, %v3668_v53  ;;  %vm10812_vm12 = vmor %vm3677_vm5, %vm3678_vm8 }
 0x316   : > { %v3675_v47 = vmul.f32 %v10745_v62, %v3674_v5  ;;  %v3683_v15 = vand.u32 2147483648, %v10681_v48  ;;  %v3550_v6 = vsel %vm10711_vm1, %v10697_v21, %v3545_v37  ;;  %v3665_v1 = vsel %vm10787_vm11, %v10715_v56, %v3661_v49  ;;  %v10859_v37 = vpop.f32.mrf.mxu2  ;;  %v6064_v49 = vld [vmem:[#allocation5 + $0x130] sm:$0xff] }
 0x317   : > { %v10803_v10 = vadd.f32 1.0, %v6659_v59  ;;  %6664 = vpow2.f32 %v1444_v58  ;;  %v3655_v2 = vsel %vm10732_vm13, %v3654_v38, %v3650_v30  ;;  %v1147_v21 = vsub.f32 0.0, %v10783_v7 }
 0x318   : > { %v3676_v11 = vadd.f32 %v10745_v62, %v3675_v47  ;;  %6666 = vpow2.f32 %v1446_v41  ;;  %v4243_v56 = vadd.f32 %v10643_v54, %v3536_v14  ;;  %vm10820_vm15 = vcmp.eq.f32.partialorder %v3681_v46, 8.507059e+37  ;;  %v10883_v41 = vpop.f32.mrf.mxu1 }
 0x319   : > { %v10817_v34 = vpop.eup %6660  ;;  %6668 = vrcp.f32 %v10803_v10  ;;  %v1460_v38 = vmul.f32 1.442695, %v1146_v61  ;;  %v3551_v48 = vmul.f32 %v3550_v6, %v10494_v51  ;;  %v3670_v55 = vsel %vm10791_vm10, %v3669_v27, %v3665_v1 }
 0x31a   : > { %v3684_v29 = vor.u32 1.1754944e-38, %v3683_v15  ;;  %v3688_v57 = vmul.f32 %v10817_v34, %v10741_v31  ;;  %v3656_v53 = vmul.f32 %v3655_v2, %v10511_v19  ;;  %v3680_v54 = vsel %vm10812_vm12, %v10745_v62, %v3676_v11 }
 0x31b   : > { %v6663_v3 = vpop.eup %6662  ;;  %vm3692_vm14 = vweird.f32 %v10741_v31  ;;  %v3696_v16 = vand.u32 2147483647, %v10741_v31  ;;  %v3698_v51 = vand.u32 2147483648, %v10741_v31  ;;  %v1462_v24 = vmul.f32 1.442695, %v1147_v21 }
 0x31c   : > { %v3689_v0 = vsub.f32 1.0, %v3688_v57  ;;  %v10837_v36 = vadd.f32 1.0, %v6663_v3  ;;  %v3671_v25 = vmul.f32 %v3670_v55, %v10536_v39  ;;  %v3801_v9 = vand.u32 2147483647, %v10803_v10  ;;  %v6065_v57 = vld [vmem:[#allocation5 + $0x138] sm:$0xff] }
 0x31d   : > { %v6665_v20 = vpop.eup %6664  ;;  %v3803_v19 = vand.u32 2147483648, %v10803_v10  ;;  %6670 = vpow2.f32 %v1460_v38  ;;  %v3685_v62 = vsel %vm10820_vm15, %v3684_v29, %v3680_v54  ;;  %vm3693_vm1 = vweird.f32 %v10817_v34  ;;  %v6073_v3 = vld [vmem:[#allocation5 + $0x178] sm:$0xff]  ;;  %5175 = vmatpush.bf16.msra.mxu2 %v6065_v57  ;;  %v11004_v54 = vld.sshfl [vmem:[#allocation1 + $0x20] sm:$0xff pattern:$0x73625140] }
 0x31e   : > { %v6667_v13 = vpop.eup %6666  ;;  %v3690_v45 = vmul.f32 %v10817_v34, %v3689_v0  ;;  %6672 = vrcp.f32 %v10837_v36  ;;  %v10850_v46 = vadd.f32 %v10688_v17, %v3551_v48  ;;  %v10853_v39 = vadd.f32 %v10708_v12, %v3656_v53  ;;  %v10868_v17 = vpop.f32.mrf.mxu3  ;;  %vm10877_vm2 = vmor %vm3692_vm14, %vm3693_vm1  ;;  %5188 = vmatpush.bf16.msra.mxu3 %v6073_v3 }
 0x31f   : > { %v10847_v50 = vpop.eup %6668  ;;  %v10855_v14 = vadd.f32 1.0, %v6665_v20  ;;  %v10857_v58 = vadd.f32 1.0, %v6667_v13  ;;  %vm10862_vm0 = vcmp.eq.f32.partialorder %v3696_v16, 8.507059e+37  ;;  %6674 = vpow2.f32 %v1462_v24  ;;  %v10870_v12 = vpop.f32.mrf.mxu0 }
 0x320   : > { %v3691_v44 = vadd.f32 %v10817_v34, %v3690_v45  ;;  %v3793_v5 = vmul.f32 %v10847_v50, %v10803_v10  ;;  %v3686_v61 = vmul.f32 %v3685_v62, %v10569_v4  ;;  %v3699_v30 = vor.u32 1.1754944e-38, %v3698_v51  ;;  %v10988_v3 = vpop.f32.mrf.mxu1 }
 0x321   : > { %vm3797_vm13 = vweird.f32 %v10803_v10  ;;  %6676 = vrcp.f32 %v10855_v14  ;;  %v10886_v32 = vadd.f32 %v10730_v52, %v3671_v25  ;;  %vm10888_vm3 = vcmp.eq.f32.partialorder %v3801_v9, 8.507059e+37  ;;  %5176 = vmatpush.bf16.msra.mxu2 %v6064_v49 }
 0x322   : > { %v3794_v18 = vsub.f32 1.0, %v3793_v5  ;;  %v3804_v31 = vor.u32 1.1754944e-38, %v3803_v19  ;;  %6678 = vrcp.f32 %v10857_v58  ;;  %v1148_v47 = vsub.f32 0.0, %v10859_v37  ;;  %v6072_v5 = vld [vmem:[#allocation5 + $0x170] sm:$0xff] }
 0x323   : > { %v6671_v27 = vpop.eup %6670  ;;  %v1149_v15 = vsub.f32 0.0, %v10868_v17  ;;  %v1000_v6 = vsub.f32 0.0, %v10870_v12  ;;  %v3695_v52 = vsel %vm10877_vm2, %v10817_v34, %v3691_v44  ;;  %vm3798_vm4 = vweird.f32 %v10847_v50  ;;  %5189 = vmatpush.bf16.msra.mxu3 %v6072_v5  ;;  %v6062_v5 = vld [vmem:[#allocation5 + $0x120] sm:$0xff] }
 0x324   : > { %v10896_v1 = vpop.eup %6672  ;;  %v3795_v2 = vmul.f32 %v10847_v50, %v3794_v18  ;;  %v1001_v11 = vsub.f32 0.0, %v10883_v41  ;;  %v10904_v33 = vadd.f32 %v4243_v56, %v3686_v61  ;;  %v3816_v40 = vand.u32 2147483647, %v10837_v36  ;;  %vm10923_vm6 = vmor %vm3797_vm13, %vm3798_vm4 }
 0x325   : > { %v3808_v21 = vmul.f32 %v10896_v1, %v10837_v36  ;;  %v3818_v38 = vand.u32 2147483648, %v10837_v36  ;;  %v6675_v48 = vpop.eup %6674  ;;  %vm3812_vm5 = vweird.f32 %v10837_v36  ;;  %v3831_v34 = vand.u32 2147483647, %v10855_v14 }
 0x326   : > { %v3796_v55 = vadd.f32 %v10847_v50, %v3795_v2  ;;  %v10913_v29 = vadd.f32 1.0, %v6671_v27  ;;  %v3700_v53 = vsel %vm10862_vm0, %v3699_v30, %v3695_v52  ;;  %v3833_v0 = vand.u32 2147483648, %v10855_v14 }
 0x327   : > { %v10915_v56 = vpop.eup %6676  ;;  %v3809_v16 = vsub.f32 1.0, %v3808_v21  ;;  %v3846_v51 = vand.u32 2147483647, %v10857_v58  ;;  %v10935_v25 = vadd.f32 1.0, %v6675_v48  ;;  %vm10940_vm7 = vcmp.eq.f32.partialorder %v3816_v40, 8.507059e+37 }
 0x328   : > { %v3800_v24 = vsel %vm10923_vm6, %v10847_v50, %v3796_v55  ;;  %v3823_v20 = vmul.f32 %v10915_v56, %v10855_v14  ;;  %6680 = vrcp.f32 %v10913_v29  ;;  %v10937_v10 = vpop.eup %6678  ;;  %v3819_v13 = vor.u32 1.1754944e-38, %v3818_v38 }
 0x329   : > { %v3810_v9 = vmul.f32 %v10896_v1, %v3809_v16  ;;  %vm3827_vm8 = vweird.f32 %v10855_v14  ;;  %vm3842_vm11 = vweird.f32 %v10857_v58  ;;  %v3701_v62 = vmul.f32 %v3700_v53, %v10610_v42 }
 0x32a   : > { %v3805_v45 = vsel %vm10888_vm3, %v3804_v31, %v3800_v24  ;;  %v3824_v50 = vsub.f32 1.0, %v3823_v20  ;;  %v3838_v44 = vmul.f32 %v10937_v10, %v10857_v58  ;;  %vm3813_vm10 = vweird.f32 %v10896_v1 }
 0x32b   : > { %v3811_v61 = vadd.f32 %v10896_v1, %v3810_v9  ;;  %vm10953_vm12 = vcmp.eq.f32.partialorder %v3831_v34, 8.507059e+37  ;;  %v3834_v30 = vor.u32 1.1754944e-38, %v3833_v0  ;;  %v3848_v42 = vand.u32 2147483648, %v10857_v58  ;;  %vm10975_vm1 = vmor %vm3812_vm5, %vm3813_vm10  ;;  %v10981_v34 = vpop.f32.mrf.mxu0  ;;  %v6063_v0 = vld [vmem:[#allocation5 + $0x128] sm:$0xff] }
 0x32c   : > { %v3825_v18 = vmul.f32 %v10915_v56, %v3824_v50  ;;  %v3839_v4 = vsub.f32 1.0, %v3838_v44  ;;  %vm10959_vm15 = vcmp.eq.f32.partialorder %v3846_v51, 8.507059e+37  ;;  %v3951_v27 = vand.u32 2147483647, %v10913_v29  ;;  %v6071_v51 = vld [vmem:[#allocation5 + $0x168] sm:$0xff]  ;;  %5177 = vmatpush.bf16.msra.mxu2 %v6063_v0 }
 0x32d   : > { %6682 = vrcp.f32 %v10935_v25  ;;  %v3806_v52 = vmul.f32 %v3805_v45, %v10672_v8  ;;  %vm3828_vm14 = vweird.f32 %v10915_v56  ;;  %v3953_v2 = vand.u32 2147483648, %v10913_v29  ;;  %5190 = vmatpush.bf16.msra.mxu3 %v6071_v51 }
 0x32e   : > { %v1464_v21 = vmul.f32 1.442695, %v1148_v47  ;;  %v6681_v40 = vpop.eup %6680  ;;  %v10969_v38 = vadd.f32 %v10850_v46, %v3701_v62  ;;  %v3840_v55 = vmul.f32 %v10937_v10, %v3839_v4  ;;  %vm3843_vm0 = vweird.f32 %v10937_v10  ;;  %vm10994_vm2 = vmor %vm3827_vm8, %vm3828_vm14 }
 0x32f   : > { %v1466_v8 = vmul.f32 1.442695, %v1149_v15  ;;  %v3815_v46 = vsel %vm10975_vm1, %v10896_v1, %v3811_v61  ;;  %v3826_v47 = vadd.f32 %v10915_v56, %v3825_v18  ;;  %v3849_v57 = vor.u32 1.1754944e-38, %v3848_v42  ;;  %vm11012_vm4 = vmor %vm3842_vm11, %vm3843_vm0  ;;  %v6070_v61 = vld [vmem:[#allocation5 + $0x160] sm:$0xff] }
 0x330   : > { %v3943_v36 = vmul.f32 %v6681_v40, %v10913_v29  ;;  %v3841_v15 = vadd.f32 %v10937_v10, %v3840_v55  ;;  %vm3947_vm13 = vweird.f32 %v10913_v29  ;;  %vm11000_vm3 = vcmp.eq.f32.partialorder %v3951_v27, 8.507059e+37  ;;  %5178 = vmatpush.bf16.msra.mxu2 %v6062_v5 }
 0x331   : > { %v4336_v16 = vrot.slane %v11004_v54, 1  ;;  %v4219_v14 = vadd.f32 %v10853_v39, %v3806_v52  ;;  %v3954_v9 = vor.u32 1.1754944e-38, %v3953_v2  ;;  %6684 = vpow2.f32 %v1464_v21  ;;  %5191 = vmatpush.bf16.msra.mxu3 %v6070_v61  ;;  %v11095_v61 = vld.sshfl [vmem:[#allocation1 + $0x30] sm:$0xff pattern:$0x73625140] }
 0x332   : > { %v3944_v20 = vsub.f32 1.0, %v3943_v36  ;;  %v3820_v45 = vsel %vm10940_vm7, %v3819_v13, %v3815_v46  ;;  %v3966_v50 = vand.u32 2147483647, %v10935_v25  ;;  %6686 = vpow2.f32 %v1466_v8  ;;  %v6069_v36 = vld [vmem:[#allocation5 + $0x158] sm:$0xff] }
 0x333   : > { %v11016_v62 = vpop.eup %6682  ;;  %v1168_v39 = vmul.f32 1.442695, %v1000_v6  ;;  %v3830_v58 = vsel %vm10994_vm2, %v10915_v56, %v3826_v47  ;;  %vm3948_vm5 = vweird.f32 %v6681_v40  ;;  %v3845_v19 = vsel %vm11012_vm4, %v10937_v10, %v3841_v15  ;;  %v11053_v55 = vpop.f32.mrf.mxu0  ;;  %v11067_v15 = vld.sshfl [vmem:[#allocation1 + $0x28] sm:$0xff pattern:$0x73625140] }
 0x334   : > { %v3945_v44 = vmul.f32 %v6681_v40, %v3944_v20  ;;  %v3958_v49 = vmul.f32 %v11016_v62, %v10935_v25  ;;  %vm3962_vm6 = vweird.f32 %v10935_v25  ;;  %v3968_v13 = vand.u32 2147483648, %v10935_v25  ;;  %vm3949_vm7 = vmor %vm3947_vm13, %vm3948_vm5  ;;  %v11060_v47 = vpop.f32.mrf.mxu1 }
 0x335   : > { %v1170_v6 = vmul.f32 1.442695, %v1001_v11  ;;  %6688 = vpow2.f32 %v1168_v39  ;;  %v1010_v18 = vsub.f32 0.0, %v10981_v34  ;;  %v3821_v4 = vmul.f32 %v3820_v45, %v10701_v22  ;;  %5192 = vmatpush.bf16.msra.mxu3 %v6069_v36  ;;  %v6060_v39 = vld [vmem:[#allocation5 + $0x110] sm:$0xff] }
 0x336   : > { %v3946_v42 = vadd.f32 %v6681_v40, %v3945_v44  ;;  %v3959_v56 = vsub.f32 1.0, %v3958_v49  ;;  %v3835_v27 = vsel %vm10953_vm12, %v3834_v30, %v3830_v58  ;;  %vm11041_vm8 = vcmp.eq.f32.partialorder %v3966_v50, 8.507059e+37  ;;  %v6068_v58 = vld [vmem:[#allocation5 + $0x150] sm:$0xff] }
 0x337   : > { %6690 = vpow2.f32 %v1170_v6  ;;  %v6685_v11 = vpop.eup %6684  ;;  %v3850_v52 = vsel %vm10959_vm15, %v3849_v57, %v3845_v19  ;;  %vm3963_vm11 = vweird.f32 %v11016_v62  ;;  %v3969_v30 = vor.u32 1.1754944e-38, %v3968_v13  ;;  %v6061_v57 = vld [vmem:[#allocation5 + $0x118] sm:$0xff] }
 0x338   : > { %v3950_v2 = vsel %vm3949_vm7, %v6681_v40, %v3946_v42  ;;  %v3960_v22 = vmul.f32 %v11016_v62, %v3959_v56  ;;  %v6687_v59 = vpop.eup %6686  ;;  %v11051_v21 = vadd.f32 1.0, %v6685_v11  ;;  %v1188_v48 = vmul.f32 1.442695, %v1010_v18  ;;  %vm3964_vm10 = vmor %vm3962_vm6, %vm3963_vm11  ;;  %5179 = vmatpush.bf16.msra.mxu2 %v6061_v57 }
 0x339   : > { %v3955_v29 = vsel %vm11000_vm3, %v3954_v9, %v3950_v2  ;;  %v3836_v8 = vmul.f32 %v3835_v27, %v10727_v43  ;;  %v11058_v46 = vadd.f32 1.0, %v6687_v59  ;;  %v3851_v53 = vmul.f32 %v3850_v52, %v10743_v60  ;;  %5193 = vmatpush.bf16.msra.mxu3 %v6068_v58 }
 0x33a   : > { %v3956_v31 = vmul.f32 %v3955_v29, %v10758_v63  ;;  %v3961_v40 = vadd.f32 %v11016_v62, %v3960_v22  ;;  %v4337_v43 = vrot.slane %v11067_v15, 1  ;;  %6692 = vrcp.f32 %v11051_v21 }
 0x33b   : > { %v1011_v63 = vsub.f32 0.0, %v10988_v3  ;;  %v6689_v1 = vpop.eup %6688  ;;  %6694 = vrcp.f32 %v11058_v46  ;;  %v1020_v60 = vsub.f32 0.0, %v11053_v55  ;;  %v4232_v24 = vadd.f32 %v10886_v32, %v3821_v4  ;;  %v11163_v10 = vpop.f32.mrf.mxu0 }
 0x33c   : > { %v4220_v0 = vadd.f32 %v4219_v14, %v3956_v31  ;;  %v3965_v51 = vsel %vm3964_vm10, %v11016_v62, %v3961_v40  ;;  %6696 = vpow2.f32 %v1188_v48  ;;  %v1021_v9 = vsub.f32 0.0, %v11060_v47  ;;  %5180 = vmatpush.bf16.msra.mxu2 %v6060_v39  ;;  %v6059_v48 = vld [vmem:[#allocation5 + $0x108] sm:$0xff]  ;;  %v6066_v39 = vld [vmem:[#allocation5 + $0x140] sm:$0xff] }
 0x33d   : > { %v6691_v25 = vpop.eup %6690  ;;  %v3970_v20 = vsel %vm11041_vm8, %v3969_v30, %v3965_v51  ;;  %v11080_v45 = vadd.f32 %v10904_v33, %v3836_v8  ;;  %v3981_v50 = vand.u32 2147483647, %v11051_v21  ;;  %v11085_v44 = vadd.f32 %v10969_v38, %v3851_v53  ;;  %v6067_v8 = vld [vmem:[#allocation5 + $0x148] sm:$0xff] }
 0x33e   : > { %v4221_v14 = vrot.slane %v4220_v0, 4  ;;  %v3971_v62 = vmul.f32 %v3970_v20, %v10783_v7  ;;  %v3983_v32 = vand.u32 2147483648, %v11051_v21  ;;  %v11088_v49 = vadd.f32 1.0, %v6689_v1  ;;  %5194 = vmatpush.bf16.msra.mxu3 %v6067_v8 }
 0x33f   : > { %v1190_v19 = vmul.f32 1.442695, %v1011_v63  ;;  %v11090_v5 = vadd.f32 1.0, %v6691_v25  ;;  %v11092_v33 = vmul.f32 1.442695, %v1020_v60  ;;  %vm3977_vm12 = vweird.f32 %v11051_v21 }
 0x340   : > { %v4222_v13 = vadd.f32 %v4221_v14, %v4220_v0  ;;  %v4233_v6 = vadd.f32 %v4232_v24, %v3971_v62  ;;  %v6693_v7 = vpop.eup %6692  ;;  %v4338_v38 = vrot.slane %v11095_v61, 1  ;;  %6698 = vrcp.f32 %v11088_v49  ;;  %5181 = vmatpush.bf16.msra.mxu2 %v6059_v48  ;;  %v11127_v25 = vld.sshfl [vmem:[#allocation1 + $0x38] sm:$0xff pattern:$0x73625140] }
 0x341   : > { %v11099_v42 = vmul.f32 1.442695, %v1021_v9  ;;  %v11101_v56 = vpop.eup %6694  ;;  %v3973_v27 = vmul.f32 %v6693_v7, %v11051_v21  ;;  %vm11104_vm15 = vcmp.eq.f32.partialorder %v3981_v50, 8.507059e+37  ;;  %vm3978_vm14 = vweird.f32 %v6693_v7  ;;  %v6058_v50 = vld [vmem:[#allocation5 + $0x100] sm:$0xff] }
 0x342   : > { %v4223_v18 = vrot.slane %v4222_v13, 2  ;;  %v4234_v4 = vrot.slane %v4233_v6, 4  ;;  %v6697_v11 = vpop.eup %6696  ;;  %v3984_v52 = vor.u32 1.1754944e-38, %v3983_v32  ;;  %v3988_v2 = vmul.f32 %v11101_v56, %v11058_v46  ;;  %vm11122_vm2 = vmor %vm3977_vm12, %vm3978_vm14  ;;  %5195 = vmatpush.bf16.msra.mxu3 %v6066_v39 }
 0x343   : > { %v3998_v22 = vand.u32 2147483648, %v11058_v46  ;;  %v3974_v30 = vsub.f32 1.0, %v3973_v27  ;;  %6700 = vrcp.f32 %v11090_v5  ;;  %vm3992_vm1 = vweird.f32 %v11058_v46 }
 0x344   : > { %v4224_v59 = vadd.f32 %v4223_v18, %v4222_v13  ;;  %v4235_v29 = vadd.f32 %v4234_v4, %v4233_v6  ;;  %v3989_v31 = vsub.f32 1.0, %v3988_v2  ;;  %vm3993_vm0 = vweird.f32 %v11101_v56  ;;  %v6089_v13 = vld [vmem:[#allocation5 + $0x1f8] sm:$0xff]  ;;  %5182 = vmatpush.bf16.msra.mxu2 %v6058_v50  ;;  %v6088_v50 = vld [vmem:[#allocation5 + $0x1f0] sm:$0xff] }
 0x345   : > { %v3996_v40 = vand.u32 2147483647, %v11058_v46  ;;  %v3975_v53 = vmul.f32 %v6693_v7, %v3974_v30  ;;  %v11115_v63 = vadd.f32 1.0, %v6697_v11  ;;  %v3999_v60 = vor.u32 1.1754944e-38, %v3998_v22  ;;  %vm11134_vm13 = vmor %vm3992_vm1, %vm3993_vm0  ;;  %v6081_v46 = vld [vmem:[#allocation5 + $0x1b8] sm:$0xff] }
 0x346   : > { %v4225_v57 = vrot.slane %v4224_v59, 1  ;;  %v4236_v36 = vrot.slane %v4235_v29, 2  ;;  %v11117_v1 = vpop.eup %6698  ;;  %v3990_v51 = vmul.f32 %v11101_v56, %v3989_v31  ;;  %v4339_v24 = vrot.slane %v11127_v25, 1  ;;  %5214 = vmatpush.bf16.msrb.mxu3 %v6089_v13 }
 0x347   : > { %6702 = vpow2.f32 %v1190_v19  ;;  %v3976_v14 = vadd.f32 %v6693_v7, %v3975_v53  ;;  %v1753_v62 = vmul.f32 %v11117_v1, %v11088_v49  ;;  %vm11141_vm3 = vcmp.eq.f32.partialorder %v3996_v40, 8.507059e+37 }
 0x348   : > { %v4226_v20 = vadd.f32 %v4225_v57, %v4224_v59  ;;  %v4237_v9 = vadd.f32 %v4236_v36, %v4235_v29  ;;  %v3991_v58 = vadd.f32 %v11101_v56, %v3990_v51  ;;  %v1761_v19 = vand.u32 2147483647, %v11088_v49  ;;  %5201 = vmatpush.bf16.msrb.mxu2 %v6081_v46 }
 0x349   : > { %6704 = vrcp.f32 %v11115_v63  ;;  %v11147_v6 = vpop.eup %6700  ;;  %v3980_v27 = vsel %vm11122_vm2, %v6693_v7, %v3976_v14  ;;  %v1754_v11 = vsub.f32 1.0, %v1753_v62  ;;  %v1763_v59 = vand.u32 2147483648, %v11088_v49  ;;  %v6080_v62 = vld [vmem:[#allocation5 + $0x1b0] sm:$0xff] }
 0x34a   : > { %v4306_v18 = vmul.f32 0.015625, %v4226_v20  ;;  %v4238_v4 = vrot.slane %v4237_v9, 1  ;;  %v3985_v2 = vsel %vm11104_vm15, %v3984_v52, %v3980_v27  ;;  %v3995_v22 = vsel %vm11134_vm13, %v11101_v56, %v3991_v58  ;;  %5215 = vmatpush.bf16.msrb.mxu3 %v6088_v50 }
 0x34b   : > { %v1768_v29 = vmul.f32 %v11147_v6, %v11090_v5  ;;  %v3986_v7 = vmul.f32 %v3985_v2, %v10859_v37  ;;  %v4000_v48 = vsel %vm11141_vm3, %v3999_v60, %v3995_v22  ;;  %vm1757_vm4 = vweird.f32 %v11088_v49  ;;  %v6079_v22 = vld [vmem:[#allocation5 + $0x1a8] sm:$0xff] }
 0x34c   : > { %v4239_v30 = vadd.f32 %v4238_v4, %v4237_v9  ;;  %v4001_v56 = vmul.f32 %v4000_v48, %v10868_v17  ;;  %v1755_v8 = vmul.f32 %v11117_v1, %v1754_v11  ;;  %v1778_v40 = vand.u32 2147483648, %v11090_v5  ;;  %5202 = vmatpush.bf16.msrb.mxu2 %v6080_v62 }
 0x34d   : > { %v6703_v52 = vpop.eup %6702  ;;  %v1769_v31 = vsub.f32 1.0, %v1768_v29  ;;  %v4376_v57 = vmul.f32 %v4336_v16, %v4306_v18  ;;  %v4246_v37 = vadd.f32 %v11080_v45, %v3986_v7  ;;  %vm11171_vm5 = vcmp.eq.f32.partialorder %v1761_v19, 8.507059e+37 }
 0x34e   : > { %v4307_v36 = vmul.f32 0.015625, %v4239_v30  ;;  %v4259_v51 = vadd.f32 %v11085_v44, %v4001_v56  ;;  %vm1758_vm6 = vweird.f32 %v11117_v1  ;;  %v1764_v17 = vor.u32 1.1754944e-38, %v1763_v59  ;;  %v11189_v44 = vpop.f32.mrf.mxu1  ;;  %v6087_v59 = vld [vmem:[#allocation5 + $0x1e8] sm:$0xff] }
 0x34f   : > { %v11175_v0 = vpop.eup %6704  ;;  %v1776_v60 = vand.u32 2147483647, %v11090_v5  ;;  %v4247_v20 = vrot.slane %v4246_v37, 4  ;;  %v1756_v54 = vadd.f32 %v11117_v1, %v1755_v8  ;;  %v1770_v16 = vmul.f32 %v11147_v6, %v1769_v31  ;;  %vm11198_vm8 = vmor %vm1757_vm4, %vm1758_vm6  ;;  %5216 = vmatpush.bf16.msrb.mxu3 %v6087_v59  ;;  %v6085_v8 = vld [vmem:[#allocation5 + $0x1d8] sm:$0xff] }
 0x350   : > { %v1903_v45 = vmul.f32 %v11175_v0, %v11115_v63  ;;  %v4260_v9 = vrot.slane %v4259_v51, 4  ;;  %vm1772_vm7 = vweird.f32 %v11090_v5  ;;  %v11185_v14 = vor.u32 1.1754944e-38, %v1778_v40  ;;  %5203 = vmatpush.bf16.msrb.mxu2 %v6079_v22 }
 0x351   : > { %v11187_v21 = vadd.f32 1.0, %v6703_v52  ;;  %v4396_v39 = vpack.c.bf16 %v4376_v57, %v4376_v57  ;;  %v4377_v58 = vmul.f32 %v4337_v43, %v4307_v36  ;;  %v4248_v32 = vadd.f32 %v4247_v20, %v4246_v37 }
 0x352   : > { %v1911_v19 = vand.u32 2147483647, %v11115_v63  ;;  %v4261_v46 = vadd.f32 %v4260_v9, %v4259_v51  ;;  %vm1773_vm11 = vweird.f32 %v11147_v6  ;;  %vm11203_vm10 = vcmp.eq.f32.partialorder %v1776_v60, 8.507059e+37  ;;  %v6078_v51 = vld [vmem:[#allocation5 + $0x1a0] sm:$0xff] }
 0x353   : > { %v1904_v15 = vsub.f32 1.0, %v1903_v45  ;;  %vm1907_vm12 = vweird.f32 %v11115_v63  ;;  %v4249_v43 = vrot.slane %v4248_v32, 2  ;;  %v1760_v49 = vsel %vm11198_vm8, %v11117_v1, %v1756_v54  ;;  %v11222_v1 = vpop.f32.mrf.mxu0  ;;  %vm11230_vm1 = vmor %vm1772_vm7, %vm1773_vm11 }
 0x354   : > { %v1771_v4 = vadd.f32 %v11147_v6, %v1770_v16  ;;  %v1913_v27 = vand.u32 2147483648, %v11115_v63  ;;  %v4262_v11 = vrot.slane %v4261_v46, 2  ;;  %vm1908_vm15 = vweird.f32 %v11175_v0  ;;  %5204 = vmatpush.bf16.msrb.mxu2 %v6078_v51 }
 0x355   : > { %v1905_v2 = vmul.f32 %v11175_v0, %v1904_v15  ;;  %6706 = vrcp.f32 %v11187_v21  ;;  %v11216_v29 = vunpack.c.l.b16 %v4396_v39  ;;  %v4397_v30 = vpack.c.bf16 %v4377_v58, %v4377_v58  ;;  %vm1909_vm0 = vmor %vm1907_vm12, %vm1908_vm15 }
 0x356   : > { %v4250_v7 = vadd.f32 %v4249_v43, %v4248_v32  ;;  %vm11218_vm14 = vcmp.eq.f32.partialorder %v1911_v19, 8.507059e+37  ;;  %v4263_v52 = vadd.f32 %v4262_v11, %v4261_v46  ;;  %v1765_v56 = vsel %vm11171_vm5, %v1764_v17, %v1760_v49  ;;  %v6086_v17 = vld [vmem:[#allocation5 + $0x1e0] sm:$0xff]  ;;  %v11252_v62 = vpop.f32.mrf.mxu1 }
 0x357   : > { %v1906_v31 = vadd.f32 %v11175_v0, %v1905_v2  ;;  %6708 = vpow2.f32 %v11092_v33  ;;  %v1914_v57 = vor.u32 1.1754944e-38, %v1913_v27  ;;  %v1030_v5 = vsub.f32 0.0, %v11163_v10  ;;  %5217 = vmatpush.bf16.msrb.mxu3 %v6086_v17 }
 0x358   : > { %v4251_v40 = vrot.slane %v4250_v7, 1  ;;  %6710 = vpow2.f32 %v11099_v42  ;;  %v4264_v36 = vrot.slane %v4263_v52, 1  ;;  %v1775_v37 = vsel %vm11230_vm1, %v11147_v6, %v1771_v4 }
 0x359   : > { %v1910_v33 = vsel %vm1909_vm0, %v11175_v0, %v1906_v31  ;;  %v1031_v53 = vsub.f32 0.0, %v11189_v44  ;;  %v1228_v20 = vmul.f32 1.442695, %v1030_v5  ;;  %v1040_v42 = vsub.f32 0.0, %v11222_v1 }
 0x35a   : > { %v4252_v60 = vadd.f32 %v4251_v40, %v4250_v7  ;;  %v1915_v63 = vsel %vm11218_vm14, %v1914_v57, %v1910_v33  ;;  %v4265_v16 = vadd.f32 %v4264_v36, %v4263_v52  ;;  %v1766_v45 = vmul.f32 %v1765_v56, %v10870_v12  ;;  %v6077_v56 = vld [vmem:[#allocation5 + $0x198] sm:$0xff] }
 0x35b   : > { %v6707_v54 = vpop.eup %6706  ;;  %v1916_v9 = vmul.f32 %v1915_v63, %v10981_v34  ;;  %v1230_v6 = vmul.f32 1.442695, %v1031_v53  ;;  %v11254_v0 = vunpack.c.l.b16 %v4397_v30  ;;  %v1780_v50 = vsel %vm11203_vm10, %v11185_v14, %v1775_v37  ;;  %v11272_v11 = vpop.f32.mrf.mxu0  ;;  %5205 = vmatpush.bf16.msrb.mxu2 %v6077_v56  ;;  %5218 = vmatpush.bf16.msrb.mxu3 %v6085_v8 }
 0x35c   : > { %v1918_v39 = vmul.f32 %v6707_v54, %v11187_v21  ;;  %6712 = vpow2.f32 %v1228_v20  ;;  %v4308_v32 = vmul.f32 0.015625, %v4252_v60  ;;  %v1248_v12 = vmul.f32 1.442695, %v1040_v42  ;;  %v11312_v20 = vpop.f32.mrf.mxu2  ;;  %v11314_v42 = vpop.f32.mrf.mxu3 }
 0x35d   : > { %v6709_v58 = vpop.eup %6708  ;;  %v11260_v19 = vadd.f32 %v1916_v9, %v1766_v45  ;;  %6714 = vpow2.f32 %v1230_v6  ;;  %v1926_v13 = vand.u32 2147483647, %v11187_v21  ;;  %v1928_v15 = vand.u32 2147483648, %v11187_v21 }
 0x35e   : > { %v6711_v34 = vpop.eup %6710  ;;  %v1919_v46 = vsub.f32 1.0, %v1918_v39  ;;  %v11264_v43 = vadd.f32 1.0, %v6709_v58  ;;  %v4309_v49 = vmul.f32 0.015625, %v4265_v16  ;;  %6716 = vpow2.f32 %v1248_v12  ;;  %v11304_v51 = vpop.f32.mrf.mxu1  ;;  %v6084_v16 = vld [vmem:[#allocation5 + $0x1d0] sm:$0xff] }
 0x35f   : > { %v11266_v18 = vadd.f32 1.0, %v6711_v34  ;;  %v1041_v14 = vsub.f32 0.0, %v11252_v62  ;;  %v4389_v4 = vpack.c.bf16 %v10223_v23, %v10223_v23  ;;  %vm1923_vm2 = vweird.f32 %v6707_v54  ;;  %5219 = vmatpush.bf16.msrb.mxu3 %v6084_v16  ;;  %v6082_v16 = vld [vmem:[#allocation5 + $0x1c0] sm:$0xff] }
 0x360   : > { %v1920_v27 = vmul.f32 %v6707_v54, %v1919_v46  ;;  %6718 = vrcp.f32 %v11264_v43  ;;  %v4611_v2 = vrot.slane %v11216_v29, 7  ;;  %v11277_v22 = vmul.f32 %v4338_v38, %v4308_v32 }
 0x361   : > { %v1781_v59 = vmul.f32 %v1780_v50, %v10883_v41  ;;  %6720 = vrcp.f32 %v11266_v18  ;;  %v4613_v7 = vrot.slane %v11254_v0, 7  ;;  %vm1922_vm13 = vweird.f32 %v11187_v21 }
 0x362   : > { %v6713_v30 = vpop.eup %6712  ;;  %v1921_v48 = vadd.f32 %v6707_v54, %v1920_v27  ;;  %vm11283_vm3 = vcmp.eq.f32.partialorder %v1926_v13, 8.507059e+37  ;;  %v11289_v61 = vmul.f32 %v4339_v24, %v4309_v49  ;;  %vm1924_vm4 = vmor %vm1922_vm13, %vm1923_vm2  ;;  %v1929_v41 = vor.u32 1.1754944e-38, %v1928_v15  ;;  %v6083_v27 = vld [vmem:[#allocation5 + $0x1c8] sm:$0xff] }
 0x363   : > { %v6715_v31 = vpop.eup %6714  ;;  %v1250_v38 = vmul.f32 1.442695, %v1041_v14  ;;  %v1050_v40 = vsub.f32 0.0, %v11272_v11  ;;  %v2061_v21 = vand.u32 2147483647, %v11264_v43  ;;  %v2063_v5 = vand.u32 2147483648, %v11264_v43  ;;  %v11347_v8 = vpop.f32.mrf.mxu0  ;;  %5220 = vmatpush.bf16.msrb.mxu3 %v6083_v27 }
 0x364   : > { %v1925_v57 = vsel %vm1924_vm4, %v6707_v54, %v1921_v48  ;;  %v11295_v36 = vadd.f32 1.0, %v6713_v30  ;;  %v6717_v37 = vpop.eup %6716  ;;  %v4398_v25 = vpack.c.bf16 %v11277_v22, %v11277_v22  ;;  %v2076_v33 = vand.u32 2147483647, %v11266_v18  ;;  %v6076_v54 = vld [vmem:[#allocation5 + $0x190] sm:$0xff]  ;;  %v6075_v14 = vld [vmem:[#allocation5 + $0x188] sm:$0xff] }
 0x365   : > { %v1930_v24 = vsel %vm11283_vm3, %v1929_v41, %v1925_v57  ;;  %v11302_v53 = vadd.f32 1.0, %v6715_v31  ;;  %vm2057_vm5 = vweird.f32 %v11264_v43  ;;  %v2078_v63 = vand.u32 2147483648, %v11266_v18  ;;  %5206 = vmatpush.bf16.msrb.mxu2 %v6076_v54  ;;  %v6074_v54 = vld [vmem:[#allocation5 + $0x180] sm:$0xff] }
 0x366   : > { %v11306_v17 = vpop.eup %6718  ;;  %v1931_v60 = vmul.f32 %v1930_v24, %v10988_v3  ;;  %6722 = vrcp.f32 %v11295_v36  ;;  %v4399_v9 = vpack.c.bf16 %v11289_v61, %v11289_v61  ;;  %vm2072_vm6 = vweird.f32 %v11266_v18 }
 0x367   : > { %v11316_v45 = vpop.eup %6720  ;;  %v2053_v3 = vmul.f32 %v11306_v17, %v11264_v43  ;;  %6724 = vrcp.f32 %v11302_v53  ;;  %vm11326_vm7 = vcmp.eq.f32.partialorder %v2061_v21, 8.507059e+37  ;;  %v2064_v39 = vor.u32 1.1754944e-38, %v2063_v5  ;;  %5221 = vmatpush.bf16.msrb.mxu3 %v6082_v16 }
 0x368   : > { %v11324_v6 = vadd.f32 %v1931_v60, %v1781_v59  ;;  %v2068_v58 = vmul.f32 %v11316_v45, %v11266_v18  ;;  %vm11332_vm8 = vcmp.eq.f32.partialorder %v2076_v33, 8.507059e+37  ;;  %v2211_v34 = vand.u32 2147483647, %v11295_v36  ;;  %v5134_v60 = vpop.f32.mrf.mxu2 }
 0x369   : > { %v2054_v32 = vsub.f32 1.0, %v2053_v3  ;;  %v2213_v46 = vand.u32 2147483648, %v11295_v36  ;;  %v2079_v15 = vor.u32 1.1754944e-38, %v2078_v63  ;;  %v11338_v49 = vadd.f32 1.0, %v6717_v37  ;;  %5207 = vmatpush.bf16.msrb.mxu2 %v6075_v14  ;;  %v5147_v63 = vpop.f32.mrf.mxu3 }
 0x36a   : > { %v2069_v13 = vsub.f32 1.0, %v2068_v58  ;;  %6726 = vpow2.f32 %v1250_v38  ;;  %vm2058_vm11 = vweird.f32 %v11306_v17  ;;  %v2226_v30 = vand.u32 2147483647, %v11302_v53  ;;  %v6097_v58 = vld [vmem:[#allocation5 + $0x238] sm:$0xff] }
 0x36b   : > { %v2055_v59 = vmul.f32 %v11306_v17, %v2054_v32  ;;  %v1268_v48 = vmul.f32 1.442695, %v1050_v40  ;;  %vm2073_vm10 = vweird.f32 %v11316_v45  ;;  %vm2207_vm12 = vweird.f32 %v11295_v36  ;;  %vm11360_vm1 = vmor %vm2057_vm5, %vm2058_vm11  ;;  %v11379_v32 = vpop.f32.mrf.mxu1  ;;  %5227 = vmatpush.bf16.msrb.mxu0 %v6097_v58 }
 0x36c   : > { %v6723_v52 = vpop.eup %6722  ;;  %v2070_v56 = vmul.f32 %v11316_v45, %v2069_v13  ;;  %6728 = vrcp.f32 %v11338_v49  ;;  %vm11351_vm15 = vcmp.eq.f32.partialorder %v2211_v34, 8.507059e+37  ;;  %v2214_v57 = vor.u32 1.1754944e-38, %v2213_v46  ;;  %vm2074_vm0 = vmor %vm2072_vm6, %vm2073_vm10 }
 0x36d   : > { %v6725_v31 = vpop.eup %6724  ;;  %v2056_v41 = vadd.f32 %v11306_v17, %v2055_v59  ;;  %v2203_v38 = vmul.f32 %v6723_v52, %v11295_v36  ;;  %vm2222_vm14 = vweird.f32 %v11302_v53  ;;  %v2228_v24 = vand.u32 2147483648, %v11302_v53  ;;  %5208 = vmatpush.bf16.msrb.mxu2 %v6074_v54 }
 0x36e   : > { %v2071_v5 = vadd.f32 %v11316_v45, %v2070_v56  ;;  %v2218_v37 = vmul.f32 %v6725_v31, %v11302_v53  ;;  %v1051_v33 = vsub.f32 0.0, %v11304_v51  ;;  %vm11375_vm2 = vcmp.eq.f32.partialorder %v2226_v30, 8.507059e+37 }
 0x36f   : > { %v2060_v43 = vsel %vm11360_vm1, %v11306_v17, %v2056_v41  ;;  %v2204_v3 = vsub.f32 1.0, %v2203_v38  ;;  %6730 = vpow2.f32 %v1268_v48  ;;  %vm2208_vm13 = vweird.f32 %v6723_v52 }
 0x370   : > { %v6727_v34 = vpop.eup %6726  ;;  %v2065_v46 = vsel %vm11326_vm7, %v2064_v39, %v2060_v43  ;;  %v2075_v13 = vsel %vm2074_vm0, %v11316_v45, %v2071_v5  ;;  %v2219_v17 = vsub.f32 1.0, %v2218_v37  ;;  %vm2223_vm3 = vweird.f32 %v6725_v31  ;;  %vm2209_vm4 = vmor %vm2207_vm12, %vm2208_vm13  ;;  %v11484_v58 = vpop.f32.mrf.mxu2 }
 0x371   : > { %v2066_v18 = vmul.f32 %v2065_v46, %v11053_v55  ;;  %v2080_v14 = vsel %vm11332_vm8, %v2079_v15, %v2075_v13  ;;  %v2205_v27 = vmul.f32 %v6723_v52, %v2204_v3  ;;  %v11387_v59 = vadd.f32 1.0, %v6727_v34  ;;  %vm2224_vm5 = vmor %vm2222_vm14, %vm2223_vm3  ;;  %v6105_v34 = vld [vmem:[#allocation5 + $0x278] sm:$0xff] }
 0x372   : > { %v6729_v30 = vpop.eup %6728  ;;  %v2081_v48 = vmul.f32 %v2080_v14, %v11060_v47  ;;  %v2220_v56 = vmul.f32 %v6725_v31, %v2219_v17  ;;  %v1270_v50 = vmul.f32 1.442695, %v1051_v33  ;;  %v2229_v41 = vor.u32 1.1754944e-38, %v2228_v24  ;;  %v11406_v33 = vpop.f32.mrf.mxu0  ;;  %5240 = vmatpush.bf16.msrb.mxu1 %v6105_v34 }
 0x373   : > { %v4137_v45 = vadd.f32 %v11260_v19, %v2066_v18  ;;  %v2206_v39 = vadd.f32 %v6723_v52, %v2205_v27  ;;  %v2353_v38 = vmul.f32 %v6729_v30, %v11338_v49  ;;  %v2361_v15 = vand.u32 2147483647, %v11338_v49  ;;  %v11424_v16 = vpop.f32.mrf.mxu1  ;;  %v11486_v34 = vpop.f32.mrf.mxu3 }
 0x374   : > { %v4150_v55 = vadd.f32 %v11324_v6, %v2081_v48  ;;  %v2221_v12 = vadd.f32 %v6725_v31, %v2220_v56  ;;  %6732 = vrcp.f32 %v11387_v59  ;;  %v2363_v5 = vand.u32 2147483648, %v11338_v49 }
 0x375   : > { %v6731_v47 = vpop.eup %6730  ;;  %v2210_v21 = vsel %vm2209_vm4, %v6723_v52, %v2206_v39  ;;  %v2354_v19 = vsub.f32 1.0, %v2353_v38  ;;  %v1060_v37 = vsub.f32 0.0, %v11347_v8  ;;  %6734 = vpow2.f32 %v1270_v50 }
 0x376   : > { %v2215_v6 = vsel %vm11351_vm15, %v2214_v57, %v2210_v21  ;;  %v2225_v36 = vsel %vm2224_vm5, %v6725_v31, %v2221_v12  ;;  %v11404_v24 = vadd.f32 1.0, %v6731_v47  ;;  %vm2358_vm6 = vweird.f32 %v6729_v30 }
 0x377   : > { %v2216_v60 = vmul.f32 %v2215_v6, %v11163_v10  ;;  %v2230_v53 = vsel %vm11375_vm2, %v2229_v41, %v2225_v36  ;;  %v2355_v52 = vmul.f32 %v6729_v30, %v2354_v19  ;;  %v11414_v63 = vunpack.c.l.b16 %v4398_v25 }
 0x378   : > { %v11419_v31 = vunpack.c.l.b16 %v4399_v9  ;;  %v2231_v40 = vmul.f32 %v2230_v53, %v11189_v44  ;;  %6736 = vrcp.f32 %v11404_v24  ;;  %vm2357_vm7 = vweird.f32 %v11338_v49 }
 0x379   : > { %v4138_v10 = vadd.f32 %v4137_v45, %v2216_v60  ;;  %v2356_v57 = vadd.f32 %v6729_v30, %v2355_v52  ;;  %v2364_v54 = vor.u32 1.1754944e-38, %v2363_v5  ;;  %vm2359_vm8 = vmor %vm2357_vm7, %vm2358_vm6  ;;  %v1288_v25 = vmul.f32 1.442695, %v1060_v37 }
 0x37a   : > { %v6733_v43 = vpop.eup %6732  ;;  %v11426_v22 = vadd.f32 %v4150_v55, %v2231_v40  ;;  %v1061_v61 = vsub.f32 0.0, %v11379_v32  ;;  %v4612_v44 = vsel %vm4603_vm9, %v4611_v2, %v10127_v28  ;;  %vm2362_vm11 = vcmp.eq.f32.partialorder %v2361_v15, 8.507059e+37 }
 0x37b   : > { %v2360_v9 = vsel %vm2359_vm8, %v6729_v30, %v2356_v57  ;;  %v2368_v3 = vmul.f32 %v6733_v43, %v11387_v59  ;;  %v2376_v49 = vand.u32 2147483647, %v11387_v59  ;;  %v6735_v46 = vpop.eup %6734  ;;  %v2378_v17 = vand.u32 2147483648, %v11387_v59  ;;  %v11462_v19 = vpop.f32.mrf.mxu1 }
 0x37c   : > { %v2365_v13 = vsel %vm2362_vm11, %v2364_v54, %v2360_v9  ;;  %6738 = vpow2.f32 %v1288_v25  ;;  %v1290_v18 = vmul.f32 1.442695, %v1061_v61  ;;  %v11437_v29 = vadd.f32 1.0, %v6735_v46 }
 0x37d   : > { %v2366_v14 = vmul.f32 %v2365_v13, %v11222_v1  ;;  %v2369_v27 = vsub.f32 1.0, %v2368_v3  ;;  %v4627_v28 = vpack.c.b16 %v4612_v44, %v4612_v44  ;;  %v4614_v30 = vsel %vm4603_vm9, %v4613_v7, %v10136_v26  ;;  %v11455_v26 = vpop.f32.mrf.mxu0 }
 0x37e   : > { %v6737_v2 = vpop.eup %6736  ;;  %6740 = vpow2.f32 %v1290_v18  ;;  %v11445_v48 = vadd.f32 %v11314_v42, %v11312_v20  ;;  %v1070_v56 = vsub.f32 0.0, %v11406_v33  ;;  %vm2373_vm10 = vweird.f32 %v6733_v43 }
 0x37f   : > { %v4139_v1 = vadd.f32 %v4138_v10, %v2366_v14  ;;  %v2370_v50 = vmul.f32 %v6733_v43, %v2369_v27  ;;  %v2503_v45 = vmul.f32 %v6737_v2, %v11404_v24  ;;  %5183 = vmatmul.bf16.vlgmr.msra.gmra.mxu2 %v4627_v28  ;;  %vm2372_vm12 = vweird.f32 %v11387_v59 }
 0x380   : > { %vm11450_vm15 = vcmp.eq.f32.partialorder %v2376_v49, 8.507059e+37  ;;  %v2379_v0 = vor.u32 1.1754944e-38, %v2378_v17  ;;  %6742 = vrcp.f32 %v11437_v29  ;;  %v4628_v42 = vpack.c.b16 %v4614_v30, %v4614_v30  ;;  %vm2374_vm14 = vmor %vm2372_vm12, %vm2373_vm10 }
 0x381   : > { %v2371_v7 = vadd.f32 %v6733_v43, %v2370_v50  ;;  %v2504_v20 = vsub.f32 1.0, %v2503_v45  ;;  %v1308_v41 = vmul.f32 1.442695, %v1070_v56  ;;  %vm2508_vm1 = vweird.f32 %v6737_v2 }
 0x382   : > { %v6739_v38 = vpop.eup %6738  ;;  %v2511_v55 = vand.u32 2147483647, %v11404_v24  ;;  %v2513_v59 = vand.u32 2147483648, %v11404_v24  ;;  %v1071_v12 = vsub.f32 0.0, %v11424_v16  ;;  %5196 = vmatmul.bf16.vlgmr.msra.gmra.mxu3 %v4628_v42  ;;  %v4615_v37 = vrot.slane %v11414_v63, 7 }
 0x383   : > { %v2375_v15 = vsel %vm2374_vm14, %v6733_v43, %v2371_v7  ;;  %v2505_v47 = vmul.f32 %v6737_v2, %v2504_v20  ;;  %v11460_v21 = vadd.f32 1.0, %v6739_v38  ;;  %6744 = vpow2.f32 %v1308_v41 }
 0x384   : > { %v6741_v5 = vpop.eup %6740  ;;  %v2380_v6 = vsel %vm11450_vm15, %v2379_v0, %v2375_v15  ;;  %vm2507_vm0 = vweird.f32 %v11404_v24  ;;  %v1310_v36 = vmul.f32 1.442695, %v1071_v12  ;;  %v1080_v52 = vsub.f32 0.0, %v11455_v26  ;;  %v11510_v0 = vpop.f32.mrf.mxu1 }
 0x385   : > { %v2381_v60 = vmul.f32 %v2380_v6, %v11252_v62  ;;  %v2506_v53 = vadd.f32 %v6737_v2, %v2505_v47  ;;  %6746 = vrcp.f32 %v11460_v21  ;;  %vm2509_vm2 = vmor %vm2507_vm0, %vm2508_vm1  ;;  %v2514_v10 = vor.u32 1.1754944e-38, %v2513_v59  ;;  %v11492_v18 = vpop.f32.mrf.mxu0  ;;  %v5160_v15 = vpop.f32.mrf.mxu2 }
 0x386   : > { %v6743_v40 = vpop.eup %6742  ;;  %v11472_v57 = vadd.f32 1.0, %v6741_v5  ;;  %6748 = vpow2.f32 %v1310_v36  ;;  %v1081_v63 = vsub.f32 0.0, %v11462_v19  ;;  %vm2512_vm13 = vcmp.eq.f32.partialorder %v2511_v55, 8.507059e+37  ;;  %v5173_v47 = vpop.f32.mrf.mxu3 }
 0x387   : > { %v4152_v54 = vadd.f32 %v11426_v22, %v2381_v60  ;;  %v2510_v24 = vsel %vm2509_vm2, %v6737_v2, %v2506_v53  ;;  %v2518_v62 = vmul.f32 %v6743_v40, %v11437_v29  ;;  %v2526_v25 = vand.u32 2147483647, %v11437_v29 }
 0x388   : > { %v2515_v43 = vsel %vm2512_vm13, %v2514_v10, %v2510_v24  ;;  %v2528_v61 = vand.u32 2147483648, %v11437_v29  ;;  %6750 = vrcp.f32 %v11472_v57  ;;  %v4589_v9 = vunpack.c.l.b16 %v4389_v4 }
 0x389   : > { %v6745_v44 = vpop.eup %6744  ;;  %v2516_v3 = vmul.f32 %v2515_v43, %v11272_v11  ;;  %v2519_v49 = vsub.f32 1.0, %v2518_v62  ;;  %v1328_v22 = vmul.f32 1.442695, %v1080_v52  ;;  %v4617_v46 = vrot.slane %v11419_v31, 7 }
 0x38a   : > { %vm2522_vm3 = vweird.f32 %v11437_v29  ;;  %v11490_v13 = vadd.f32 1.0, %v6745_v44  ;;  %v1330_v17 = vmul.f32 1.442695, %v1081_v63  ;;  %vm2523_vm4 = vweird.f32 %v6743_v40 }
 0x38b   : > { %v6747_v14 = vpop.eup %6746  ;;  %v11494_v23 = vadd.f32 %v4139_v1, %v2516_v3  ;;  %v2520_v4 = vmul.f32 %v6743_v40, %v2519_v49  ;;  %v4616_v11 = vsel %vm4603_vm9, %v4615_v37, %v10221_v35  ;;  %vm11498_vm5 = vcmp.eq.f32.partialorder %v2526_v25, 8.507059e+37  ;;  %vm2524_vm6 = vmor %vm2522_vm3, %vm2523_vm4 }
 0x38c   : > { %v6749_v27 = vpop.eup %6748  ;;  %v2529_v31 = vor.u32 1.1754944e-38, %v2528_v61  ;;  %v2653_v2 = vmul.f32 %v6747_v14, %v11460_v21  ;;  %6752 = vrcp.f32 %v11490_v13  ;;  %v2661_v56 = vand.u32 2147483647, %v11460_v21  ;;  %v11556_v28 = vpop.f32.mrf.mxu1 }
 0x38d   : > { %v2521_v30 = vadd.f32 %v6743_v40, %v2520_v4  ;;  %v2663_v1 = vand.u32 2147483648, %v11460_v21  ;;  %6754 = vpow2.f32 %v1328_v22  ;;  %v11508_v45 = vadd.f32 1.0, %v6749_v27  ;;  %v6104_v4 = vld [vmem:[#allocation5 + $0x270] sm:$0xff] }
 0x38e   : > { %v6751_v50 = vpop.eup %6750  ;;  %v2654_v35 = vsub.f32 1.0, %v2653_v2  ;;  %6756 = vpow2.f32 %v1330_v17  ;;  %v4629_v39 = vpack.c.b16 %v4616_v11, %v4616_v11  ;;  %vm2657_vm7 = vweird.f32 %v11460_v21  ;;  %5241 = vmatpush.bf16.msrb.mxu1 %v6104_v4 }
 0x38f   : > { %v2525_v7 = vsel %vm2524_vm6, %v6743_v40, %v2521_v30  ;;  %v2668_v20 = vmul.f32 %v6751_v50, %v11472_v57  ;;  %v2676_v42 = vand.u32 2147483647, %v11472_v57  ;;  %vm2658_vm8 = vweird.f32 %v6747_v14  ;;  %v11530_v40 = vpop.f32.mrf.mxu0 }
 0x390   : > { %v2530_v41 = vsel %vm11498_vm5, %v2529_v31, %v2525_v7  ;;  %v2655_v38 = vmul.f32 %v6747_v14, %v2654_v35  ;;  %6758 = vrcp.f32 %v11508_v45  ;;  %5209 = vmatmul.bf16.vlgmr.msrb.gmra.mxu2 %v4629_v39  ;;  %vm11519_vm11 = vcmp.eq.f32.partialorder %v2661_v56, 8.507059e+37  ;;  %vm2659_vm12 = vmor %vm2657_vm7, %vm2658_vm8 }
 0x391   : > { %v2531_v29 = vmul.f32 %v2530_v41, %v11304_v51  ;;  %v2669_v59 = vsub.f32 1.0, %v2668_v20  ;;  %v2678_v12 = vand.u32 2147483648, %v11472_v57  ;;  %v2664_v6 = vor.u32 1.1754944e-38, %v2663_v1 }
 0x392   : > { %v6753_v5 = vpop.eup %6752  ;;  %v2656_v37 = vadd.f32 %v6747_v14, %v2655_v38  ;;  %vm2672_vm10 = vweird.f32 %v11472_v57  ;;  %v4618_v36 = vsel %vm4603_vm9, %v4617_v46, %v4589_v9  ;;  %vm2673_vm15 = vweird.f32 %v6751_v50 }
 0x393   : > { %v6755_v60 = vpop.eup %6754  ;;  %v4153_v53 = vadd.f32 %v4152_v54, %v2531_v29  ;;  %v2670_v51 = vmul.f32 %v6751_v50, %v2669_v59  ;;  %v2803_v52 = vmul.f32 %v6753_v5, %v11490_v13  ;;  %vm11532_vm14 = vcmp.eq.f32.partialorder %v2676_v42, 8.507059e+37  ;;  %vm2674_vm1 = vmor %vm2672_vm10, %vm2673_vm15 }
 0x394   : > { %v6757_v10 = vpop.eup %6756  ;;  %v2660_v63 = vsel %vm2659_vm12, %v6747_v14, %v2656_v37  ;;  %v2811_v62 = vand.u32 2147483647, %v11490_v13  ;;  %v2813_v54 = vand.u32 2147483648, %v11490_v13  ;;  %v2679_v25 = vor.u32 1.1754944e-38, %v2678_v12  ;;  %v6096_v14 = vld [vmem:[#allocation5 + $0x230] sm:$0xff] }
 0x395   : > { %v2665_v21 = vsel %vm11519_vm11, %v2664_v6, %v2660_v63  ;;  %v2671_v43 = vadd.f32 %v6751_v50, %v2670_v51  ;;  %v2804_v61 = vsub.f32 1.0, %v2803_v52  ;;  %vm2807_vm0 = vweird.f32 %v11490_v13  ;;  %5228 = vmatpush.bf16.msrb.mxu0 %v6096_v14  ;;  %v6095_v52 = vld [vmem:[#allocation5 + $0x228] sm:$0xff] }
 0x396   : > { %v6759_v44 = vpop.eup %6758  ;;  %v2666_v9 = vmul.f32 %v2665_v21, %v11347_v8  ;;  %vm2808_vm2 = vweird.f32 %v6753_v5  ;;  %v11544_v3 = vadd.f32 1.0, %v6755_v60  ;;  %v11547_v17 = vadd.f32 1.0, %v6757_v10  ;;  %v11589_v60 = vpop.f32.mrf.mxu1  ;;  %v6103_v10 = vld [vmem:[#allocation5 + $0x268] sm:$0xff] }
 0x397   : > { %v2675_v49 = vsel %vm2674_vm1, %v6751_v50, %v2671_v43  ;;  %v2805_v22 = vmul.f32 %v6753_v5, %v2804_v61  ;;  %v2818_v46 = vmul.f32 %v6759_v44, %v11508_v45  ;;  %vm11552_vm13 = vcmp.eq.f32.partialorder %v2811_v62, 8.507059e+37  ;;  %vm2809_vm3 = vmor %vm2807_vm0, %vm2808_vm2  ;;  %v11572_v41 = vpop.f32.mrf.mxu0  ;;  %5242 = vmatpush.bf16.msrb.mxu1 %v6103_v10 }
 0x398   : > { %v4141_v11 = vadd.f32 %v11494_v23, %v2666_v9  ;;  %v2680_v8 = vsel %vm11532_vm14, %v2679_v25, %v2675_v49  ;;  %v2814_v27 = vor.u32 1.1754944e-38, %v2813_v54  ;;  %v2828_v56 = vand.u32 2147483648, %v11508_v45 }
 0x399   : > { %v2681_v31 = vmul.f32 %v2680_v8, %v11379_v32  ;;  %v2806_v2 = vadd.f32 %v6753_v5, %v2805_v22  ;;  %v2819_v30 = vsub.f32 1.0, %v2818_v46  ;;  %vm2823_vm4 = vweird.f32 %v6759_v44  ;;  %5229 = vmatpush.bf16.msrb.mxu0 %v6095_v52 }
 0x39a   : > { %v2826_v23 = vand.u32 2147483647, %v11508_v45  ;;  %6760 = vrcp.f32 %v11544_v3  ;;  %v4630_v1 = vpack.c.b16 %v4618_v36, %v4618_v36  ;;  %vm2822_vm5 = vweird.f32 %v11508_v45 }
 0x39b   : > { %v4154_v50 = vadd.f32 %v4153_v53, %v2681_v31  ;;  %v2810_v35 = vsel %vm2809_vm3, %v6753_v5, %v2806_v2  ;;  %v2820_v39 = vmul.f32 %v6759_v44, %v2819_v30  ;;  %6762 = vrcp.f32 %v11547_v17  ;;  %vm2824_vm6 = vmor %vm2822_vm5, %vm2823_vm4 }
 0x39c   : > { %v2815_v32 = vsel %vm11552_vm13, %v2814_v27, %v2810_v35  ;;  %5222 = vmatmul.bf16.vlgmr.msrb.gmra.mxu3 %v4630_v1  ;;  %v2829_v20 = vor.u32 1.1754944e-38, %v2828_v56  ;;  %v5159_v42 = vadd.f32 %v11484_v58, %v11445_v48  ;;  %v1090_v38 = vsub.f32 0.0, %v11492_v18 }
 0x39d   : > { %v2816_v13 = vmul.f32 %v2815_v32, %v11406_v33  ;;  %v2821_v7 = vadd.f32 %v6759_v44, %v2820_v39  ;;  %v1091_v29 = vsub.f32 0.0, %v11510_v0  ;;  %v1100_v55 = vsub.f32 0.0, %v11530_v40 }
 0x39e   : > { %v1101_v45 = vsub.f32 0.0, %v11556_v28  ;;  %vm2827_vm7 = vcmp.eq.f32.partialorder %v2826_v23, 8.507059e+37  ;;  %v11582_v12 = vadd.f32 %v11486_v34, %v5159_v42  ;;  %v1348_v15 = vmul.f32 1.442695, %v1090_v38  ;;  %v11609_v4 = vpop.f32.mrf.mxu1 }
 0x39f   : > { %v11579_v59 = vadd.f32 %v4141_v11, %v2816_v13  ;;  %v2825_v33 = vsel %vm2824_vm6, %v6759_v44, %v2821_v7  ;;  %v1350_v37 = vmul.f32 1.442695, %v1091_v29  ;;  %v1368_v6 = vmul.f32 1.442695, %v1100_v55  ;;  %v11599_v54 = vpop.f32.mrf.mxu0 }
 0x3a0   : > { %v11584_v48 = vpop.eup %6760  ;;  %v2830_v58 = vsel %vm2827_vm7, %v2829_v20, %v2825_v33  ;;  %6764 = vpow2.f32 %v1348_v15  ;;  %v1370_v36 = vmul.f32 1.442695, %v1101_v45  ;;  %v1111_v24 = vsub.f32 0.0, %v11589_v60 }
 0x3a1   : > { %v11586_v47 = vpop.eup %6762  ;;  %v2831_v5 = vmul.f32 %v2830_v58, %v11424_v16  ;;  %v2953_v34 = vmul.f32 %v11584_v48, %v11544_v3  ;;  %6766 = vpow2.f32 %v1350_v37  ;;  %v1110_v16 = vsub.f32 0.0, %v11572_v41 }
 0x3a2   : > { %v2968_v51 = vmul.f32 %v11586_v47, %v11547_v17  ;;  %6768 = vpow2.f32 %v1368_v6  ;;  %v1390_v44 = vmul.f32 1.442695, %v1111_v24  ;;  %v2961_v11 = vand.u32 2147483647, %v11544_v3 }
 0x3a3   : > { %v11591_v53 = vadd.f32 %v4154_v50, %v2831_v5  ;;  %6770 = vpow2.f32 %v1370_v36  ;;  %v1388_v63 = vmul.f32 1.442695, %v1110_v16  ;;  %v2954_v62 = vsub.f32 1.0, %v2953_v34 }
 0x3a4   : > { %v2969_v43 = vsub.f32 1.0, %v2968_v51  ;;  %v1120_v8 = vsub.f32 0.0, %v11599_v54  ;;  %v2963_v57 = vand.u32 2147483648, %v11544_v3  ;;  %v2976_v27 = vand.u32 2147483647, %v11547_v17 }
 0x3a5   : > { %6772 = vpow2.f32 %v1388_v63  ;;  %v2955_v46 = vmul.f32 %v11584_v48, %v2954_v62  ;;  %vm2958_vm8 = vweird.f32 %v11584_v48  ;;  %v2978_v56 = vand.u32 2147483648, %v11547_v17 }
 0x3a6   : > { %v6765_v21 = vpop.eup %6764  ;;  %v2970_v14 = vmul.f32 %v11586_v47, %v2969_v43  ;;  %vm2973_vm11 = vweird.f32 %v11586_v47  ;;  %vm2957_vm10 = vweird.f32 %v11544_v3  ;;  %vm11626_vm12 = vcmp.eq.f32.partialorder %v2961_v11, 8.507059e+37 }
 0x3a7   : > { %v6767_v25 = vpop.eup %6766  ;;  %v11601_v61 = vadd.f32 1.0, %v6765_v21  ;;  %v2956_v30 = vadd.f32 %v11584_v48, %v2955_v46  ;;  %v1408_v39 = vmul.f32 1.442695, %v1120_v8  ;;  %v11631_v32 = vpop.f32.mrf.mxu0  ;;  %vm11633_vm15 = vmor %vm2957_vm10, %vm2958_vm8  ;;  %v2964_v20 = vor.u32 1.1754944e-38, %v2963_v57 }
 0x3a8   : > { %v6769_v9 = vpop.eup %6768  ;;  %v11603_v49 = vadd.f32 1.0, %v6767_v25  ;;  %v2971_v1 = vadd.f32 %v11586_v47, %v2970_v14  ;;  %vm2972_vm14 = vweird.f32 %v11547_v17  ;;  %vm11638_vm1 = vcmp.eq.f32.partialorder %v2976_v27, 8.507059e+37 }
 0x3a9   : > { %v6771_v22 = vpop.eup %6770  ;;  %6774 = vrcp.f32 %v11601_v61  ;;  %v11615_v31 = vadd.f32 1.0, %v6769_v9  ;;  %v4143_v29 = vrot.slane %v11579_v59, 4  ;;  %v2960_v55 = vsel %vm11633_vm15, %v11584_v48, %v2956_v30  ;;  %vm11649_vm0 = vmor %vm2972_vm14, %vm2973_vm11 }
 0x3aa   : > { %6776 = vrcp.f32 %v11603_v49  ;;  %v11617_v2 = vadd.f32 1.0, %v6771_v22  ;;  %v2979_v17 = vor.u32 1.1754944e-38, %v2978_v56  ;;  %v2975_v58 = vsel %vm11649_vm0, %v11586_v47, %v2971_v1  ;;  %v11667_v47 = vpop.f32.mrf.mxu1 }
 0x3ab   : > { %6778 = vpow2.f32 %v1390_v44  ;;  %v6773_v23 = vpop.eup %6772  ;;  %v3111_v5 = vand.u32 2147483647, %v11601_v61  ;;  %v3113_v48 = vand.u32 2147483648, %v11601_v61  ;;  %v3128_v36 = vand.u32 2147483648, %v11603_v49 }
 0x3ac   : > { %6780 = vrcp.f32 %v11615_v31  ;;  %v11658_v37 = vadd.f32 1.0, %v6773_v23  ;;  %v2965_v16 = vsel %vm11626_vm12, %v2964_v20, %v2960_v55  ;;  %v3126_v24 = vand.u32 2147483647, %v11603_v49  ;;  %v6102_v55 = vld [vmem:[#allocation5 + $0x260] sm:$0xff] }
 0x3ad   : > { %6782 = vrcp.f32 %v11617_v2  ;;  %v2980_v62 = vsel %vm11638_vm1, %v2979_v17, %v2975_v58  ;;  %vm3107_vm3 = vweird.f32 %v11601_v61  ;;  %vm3122_vm4 = vweird.f32 %v11603_v49  ;;  %5243 = vmatpush.bf16.msrb.mxu1 %v6102_v55 }
 0x3ae   : > { %6784 = vpow2.f32 %v1408_v39  ;;  %v3114_v43 = vor.u32 1.1754944e-38, %v3113_v48  ;;  %vm3112_vm6 = vcmp.eq.f32.partialorder %v3111_v5, 8.507059e+37  ;;  %v3129_v46 = vor.u32 1.1754944e-38, %v3128_v36 }
 0x3af   : > { %v6775_v50 = vpop.eup %6774  ;;  %6786 = vrcp.f32 %v11658_v37  ;;  %vm3127_vm8 = vcmp.eq.f32.partialorder %v3126_v24, 8.507059e+37  ;;  %v11686_v8 = vpop.f32.mrf.mxu0  ;;  %v2966_v27 = vmul.f32 %v2965_v16, %v11455_v26  ;;  %v1121_v23 = vsub.f32 0.0, %v11609_v4 }
 0x3b0   : > { %v6777_v13 = vpop.eup %6776  ;;  %v3103_v3 = vmul.f32 %v6775_v50, %v11601_v61  ;;  %vm3108_vm2 = vweird.f32 %v6775_v50  ;;  %v11684_v61 = vadd.f32 %v4143_v29, %v11579_v59  ;;  %v2981_v1 = vmul.f32 %v2980_v62, %v11462_v19  ;;  %v6094_v29 = vld [vmem:[#allocation5 + $0x220] sm:$0xff] }
 0x3b1   : > { %v6779_v38 = vpop.eup %6778  ;;  %v3118_v33 = vmul.f32 %v6777_v13, %v11603_v49  ;;  %vm3123_vm13 = vweird.f32 %v6777_v13  ;;  %vm3109_vm5 = vmor %vm3107_vm3, %vm3108_vm2  ;;  %v3263_v7 = vand.u32 2147483648, %v11615_v31  ;;  %v3278_v42 = vand.u32 2147483648, %v11617_v2  ;;  %5230 = vmatpush.bf16.msrb.mxu0 %v6094_v29 }
 0x3b2   : > { %v3104_v15 = vsub.f32 1.0, %v3103_v3  ;;  %v11662_v34 = vpop.eup %6780  ;;  %v11665_v52 = vadd.f32 1.0, %v6779_v38  ;;  %vm3124_vm7 = vmor %vm3122_vm4, %vm3123_vm13  ;;  %v4145_v3 = vrot.slane %v11684_v61, 2  ;;  %v1410_v38 = vmul.f32 1.442695, %v1121_v23  ;;  %v11710_v45 = vpop.f32.mrf.mxu1 }
 0x3b3   : > { %v3119_v6 = vsub.f32 1.0, %v3118_v33  ;;  %v11669_v10 = vpop.eup %6782  ;;  %v3253_v44 = vmul.f32 %v11662_v34, %v11615_v31  ;;  %vm3257_vm11 = vweird.f32 %v11615_v31  ;;  %vm3272_vm10 = vweird.f32 %v11617_v2 }
 0x3b4   : > { %v3105_v51 = vmul.f32 %v6775_v50, %v3104_v15  ;;  %v3268_v9 = vmul.f32 %v11669_v10, %v11617_v2  ;;  %6788 = vrcp.f32 %v11665_v52  ;;  %v6785_v14 = vpop.eup %6784  ;;  %v3264_v15 = vor.u32 1.1754944e-38, %v3263_v7 }
 0x3b5   : > { %v3120_v63 = vmul.f32 %v6777_v13, %v3119_v6  ;;  %v11688_v57 = vpop.eup %6786  ;;  %v3254_v59 = vsub.f32 1.0, %v3253_v44  ;;  %v11705_v19 = vadd.f32 1.0, %v6785_v14  ;;  %vm3258_vm12 = vweird.f32 %v11662_v34 }
 0x3b6   : > { %v3106_v21 = vadd.f32 %v6775_v50, %v3105_v51  ;;  %v3269_v35 = vsub.f32 1.0, %v3268_v9  ;;  %v3403_v26 = vmul.f32 %v11688_v57, %v11658_v37  ;;  %vm3273_vm14 = vweird.f32 %v11669_v10  ;;  %vm11745_vm13 = vmor %vm3257_vm11, %vm3258_vm12 }
 0x3b7   : > { %v3121_v25 = vadd.f32 %v6777_v13, %v3120_v63  ;;  %v3255_v17 = vmul.f32 %v11662_v34, %v3254_v59  ;;  %6790 = vrcp.f32 %v11705_v19  ;;  %v3279_v36 = vor.u32 1.1754944e-38, %v3278_v42  ;;  %vm11758_vm4 = vmor %vm3272_vm10, %vm3273_vm14 }
 0x3b8   : > { %v3110_v22 = vsel %vm3109_vm5, %v6775_v50, %v3106_v21  ;;  %v3270_v33 = vmul.f32 %v11669_v10, %v3269_v35  ;;  %v3404_v5 = vsub.f32 1.0, %v3403_v26  ;;  %vm3407_vm0 = vweird.f32 %v11658_v37  ;;  %v6093_v26 = vld [vmem:[#allocation5 + $0x218] sm:$0xff] }
 0x3b9   : > { %v3115_v49 = vsel %vm3112_vm6, %v3114_v43, %v3110_v22  ;;  %v3125_v11 = vsel %vm3124_vm7, %v6777_v13, %v3121_v25  ;;  %v3261_v13 = vand.u32 2147483647, %v11615_v31  ;;  %v3411_v16 = vand.u32 2147483647, %v11658_v37  ;;  %v11736_v25 = vpop.f32.mrf.mxu0  ;;  %5231 = vmatpush.bf16.msrb.mxu0 %v6093_v26 }
 0x3ba   : > { %v3116_v30 = vmul.f32 %v3115_v49, %v11492_v18  ;;  %v3130_v56 = vsel %vm3127_vm8, %v3129_v46, %v3125_v11  ;;  %v3276_v18 = vand.u32 2147483647, %v11617_v2  ;;  %6792 = vpow2.f32 %v1410_v38  ;;  %v11775_v42 = vpop.f32.mrf.mxu1 }
 0x3bb   : > { %v3131_v50 = vmul.f32 %v3130_v56, %v11510_v0  ;;  %v11707_v0 = vpop.eup %6788  ;;  %vm11720_vm15 = vcmp.eq.f32.partialorder %v3261_v13, 8.507059e+37  ;;  %v1130_v63 = vsub.f32 0.0, %v11631_v32  ;;  %v3256_v24 = vadd.f32 %v11662_v34, %v3255_v17 }
 0x3bc   : > { %v11695_v39 = vadd.f32 %v3116_v30, %v2966_v27  ;;  %v3418_v58 = vmul.f32 %v11707_v0, %v11665_v52  ;;  %vm11725_vm1 = vcmp.eq.f32.partialorder %v3276_v18, 8.507059e+37  ;;  %v3271_v62 = vadd.f32 %v11669_v10, %v3270_v33  ;;  %v6101_v18 = vld [vmem:[#allocation5 + $0x258] sm:$0xff] }
 0x3bd   : > { %v11701_v20 = vadd.f32 %v3131_v50, %v2981_v1  ;;  %v3413_v21 = vand.u32 2147483648, %v11658_v37  ;;  %v1131_v43 = vsub.f32 0.0, %v11667_v47  ;;  %v3405_v44 = vmul.f32 %v11688_v57, %v3404_v5  ;;  %v11752_v27 = vpop.eup %6790  ;;  %5244 = vmatpush.bf16.msrb.mxu1 %v6101_v18 }
 0x3be   : > { %v3419_v51 = vsub.f32 1.0, %v3418_v58  ;;  %vm3422_vm2 = vweird.f32 %v11665_v52  ;;  %v1428_v9 = vmul.f32 1.442695, %v1130_v63  ;;  %v1140_v22 = vsub.f32 0.0, %v11686_v8 }
 0x3bf   : > { %vm3408_vm3 = vweird.f32 %v11688_v57  ;;  %v1430_v49 = vmul.f32 1.442695, %v1131_v43  ;;  %v1141_v11 = vsub.f32 0.0, %v11710_v45  ;;  %v3426_v31 = vand.u32 2147483647, %v11665_v52 }
 0x3c0   : > { %v3420_v14 = vmul.f32 %v11707_v0, %v3419_v51  ;;  %6794 = vpow2.f32 %v1428_v9  ;;  %v1448_v56 = vmul.f32 1.442695, %v1140_v22  ;;  %v1150_v23 = vsub.f32 0.0, %v11736_v25  ;;  %v6793_v35 = vpop.eup %6792  ;;  %vm11788_vm6 = vmor %vm3407_vm0, %vm3408_vm3 }
 0x3c1   : > { %v3260_v1 = vsel %vm11745_vm13, %v11662_v34, %v3256_v24  ;;  %v3275_v50 = vsel %vm11758_vm4, %v11669_v10, %v3271_v62  ;;  %v3428_v2 = vand.u32 2147483648, %v11665_v52  ;;  %v3553_v59 = vmul.f32 %v11752_v27, %v11705_v19 }
 0x3c2   : > { %v3406_v13 = vadd.f32 %v11688_v57, %v3405_v44  ;;  %vm3423_vm5 = vweird.f32 %v11707_v0  ;;  %6796 = vpow2.f32 %v1430_v49  ;;  %v1450_v7 = vmul.f32 1.442695, %v1141_v11 }
 0x3c3   : > { %v3421_v34 = vadd.f32 %v11707_v0, %v3420_v14  ;;  %v3554_v38 = vsub.f32 1.0, %v3553_v59  ;;  %v11778_v10 = vadd.f32 1.0, %v6793_v35  ;;  %6798 = vpow2.f32 %v1448_v56  ;;  %vm11806_vm8 = vmor %vm3422_vm2, %vm3423_vm5 }
 0x3c4   : > { %v3265_v29 = vsel %vm11720_vm15, %v3264_v15, %v3260_v1  ;;  %v3280_v55 = vsel %vm11725_vm1, %v3279_v36, %v3275_v50  ;;  %6800 = vpow2.f32 %v1450_v7  ;;  %v1468_v17 = vmul.f32 1.442695, %v1150_v23 }
 0x3c5   : > { %vm11792_vm7 = vcmp.eq.f32.partialorder %v3411_v16, 8.507059e+37  ;;  %v3555_v15 = vmul.f32 %v11752_v27, %v3554_v38  ;;  %6802 = vrcp.f32 %v11778_v10  ;;  %v1151_v5 = vsub.f32 0.0, %v11775_v42 }
 0x3c6   : > { %v6795_v48 = vpop.eup %6794  ;;  %v3410_v6 = vsel %vm11788_vm6, %v11688_v57, %v3406_v13  ;;  %v3414_v37 = vor.u32 1.1754944e-38, %v3413_v21  ;;  %vm11810_vm11 = vcmp.eq.f32.partialorder %v3426_v31, 8.507059e+37  ;;  %v3429_v16 = vor.u32 1.1754944e-38, %v3428_v2 }
 0x3c7   : > { %v3266_v63 = vmul.f32 %v3265_v29, %v11530_v40  ;;  %v3281_v24 = vmul.f32 %v3280_v55, %v11556_v28  ;;  %v3425_v57 = vsel %vm11806_vm8, %v11707_v0, %v3421_v34  ;;  %v11819_v62 = vadd.f32 1.0, %v6795_v48 }
 0x3c8   : > { %v6797_v52 = vpop.eup %6796  ;;  %v3556_v21 = vadd.f32 %v11752_v27, %v3555_v15  ;;  %vm3557_vm10 = vweird.f32 %v11705_v19  ;;  %vm3558_vm12 = vweird.f32 %v11752_v27  ;;  %6804 = vpow2.f32 %v1468_v17 }
 0x3c9   : > { %v6799_v43 = vpop.eup %6798  ;;  %v3415_v40 = vsel %vm11792_vm7, %v3414_v37, %v3410_v6  ;;  %v3563_v28 = vand.u32 2147483648, %v11705_v19  ;;  %6806 = vrcp.f32 %v11819_v62  ;;  %v1470_v44 = vmul.f32 1.442695, %v1151_v5  ;;  %vm11847_vm15 = vmor %vm3557_vm10, %vm3558_vm12 }
 0x3ca   : > { %v6801_v0 = vpop.eup %6800  ;;  %v3430_v9 = vsel %vm11810_vm11, %v3429_v16, %v3425_v57  ;;  %v3561_v22 = vand.u32 2147483647, %v11705_v19  ;;  %v11831_v46 = vadd.f32 1.0, %v6797_v52  ;;  %v11833_v14 = vadd.f32 1.0, %v6799_v43 }
 0x3cb   : > { %v11835_v49 = vpop.eup %6802  ;;  %v11840_v11 = vadd.f32 %v4145_v3, %v11684_v61  ;;  %v4156_v30 = vrot.slane %v11591_v53, 4  ;;  %v11851_v56 = vadd.f32 1.0, %v6801_v0  ;;  %v3416_v23 = vmul.f32 %v3415_v40, %v11572_v41 }
 0x3cc   : > { %v3560_v1 = vsel %vm11847_vm15, %v11752_v27, %v3556_v21  ;;  %v3568_v61 = vmul.f32 %v11835_v49, %v11778_v10  ;;  %6808 = vrcp.f32 %v11831_v46  ;;  %v3431_v3 = vmul.f32 %v3430_v9, %v11589_v60 }
 0x3cd   : > { %v3564_v19 = vor.u32 1.1754944e-38, %v3563_v28  ;;  %v3578_v50 = vand.u32 2147483648, %v11778_v10  ;;  %6810 = vpow2.f32 %v1470_v44  ;;  %v4267_v59 = vadd.f32 %v11695_v39, %v3266_v63 }
 0x3ce   : > { %v6805_v2 = vpop.eup %6804  ;;  %v4280_v41 = vadd.f32 %v11701_v20, %v3281_v24  ;;  %vm3562_vm14 = vcmp.eq.f32.partialorder %v3561_v22, 8.507059e+37  ;;  %6812 = vrcp.f32 %v11833_v14  ;;  %v3711_v13 = vand.u32 2147483647, %v11819_v62 }
 0x3cf   : > { %v11865_v27 = vpop.eup %6806  ;;  %v3565_v35 = vsel %vm3562_vm14, %v3564_v19, %v3560_v1  ;;  %v3713_v7 = vand.u32 2147483648, %v11819_v62  ;;  %6814 = vrcp.f32 %v11851_v56  ;;  %v11871_v60 = vadd.f32 %v4156_v30, %v11591_v53 }
 0x3d0   : > { %v11873_v26 = vadd.f32 %v4267_v59, %v3416_v23  ;;  %v3569_v39 = vsub.f32 1.0, %v3568_v61  ;;  %v3703_v20 = vmul.f32 %v11865_v27, %v11819_v62  ;;  %v11877_v18 = vadd.f32 %v4280_v41, %v3431_v3 }
 0x3d1   : > { %vm3572_vm1 = vweird.f32 %v11778_v10  ;;  %v3576_v34 = vand.u32 2147483647, %v11778_v10  ;;  %v11881_v38 = vor.u32 1.1754944e-38, %v3578_v50  ;;  %v11886_v55 = vmul.f32 %v3565_v35, %v11599_v54 }
 0x3d2   : > { %v11883_v29 = vpop.eup %6808  ;;  %v3704_v53 = vsub.f32 1.0, %v3703_v20  ;;  %vm3707_vm0 = vweird.f32 %v11819_v62  ;;  %v11889_v17 = vadd.f32 1.0, %v6805_v2  ;;  %vm3573_vm2 = vweird.f32 %v11835_v49 }
 0x3d3   : > { %v6811_v33 = vpop.eup %6810  ;;  %vm11892_vm13 = vcmp.eq.f32.partialorder %v3711_v13, 8.507059e+37  ;;  %v3714_v15 = vor.u32 1.1754944e-38, %v3713_v7  ;;  %v3718_v5 = vmul.f32 %v11883_v29, %v11831_v46  ;;  %vm3722_vm3 = vweird.f32 %v11831_v46  ;;  %vm11941_vm12 = vmor %vm3572_vm1, %vm3573_vm2 }
 0x3d4   : > { %v6813_v54 = vpop.eup %6812  ;;  %v3570_v48 = vmul.f32 %v11835_v49, %v3569_v39  ;;  %v3705_v6 = vmul.f32 %v11865_v27, %v3704_v53  ;;  %v3726_v37 = vand.u32 2147483647, %v11831_v46  ;;  %6816 = vrcp.f32 %v11889_v17 }
 0x3d5   : > { %v11903_v36 = vpop.eup %6814  ;;  %vm3708_vm4 = vweird.f32 %v11865_v27  ;;  %v3719_v51 = vsub.f32 1.0, %v3718_v5  ;;  %v3728_v16 = vand.u32 2147483648, %v11831_v46  ;;  %v3853_v63 = vmul.f32 %v6813_v54, %v11833_v14 }
 0x3d6   : > { %vm11908_vm5 = vcmp.eq.f32.partialorder %v3576_v34, 8.507059e+37  ;;  %v3706_v57 = vadd.f32 %v11865_v27, %v3705_v6  ;;  %v3861_v52 = vand.u32 2147483647, %v11833_v14  ;;  %v3868_v21 = vmul.f32 %v11903_v36, %v11851_v56  ;;  %vm11924_vm7 = vmor %vm3707_vm0, %vm3708_vm4 }
 0x3d7   : > { %v11916_v43 = vadd.f32 1.0, %v6811_v33  ;;  %v3720_v40 = vmul.f32 %v11883_v29, %v3719_v51  ;;  %v3854_v28 = vsub.f32 1.0, %v3853_v63  ;;  %vm3857_vm6 = vweird.f32 %v11833_v14 }
 0x3d8   : > { %v3863_v44 = vand.u32 2147483648, %v11833_v14  ;;  %v3571_v0 = vadd.f32 %v11835_v49, %v3570_v48  ;;  %vm3723_vm8 = vweird.f32 %v11883_v29  ;;  %vm11929_vm11 = vcmp.eq.f32.partialorder %v3726_v37, 8.507059e+37  ;;  %v6100_v37 = vld [vmem:[#allocation5 + $0x250] sm:$0xff] }
 0x3d9   : > { %v3869_v30 = vsub.f32 1.0, %v3868_v21  ;;  %v3710_v31 = vsel %vm11924_vm7, %v11865_v27, %v3706_v57  ;;  %v3721_v23 = vadd.f32 %v11883_v29, %v3720_v40  ;;  %v3855_v1 = vmul.f32 %v6813_v54, %v3854_v28  ;;  %vm11953_vm14 = vmor %vm3722_vm3, %vm3723_vm8  ;;  %5245 = vmatpush.bf16.msrb.mxu1 %v6100_v37 }
 0x3da   : > { %vm3858_vm10 = vweird.f32 %v6813_v54  ;;  %v6817_v62 = vpop.eup %6816  ;;  %v3729_v3 = vor.u32 1.1754944e-38, %v3728_v16  ;;  %vm11945_vm15 = vcmp.eq.f32.partialorder %v3861_v52, 8.507059e+37  ;;  %6818 = vrcp.f32 %v11916_v43  ;;  %v6099_v52 = vld [vmem:[#allocation5 + $0x248] sm:$0xff] }
 0x3db   : > { %v3870_v50 = vmul.f32 %v11903_v36, %v3869_v30  ;;  %v3856_v10 = vadd.f32 %v6813_v54, %v3855_v1  ;;  %v3864_v59 = vor.u32 1.1754944e-38, %v3863_v44  ;;  %vm3872_vm1 = vweird.f32 %v11851_v56  ;;  %vm3859_vm0 = vmor %vm3857_vm6, %vm3858_vm10  ;;  %v6090_v1 = vld [vmem:[#allocation5 + $0x200] sm:$0xff] }
 0x3dc   : > { %v4003_v41 = vmul.f32 %v6817_v62, %v11889_v17  ;;  %v3575_v27 = vsel %vm11941_vm12, %v11835_v49, %v3571_v0  ;;  %v3715_v35 = vsel %vm11892_vm13, %v3714_v15, %v3710_v31  ;;  %vm3873_vm2 = vweird.f32 %v11903_v36 }
 0x3dd   : > { %v3876_v46 = vand.u32 2147483647, %v11851_v56  ;;  %v3725_v13 = vsel %vm11953_vm14, %v11883_v29, %v3721_v23  ;;  %v3860_v7 = vsel %vm3859_vm0, %v6813_v54, %v3856_v10  ;;  %v3871_v39 = vadd.f32 %v11903_v36, %v3870_v50  ;;  %vm11989_vm3 = vmor %vm3872_vm1, %vm3873_vm2  ;;  %5246 = vmatpush.bf16.msrb.mxu1 %v6099_v52 }
 0x3de   : > { %v4004_v20 = vsub.f32 1.0, %v4003_v41  ;;  %v3865_v49 = vsel %vm11945_vm15, %v3864_v59, %v3860_v7  ;;  %v3878_v34 = vand.u32 2147483648, %v11851_v56  ;;  %v4011_v14 = vand.u32 2147483647, %v11889_v17  ;;  %v6092_v56 = vld [vmem:[#allocation5 + $0x210] sm:$0xff] }
 0x3df   : > { %v4013_v53 = vand.u32 2147483648, %v11889_v17  ;;  %v3580_v33 = vsel %vm11908_vm5, %v11881_v38, %v3575_v27  ;;  %v3716_v58 = vmul.f32 %v3715_v35, %v11631_v32  ;;  %vm4008_vm13 = vweird.f32 %v6817_v62  ;;  %5232 = vmatpush.bf16.msrb.mxu0 %v6092_v56 }
 0x3e0   : > { %v4005_v29 = vmul.f32 %v6817_v62, %v4004_v20  ;;  %v6819_v15 = vpop.eup %6818  ;;  %v4269_v5 = vadd.f32 %v11873_v26, %v11886_v55  ;;  %v3730_v54 = vsel %vm11929_vm11, %v3729_v3, %v3725_v13  ;;  %vm11993_vm4 = vcmp.eq.f32.partialorder %v3876_v46, 8.507059e+37 }
 0x3e1   : > { %vm4007_vm5 = vweird.f32 %v11889_v17  ;;  %v3866_v32 = vmul.f32 %v3865_v49, %v11686_v8  ;;  %v3875_v26 = vsel %vm11989_vm3, %v11903_v36, %v3871_v39  ;;  %v4018_v6 = vmul.f32 %v6819_v15, %v11916_v43  ;;  %v6091_v36 = vld [vmem:[#allocation5 + $0x208] sm:$0xff]  ;;  %v4330_v49 = vld.sshfl [vmem:[#allocation1] sm:$0xff pattern:$0x73625140] }
 0x3e2   : > { %v4006_v55 = vadd.f32 %v6817_v62, %v4005_v29  ;;  %v3581_v51 = vmul.f32 %v3580_v33, %v11609_v4  ;;  %v3879_v16 = vor.u32 1.1754944e-38, %v3878_v34  ;;  %vm4009_vm6 = vmor %vm4007_vm5, %vm4008_vm13  ;;  %vm4012_vm7 = vcmp.eq.f32.partialorder %v4011_v14, 8.507059e+37 }
 0x3e3   : > { %v4014_v63 = vor.u32 1.1754944e-38, %v4013_v53  ;;  %v4270_v24 = vadd.f32 %v4269_v5, %v3716_v58  ;;  %v3731_v17 = vmul.f32 %v3730_v54, %v11667_v47  ;;  %v4019_v57 = vsub.f32 1.0, %v4018_v6  ;;  %5233 = vmatpush.bf16.msrb.mxu0 %v6091_v36 }
 0x3e4   : > { %v4010_v8 = vsel %vm4009_vm6, %v6817_v62, %v4006_v55  ;;  %v3880_v21 = vsel %vm11993_vm4, %v3879_v16, %v3875_v26  ;;  %v4026_v4 = vand.u32 2147483647, %v11916_v43  ;;  %v4028_v28 = vand.u32 2147483648, %v11916_v43  ;;  %v6098_v62 = vld [vmem:[#allocation5 + $0x240] sm:$0xff] }
 0x3e5   : > { %v4015_v40 = vsel %vm4012_vm7, %v4014_v63, %v4010_v8  ;;  %v4271_v44 = vadd.f32 %v4270_v24, %v3866_v32  ;;  %v4020_v9 = vmul.f32 %v6819_v15, %v4019_v57  ;;  %vm4023_vm8 = vweird.f32 %v6819_v15  ;;  %5247 = vmatpush.bf16.msrb.mxu1 %v6098_v62 }
 0x3e6   : > { %v4016_v0 = vmul.f32 %v4015_v40, %v11736_v25  ;;  %v4158_v47 = vrot.slane %v11871_v60, 2  ;;  %v4282_v22 = vadd.f32 %v11877_v18, %v3581_v51  ;;  %v3881_v30 = vmul.f32 %v3880_v21, %v11710_v45 }
 0x3e7   : > { %v4021_v23 = vadd.f32 %v6819_v15, %v4020_v9  ;;  %vm4022_vm11 = vweird.f32 %v11916_v43  ;;  %v4147_v61 = vrot.slane %v11840_v11, 1  ;;  %v4029_v25 = vor.u32 1.1754944e-38, %v4028_v28  ;;  %5234 = vmatpush.bf16.msrb.mxu0 %v6090_v1 }
 0x3e8   : > { %v4272_v31 = vadd.f32 %v4271_v44, %v4016_v0  ;;  %vm4024_vm10 = vmor %vm4022_vm11, %vm4023_vm8  ;;  %v4283_v3 = vadd.f32 %v4282_v22, %v3731_v17  ;;  %vm4027_vm12 = vcmp.eq.f32.partialorder %v4026_v4, 8.507059e+37  ;;  %v4159_v18 = vadd.f32 %v4158_v47, %v11871_v60 }
 0x3e9   : > { %v4025_v50 = vsel %vm4024_vm10, %v6819_v15, %v4021_v23  ;;  %v4148_v43 = vadd.f32 %v4147_v61, %v11840_v11  ;;  %v4340_v14 = vrot.slane %v4330_v49, 1  ;;  %v4331_v11 = vld.sshfl [vmem:[#allocation1 + $0x8] sm:$0xff pattern:$0x73625140]  ;;  %v6973_v1 = vmov 2.0  }
 0x3ea   : > { %v4273_v19 = vrot.slane %v4272_v31, 4  ;;  %v4030_v2 = vsel %vm4027_vm12, %v4029_v25, %v4025_v50  ;;  %v4284_v45 = vadd.f32 %v4283_v3, %v3881_v30  ;;  %v4160_v35 = vrot.slane %v4159_v18, 1 }
 0x3eb   : > { %v4031_v59 = vmul.f32 %v4030_v2, %v11775_v42  ;;  %v4300_v7 = vmul.f32 0.015625, %v4148_v43  ;;  %v4341_v32 = vrot.slane %v4331_v11, 1  ;;  %6820 = vrcp.f32 %v6973_v1 }
 0x3ec   : > { %v4274_v10 = vadd.f32 %v4273_v19, %v4272_v31  ;;  %v4161_v34 = vadd.f32 %v4160_v35, %v4159_v18  ;;  %vm5254_vm15 = vcmask 1041408  }
 0x3ed   : > { %v4285_v27 = vadd.f32 %v4284_v45, %v4031_v59  ;;  %v4370_v33 = vmul.f32 %v4330_v49, %v4300_v7  ;;  %v6113_v7 = vld [vmem:[%s12094_s6 + $0x38] sm:$0xff] }
 0x3ee   : > { %v4275_v41 = vrot.slane %v4274_v10, 2  ;;  %v4301_v29 = vmul.f32 0.015625, %v4161_v34  ;;  %5368 = vmatpush.bf16.msra.mxu2 %v6113_v7  ;;  %v6112_v34 = vld [vmem:[%s12094_s6 + $0x30] sm:$0xff] }
 0x3ef   : > { %v4286_v13 = vrot.slane %v4285_v27, 4  ;;  %v4390_v54 = vpack.c.bf16 %v4370_v33, %v4370_v33 }
 0x3f0   : > { %v4276_v46 = vadd.f32 %v4275_v41, %v4274_v10  ;;  %v4371_v55 = vmul.f32 %v4331_v11, %v4301_v29 }
 0x3f1   : > { %v4287_v20 = vadd.f32 %v4286_v13, %v4285_v27  ;;  %v4590_v51 = vunpack.c.l.b16 %v4390_v54  ;;  %v6821_v61 = vpop.eup %6820 }
 0x3f2   : > { %v4277_v39 = vrot.slane %v4276_v46, 1  ;;  %v4391_v17 = vpack.c.bf16 %v4371_v55, %v4371_v55  ;;  %v5263_v3 = vmul.f32 2.0, %v6821_v61  ;;  %5369 = vmatpush.bf16.msra.mxu2 %v6112_v34 }
 0x3f3   : > { %v4288_v53 = vrot.slane %v4287_v20, 2 }
 0x3f4   : > { %v4278_v60 = vadd.f32 %v4277_v39, %v4276_v46  ;;  %v4591_v4 = vunpack.c.l.b16 %v4391_v17  ;;  %v5264_v45 = vsub.f32 1.0, %v5263_v3 }
 0x3f5   : > { %v4289_v42 = vadd.f32 %v4288_v53, %v4287_v20  ;;  %v6111_v53 = vld [vmem:[%s12094_s6 + $0x28] sm:$0xff] }
 0x3f6   : > { %v4310_v58 = vmul.f32 0.015625, %v4278_v60  ;;  %v5265_v43 = vmul.f32 %v6821_v61, %v5264_v45  ;;  %5370 = vmatpush.bf16.msra.mxu2 %v6111_v53 }
 0x3f7   : > { %v4290_v5 = vrot.slane %v4289_v42, 1 }
 0x3f8   : > { %v4380_v15 = vmul.f32 %v4340_v14, %v4310_v58  ;;  %v5266_v46 = vadd.f32 %v6821_v61, %v5265_v43 }
 0x3f9   : > { %v4291_v38 = vadd.f32 %v4290_v5, %v4289_v42  ;;  %v6110_v42 = vld [vmem:[%s12094_s6 + $0x20] sm:$0xff]  ;;  %v6109_v5 = vld [vmem:[%s12094_s6 + $0x18] sm:$0xff] }
 0x3fa   : > { %v4400_v48 = vpack.c.bf16 %v4380_v15, %v4380_v15  ;;  %5371 = vmatpush.bf16.msra.mxu2 %v6110_v42 }
 0x3fb   : > { %v4311_v56 = vmul.f32 0.015625, %v4291_v38 }
 0x3fc   : > { %v4600_v6 = vunpack.c.l.b16 %v4400_v48  ;;  %v6108_v48 = vld [vmem:[%s12094_s6 + $0x10] sm:$0xff] }
 0x3fd   : > { %v4381_v63 = vmul.f32 %v4341_v32, %v4311_v56 }
 0x3fe   : > { %v4619_v16 = vrot.slane %v4600_v6, 7  ;;  %5372 = vmatpush.bf16.msra.mxu2 %v6109_v5  ;;  %v6106_v6 = vld [vmem:[%s12094_s6] sm:$0xff] }
 0x3ff   : > { %v4401_v8 = vpack.c.bf16 %v4381_v63, %v4381_v63 }
 0x400   : > { %v4620_v57 = vsel %vm4603_vm9, %v4619_v16, %v4590_v51 }
 0x401   : > { %v4631_v52 = vpack.c.b16 %v4620_v57, %v4620_v57  ;;  %v4601_v21 = vunpack.c.l.b16 %v4401_v8  ;;  %v6178_v8 = vld [vmem:[%s12092_s4] ss:$0 sm:$0xff] }
 0x402   : > { %v5184_v26 = vpop.f32.mrf.mxu2  ;;  %5373 = vmatpush.bf16.msra.mxu2 %v6108_v48 }
 0x403   : > { %v5185_v37 = vadd.f32 %v5184_v26, %v11582_v12  ;;  %5235 = vmatmul.bf16.vlgmr.msrb.gmra.mxu0 %v4631_v52  ;;  %v4621_v28 = vrot.slane %v4601_v21, 7  ;;  %v6107_v26 = vld [vmem:[%s12094_s6 + $0x8] sm:$0xff]  ;;  %v6179_v52 = vld [vmem:[%s12093_s5] ss:$0 sm:$0xff] }
 0x405   : > { %v5197_v24 = vpop.f32.mrf.mxu3  ;;  %v4622_v44 = vsel %vm4603_vm9, %v4621_v28, %v4591_v4  ;;  %vm5267_vm9 = vweird.f32 %v6821_v61 }
 0x406   : > { %v5198_v36 = vadd.f32 %v5197_v24, %v5185_v37  ;;  %v4632_v0 = vpack.c.b16 %v4622_v44, %v4622_v44  ;;  %v5268_v20 = vsel %vm5267_vm9, %v6821_v61, %v5266_v46  ;;  %5374 = vmatpush.bf16.msra.mxu2 %v6107_v26 }
 0x408   : > { %5248 = vmatmul.bf16.vlgmr.msrb.gmra.mxu1 %v4632_v0 }
 0x40a   : > { %v5186_v40 = vpop.f32.mrf.mxu2  ;;  %5375 = vmatpush.bf16.msra.mxu2 %v6106_v6 }
 0x40d   : > { %v5199_v9 = vpop.f32.mrf.mxu3 }
 0x413   : > { %v5210_v12 = vpop.f32.mrf.mxu2 }
 0x414   : > { %v5211_v47 = vadd.f32 %v5210_v12, %v5198_v36 }
 0x41b   : > { %v5212_v22 = vpop.f32.mrf.mxu2 }
 0x41f   : > { %v5223_v30 = vpop.f32.mrf.mxu3 }
 0x420   : > { %v5224_v31 = vadd.f32 %v5223_v30, %v5211_v47 }
 0x427   : > { %v5225_v23 = vpop.f32.mrf.mxu3 }
 0x480   : > { %v5236_v62 = vpop.f32.mrf.mxu0 }
 0x481   : > { %v5237_v25 = vadd.f32 %v5236_v62, %v5224_v31 }
 0x485   : > { %v5249_v19 = vpop.f32.mrf.mxu1 }
 0x486   : > { %v5250_v50 = vadd.f32 %v5249_v19, %v5237_v25 }
 0x488   : > { %v5238_v18 = vpop.f32.mrf.mxu0  ;;  %v5253_v2 = vmul.f32 2.0, %v5250_v50 }
 0x48a   : > { %v5255_v10 = vsel %vm5254_vm15, %v5253_v2, 0.0 }
 0x48b   : > { %v5256_v59 = vrot.slane %v5255_v10, 4 }
 0x48d   : > { %v5257_v41 = vadd.f32 %v5256_v59, %v5255_v10  ;;  %v5251_v27 = vpop.f32.mrf.mxu1 }
 0x48f   : > { %v5258_v35 = vrot.slane %v5257_v41, 2 }
 0x491   : > { %v5259_v13 = vadd.f32 %v5258_v35, %v5257_v41 }
 0x493   : > { %v5260_v39 = vrot.slane %v5259_v13, 1 }
 0x495   : > { %v5261_v49 = vadd.f32 %v5260_v39, %v5259_v13 }
 0x497   : > { %v5269_v60 = vmul.f32 %v5268_v20, %v5261_v49 }
 0x499   : > { %v5270_v14 = vsub.f32 %v5253_v2, %v5269_v60 }
 0x49b   : > { %v5271_v33 = vmul.f32 %v5270_v14, %v5270_v14 }
 0x49d   : > { %v5272_v58 = vsel %vm5254_vm15, %v5271_v33, 0.0 }
 0x49e   : > { %v5273_v29 = vrot.slane %v5272_v58, 4 }
 0x4a0   : > { %v5274_v15 = vadd.f32 %v5273_v29, %v5272_v58 }
 0x4a2   : > { %v5275_v11 = vrot.slane %v5274_v15, 2 }
 0x4a4   : > { %v5276_v54 = vadd.f32 %v5275_v11, %v5274_v15 }
 0x4a6   : > { %v5277_v38 = vrot.slane %v5276_v54, 1 }
 0x4a8   : > { %v5278_v32 = vadd.f32 %v5277_v38, %v5276_v54 }
 0x4aa   : > { %v5279_v55 = vmul.f32 %v5278_v32, %v5268_v20 }
 0x4ac   : > { %v5280_v56 = vadd.f32 1e-05, %v5279_v55 }
 0x4ae   : > { %6822 = vrsqrt.f32 %v5280_v56  ;;  %vm5287_vm1 = vweird.f32 %v5280_v56 }
 0x4b4   : > { %v6823_v37 = vpop.eup %6822 }
 0x4b5   : > { %v5282_v51 = vmul.f32 %v6823_v37, %v5280_v56  ;;  %vm5288_vm14 = vweird.f32 %v6823_v37 }
 0x4b6   : > { %vm5289_vm0 = vmor %vm5287_vm1, %vm5288_vm14 }
 0x4b7   : > { %v5283_v16 = vmul.f32 %v6823_v37, %v5282_v51 }
 0x4b9   : > { %v5284_v63 = vmul.f32 0.5, %v5283_v16 }
 0x4bb   : > { %v5285_v24 = vsub.f32 1.5, %v5284_v63 }
 0x4bd   : > { %v5286_v17 = vmul.f32 %v6823_v37, %v5285_v24 }
 0x4bf   : > { %v5290_v57 = vsel %vm5289_vm0, %v6823_v37, %v5286_v17 }
 0x4c0   : > { %v5291_v36 = vmul.f32 %v5290_v57, %v5270_v14 }
 0x4c2   : > { %v5296_v21 = vmul.f32 %v6178_v8, %v5291_v36 }
 0x4c4   : > { %v5301_v40 = vadd.f32 %v6179_v52, %v5296_v21 }
 0x4c6   : > { %v5302_v4 = vmax.f32 %v5301_v40, 0.0 }
 0x4c8   : > { %v5303_v28 = vpack.c.bf16 %v5302_v4, %v5302_v4 }
 0x4ca   : > { %5376 = vmatmul.bf16.vlgmr.msra.gmra.mxu2 %v5303_v28 }
 0x54d   : > { %v5377_v44 = vpop.f32.mrf.mxu2 }
 0x54e   : > { %5381 = vst [vmem:[%s329_s11] sm:$0x3] %v5377_v44 }
 0x54f   : > { %6924 = shalt.err (!%p6921_p10)
}
 0x550   : > { %6123 = dma.vmem_to_hbm [thread:$0]  (%p7074_p0), %s5396_s12, 32, %s5398_s9, %s5383_s13  }
 0x555   : > { %v5379_v0 = vpop.f32.mrf.mxu2 }
 0x556 PF: > { %s5409_s21 = sand.u32 1, %s6955_s24   ;;  %p12585_p11 = scmp.ge.s32.totalorder %s6967_s27, 2 }
 0x557   : > { %s5410_s3 = scalar_lea.sflag [#allocation4], %s5409_s21 }
 0x558   : > { %p6134_p12 = pnand %p12585_p11, %p7080_p6 }
 0x55a   : > { %p6135_p2 = pneg %p6134_p12 }
 0x55c   : > { %6950 = dma.done.wait (%p6135_p2), %s5410_s3, 32  }
 0x55d   : > { %6952 = vsyncadd (%p6135_p2), %s5410_s3, 4294967264  ;;  %s12586_s27 = sld [smem:[#allocation12_spill]]  ;;  %s12589_s24 = smov %s6959_s25 }
 0x55e   : > { %s12587_s26 = sld [smem:[#allocation11_spill]] }
 0x55f   : > { %s12588_s18 = sld [smem:[#allocation13_spill]] }
 0x563   : > { %p21_p4 = scmp.ge.s32.totalorder %s12586_s27, 4  }
 0x564   : > { %s12590_s25 = smov %s12587_s26 }
 0x565   : > { %s12591_s26 = smov %s12588_s18  ;;  %23 = sbr.rel (!%p21_p4) target bundleno = 8 (0x8), region = 101 }
 0x56a   :  { %5416 = vsyncpa [#allocation3], 1 }
 0x56b   :  { %5418 = vsyncpa [#allocation3 + $0x1], 1 }
 0x56c   :  { %5419 = vsyncpa [#allocation6], 1 }
 0x56d   :  { %5420 = vsyncpa [#allocation4], 1 }
 0x56e   :  { %5422 = vsyncpa [#allocation4 + $0x1], 1 }

</bundles_post_ra>
